<compile_context>
chip_gen: v6e
topology: v6e:2x2x1
jax: 0.10.0
libtpu: 0.0.40
codegen_flags: <defaults>
</compile_context>

<pallas_src>
import functools

import jax
import jax.numpy as jnp
import numpy as np
from jax.experimental import pallas as pl
from jax.experimental.pallas import tpu as pltpu


def get_padding(kernel_size, dilation=1):
    return int((kernel_size * dilation - dilation) / 2)


def _round_up(x, m):
    return ((x + m - 1) // m) * m


_HALO = 8  # rows per halo block (8-aligned; >= K-1 for every conv in this module)


def _vmem_capacity_bytes():
    try:
        cap = getattr(pltpu.get_tpu_info(), "vmem_capacity_bytes", None)
        if cap:
            return int(cap)
    except Exception:
        pass
    return 64 << 20  # conservative default (v7x per-TensorCore VMEM)


# --------------------------- Pallas kernel ---------------------------------

def _conv_k1_kernel(x_ref, lead_ref, trail_ref, w_ref, b_ref, o_ref, *,
                    ksize, stride, pad, h_in, n_lead, n_trail, apply_lrelu):
    """1-D conv along H for one (batch, period-column) and one tile of TH output rows.

    x_ref    : (BIN, C_in)  rows [j*BIN, (j+1)*BIN) of the input buffer (BIN = TH*stride)
    lead_ref : (8, C_in)    rows [j*BIN-8, j*BIN)       (clamped to block 0 when j == 0)
    trail_ref: (8, C_in)    rows [(j+1)*BIN, (j+1)*BIN+8)
    w_ref    : (K*C_in, C_out)   tap-major im2col weights
    b_ref    : (1, C_out)   float32 bias
    o_ref    : (TH, C_out)
    """
    j = pl.program_id(1)
    th, _ = o_ref.shape
    bin_rows, _ = x_ref.shape
    k_sz, s, p = ksize, stride, pad
    row0 = j * bin_rows                 # global input row of x_ref[0]

    def fetch_row(rel):
        # One input row at window-relative index `rel`; zero for padding / past-the-end rows.
        if rel < 0:                     # leading zero padding (or previous tile via halo)
            piece = lead_ref[_HALO + rel:_HALO + rel + 1, :]
            cond = jnp.logical_and(j > 0, row0 + rel < h_in)
        elif rel < bin_rows:            # main window
            piece = x_ref[rel:rel + 1, :]
            cond = row0 + rel < h_in
        else:                           # trailing halo
            piece = trail_ref[rel - bin_rows:rel - bin_rows + 1, :]
            cond = row0 + rel < h_in
        return jnp.where(cond, piece, jnp.zeros_like(piece))

    def boundary_rows(rows):
        # Handful of boundary output rows, each built as a (1, K*C_in) im2col row.
        lhs = jnp.concatenate(
            [jnp.concatenate([fetch_row(r * s + k - p) for k in range(k_sz)], axis=-1)
             for r in rows], axis=0)
        return jnp.dot(lhs, w_ref[...], preferred_element_type=jnp.float32)

    # --- interior output rows: every tap is a strided slice of the main window ---
    n_int = th - n_lead - n_trail
    base = n_lead * s - p               # >= 0 by construction
    row_ids = (jax.lax.broadcasted_iota(jnp.int32, (n_int, 1), 0) * s + (row0 + base))
    cols = []
    for k in range(k_sz):
        if s > 1:
            tap = x_ref[pl.ds(base + k, n_int, stride=s), :]
        else:
            tap = x_ref[pl.ds(base + k, n_int), :]
        tap = jnp.where(row_ids + k < h_in, tap, jnp.zeros_like(tap))
        cols.append(tap)
    lhs = jnp.concatenate(cols, axis=-1)                       # (n_int, K*C_in)
    acc = jnp.dot(lhs, w_ref[...], preferred_element_type=jnp.float32)

    # --- boundary output rows (first n_lead / last n_trail rows of the tile) ---
    parts = []
    if n_lead:
        parts.append(boundary_rows(list(range(n_lead))))
    parts.append(acc)
    if n_trail:
        parts.append(boundary_rows(list(range(th - n_trail, th))))
    acc = jnp.concatenate(parts, axis=0) if len(parts) > 1 else acc

    acc = acc + b_ref[...]                                     # f32 bias
    if apply_lrelu:
        acc = jnp.where(acc >= 0, acc, 0.1 * acc)              # leaky_relu(x, 0.1), f32
    o_ref[...] = acc.astype(o_ref.dtype)


# --------------------------- sizing helpers ---------------------------------

def _choose_th(h_out, c_in, c_out, ksize, stride, itemsize, budget, th_cap=None):
    """Output rows per grid step: as big as the per-step VMEM budget allows."""
    cpad = lambda c: _round_up(max(c, 1), 128)
    row_bytes = 2 * (stride * cpad(c_in) + cpad(c_out)) * itemsize     # dbuf in/out blocks
    row_bytes += cpad(c_out) * 4 + cpad(ksize * c_in) * itemsize       # f32 acc + im2col lhs
    th = budget // row_bytes
    th = min(th, 1024, _round_up(h_out, 8))
    if th_cap is not None:
        th = min(th, th_cap)
    return max(8, (th // 8) * 8)


def _vmem_limit_bytes(th, bin_rows, c_in, c_out, ksize, itemsize):
    cpad = lambda c: _round_up(max(c, 1), 128)

    def blk(rows, c, isz):
        return _round_up(rows, 8) * cpad(c) * isz

    est = 2 * (blk(bin_rows, c_in, itemsize) + 2 * blk(_HALO, c_in, itemsize)
               + blk(th, c_out, itemsize))                              # double-buffered blocks
    est += 2 * (blk(ksize * c_in, c_out, itemsize) + blk(1, c_out, 4))  # weights + bias
    est += blk(th, c_out, 4) + blk(th, ksize * c_in, itemsize)          # acc + lhs temporaries
    cap = max(_vmem_capacity_bytes() - (8 << 20), 32 << 20)             # chip-aware ceiling
    return int(min(max(2 * est + (4 << 20), 32 << 20), cap))


# --------------------------- conv wrapper ------------------------------------

def conv2d_k1(x, w_flat, bias, *, ksize, stride, pad, h_in, th, apply_lrelu,
              min_out_rows=0):
    """Conv2d with kernel (K,1), stride (s,1), padding (pad,0) over independent columns.

    x      : (N, H_store, C_in); rows [0, h_in) are valid, H_store >= nj*TH*s + 8.
    w_flat : (K*C_in, C_out) tap-major weights.  bias: (C_out,).
    Returns ((N, H_out_store, C_out) buffer, H_out); rows [0, H_out) hold the conv output.
    """
    n_cols, h_store, c_in = x.shape
    c_out = w_flat.shape[1]
    k_sz, s, p = ksize, stride, pad
    h_out = (h_in + 2 * p - k_sz) // s + 1
    nj = pl.cdiv(h_out, th)
    bin_rows = th * s
    hb = bin_rows // _HALO
    assert h_store >= nj * bin_rows + _HALO, (h_store, nj, bin_rows)

    n_lead = -(-p // s)                 # output rows whose taps reach before the main window
    n_trail = (k_sz - 1 - p) // s       # output rows whose taps reach past the main window
    assert th > n_lead + n_trail

    h_out_store = max(nj * th, _round_up(max(min_out_rows, 1), 8))

    kernel = functools.partial(
        _conv_k1_kernel, ksize=k_sz, stride=s, pad=p, h_in=h_in,
        n_lead=n_lead, n_trail=n_trail, apply_lrelu=apply_lrelu)

    out = pl.pallas_call(
        kernel,
        out_shape=jax.ShapeDtypeStruct((n_cols, h_out_store, c_out), x.dtype),
        grid=(n_cols, nj),
        in_specs=[
            pl.BlockSpec((None, bin_rows, c_in), lambda n, j: (n, j, 0)),
            pl.BlockSpec((None, _HALO, c_in),
                         lambda n, j: (n, jnp.maximum(j * hb - 1, 0), 0)),
            pl.BlockSpec((None, _HALO, c_in), lambda n, j: (n, (j + 1) * hb, 0)),
            pl.BlockSpec((k_sz * c_in, c_out), lambda n, j: (0, 0)),
            pl.BlockSpec((1, c_out), lambda n, j: (0, 0)),
        ],
        out_specs=pl.BlockSpec((None, th, c_out), lambda n, j: (n, j, 0)),
        compiler_params=pltpu.CompilerParams(
            dimension_semantics=("parallel", "parallel"),
            vmem_limit_bytes=_vmem_limit_bytes(th, bin_rows, c_in, c_out, k_sz,
                                               x.dtype.itemsize)),
    )(x, x, x, w_flat, bias.astype(jnp.float32).reshape(1, c_out))
    return out, h_out


def _plan_network(h0, cfg, dtype, max_rows_per_step=None):
    """Static per-layer schedule: (H_in, H_out, TH, #tiles, read window in rows)."""
    itemsize = jnp.dtype(dtype).itemsize
    budget = max(4 << 20, (_vmem_capacity_bytes() - (16 << 20)) // 5)
    plans = []
    h = h0
    for (k_sz, s, p, ci, co, lrelu) in cfg:
        h_out = (h + 2 * p - k_sz) // s + 1
        th = _choose_th(h_out, ci, co, k_sz, s, itemsize, budget, max_rows_per_step)
        nj = -(-h_out // th)
        plans.append(dict(K=k_sz, s=s, pad=p, c_in=ci, c_out=co, lrelu=lrelu,
                          h_in=h, h_out=h_out, th=th, nj=nj,
                          read_rows=nj * th * s + _HALO))
        h = h_out
    return plans


# --------------------------- parameters ------------------------------------

def init_params(key, kernel_size=5, channels=16, num_layers=4, max_channels=256):
    """Deterministic synthetic weights, same shapes as the PyTorch module (weight_norm folded)."""
    k = kernel_size
    chans = [(1, channels)]
    c_prev = channels
    for _ in range(num_layers):
        c_next = min(c_prev * 2, max_channels)
        chans.append((c_prev, c_next))
        c_prev = c_next

    keys = jax.random.split(key, len(chans) + 1)
    convs = []
    for (ci, co), kk in zip(chans, keys[:-1]):
        kw, kb = jax.random.split(kk)
        bound = 1.0 / float(np.sqrt(ci * k * 1))
        w = jax.random.uniform(kw, (co, ci, k, 1), jnp.float32, -bound, bound)
        b = jax.random.uniform(kb, (co,), jnp.float32, -bound, bound)
        convs.append((w, b))

    kw, kb = jax.random.split(keys[-1])
    bound = 1.0 / float(np.sqrt(c_prev * 3 * 1))
    w_post = jax.random.uniform(kw, (1, c_prev, 3, 1), jnp.float32, -bound, bound)
    b_post = jax.random.uniform(kb, (1,), jnp.float32, -bound, bound)
    return {"convs": convs, "post": (w_post, b_post)}


# --------------------------- forward ----------------------------------------

def discriminator_p_forward(x, params, period, stride=3, dtype=jnp.bfloat16,
                            fmap_layout="NCHW", max_rows_per_step=None):
    """x: (B, 1, T) float32.  Returns (out, [fmap, ...]) like the PyTorch module.

    dtype=jnp.bfloat16 (default) stores activations/weights in bf16 with f32 accumulation;
    pass jnp.float32 to match the PyTorch module bit-for-bit (up to accumulation order).
    fmap_layout="NCHW" matches PyTorch; anything else returns native (B, W, H, C) fmaps.
    """
    b, _, t = x.shape
    if t % period != 0:
        n_pad = period - t % period
        x = jnp.pad(x, ((0, 0), (0, 0), (0, n_pad)), mode="reflect")
        t = t + n_pad
    h0 = t // period
    w_cols = period
    n_cols = b * w_cols

    convs = params["convs"]
    w_post, b_post = params["post"]
    pad5 = get_padding(5, 1)
    cfg = [(w.shape[2], stride, pad5, w.shape[1], w.shape[0], True) for (w, _) in convs]
    cfg.append((w_post.shape[2], 1, 1, w_post.shape[1], w_post.shape[0], False))

    plans = _plan_network(h0, cfg, dtype, max_rows_per_step)

    # (B, 1, T) -> (N = B*period, H, 1), with just enough trailing rows for the first layer's
    # read window.  This is the only relayout of activations outside the kernels.
    h_store0 = max(_round_up(h0, 8), plans[0]["read_rows"])
    xn = x.reshape(b, h0, w_cols)
    xn = jnp.transpose(xn, (0, 2, 1)).reshape(n_cols, h0)
    xn = jnp.pad(xn, ((0, 0), (0, h_store0 - h0)))
    xn = xn[:, :, None].astype(dtype)

    def to_fmap(buf, h_out, c_out):
        a = buf[:, :h_out, :].reshape(b, w_cols, h_out, c_out)
        if fmap_layout == "NCHW":
            return jnp.transpose(a, (0, 3, 2, 1))      # PyTorch (B, C, H, W)
        return a                                        # native (B, W, H, C): no transpose

    weights = list(convs) + [(w_post, b_post)]
    fmap = []
    buf = xn
    for i, (plan, (w, bias)) in enumerate(zip(plans, weights)):
        w_flat = jnp.transpose(w[:, :, :, 0], (2, 1, 0)).reshape(
            plan["K"] * plan["c_in"], plan["c_out"]).astype(dtype)
        next_rows = plans[i + 1]["read_rows"] if i + 1 < len(plans) else 0
        buf, h_out = conv2d_k1(
            buf, w_flat, bias, ksize=plan["K"], stride=plan["s"], pad=plan["pad"],
            h_in=plan["h_in"], th=plan["th"], apply_lrelu=plan["lrelu"],
            min_out_rows=next_rows)
        fmap.append(to_fmap(buf, h_out, plan["c_out"]))
    return fmap[-1], fmap


# --------------------------- pure-JAX reference ------------------------------

def _ref_forward(x, params, period, stride=3):
    b, c, t = x.shape
    if t % period != 0:
        n_pad = period - t % period
        x = jnp.pad(x, ((0, 0), (0, 0), (0, n_pad)), mode="reflect")
        t = t + n_pad
    x = x.reshape(b, c, t // period, period)
    fmap = []
    for (w, bias) in params["convs"]:
        x = jax.lax.conv_general_dilated(
            x, w, (stride, 1), ((2, 2), (0, 0)),
            dimension_numbers=("NCHW", "OIHW", "NCHW"))
        x = x + bias[None, :, None, None]
        x = jnp.where(x >= 0, x, 0.1 * x)
        fmap.append(x)
    w, bias = params["post"]
    x = jax.lax.conv_general_dilated(
        x, w, (1, 1), ((1, 1), (0, 0)),
        dimension_numbers=("NCHW", "OIHW", "NCHW"))
    x = x + bias[None, :, None, None]
    fmap.append(x)
    return x, fmap


# --------------------------- main --------------------------------------------

if __name__ == "__main__":
    key = jax.random.PRNGKey(0)
    k_x, k_p, k_x2 = jax.random.split(key, 3)
    params = init_params(k_p)

    # ---- config 1: small shapes; f32 (tight check) and default bf16 (loose) ----
    period = 4
    B, C, T = 2, 1, 94                       # T % period != 0 -> exercises reflect padding
    x = jax.random.normal(k_x, (B, C, T), jnp.float32)

    fwd32 = jax.jit(functools.partial(discriminator_p_forward, period=period,
                                      dtype=jnp.float32))
    out, fmap = fwd32(x, params)
    out = jax.block_until_ready(out)
    fmap = jax.block_until_ready(fmap)

    ref_out, ref_fmap = _ref_forward(x, params, period)
    np.testing.assert_allclose(np.asarray(out), np.asarray(ref_out), rtol=1e-4, atol=1e-5)
    for a, r in zip(fmap, ref_fmap):
        np.testing.assert_allclose(np.asarray(a), np.asarray(r), rtol=1e-4, atol=1e-5)

    # default bf16 storage / f32 accumulation (halved HBM traffic), loose check
    out_bf, fmap_bf = jax.jit(functools.partial(discriminator_p_forward,
                                                period=period))(x, params)
    out_bf = jax.block_until_ready(out_bf)
    jax.block_until_ready(fmap_bf)
    np.testing.assert_allclose(np.asarray(out_bf, dtype=np.float32),
                               np.asarray(ref_out), rtol=1e-1, atol=1e-1)

    # ---- config 2: longer signal with tiny tiles -> multi-tile halo/mask paths ----
    period2 = 2
    x2 = jax.random.normal(k_x2, (1, 1, 4000), jnp.float32)
    out2, fmap2 = jax.jit(functools.partial(
        discriminator_p_forward, period=period2, dtype=jnp.float32,
        max_rows_per_step=8))(x2, params)
    out2 = jax.block_until_ready(out2)
    fmap2 = jax.block_until_ready(fmap2)
    ref_out2, ref_fmap2 = _ref_forward(x2, params, period2)
    np.testing.assert_allclose(np.asarray(out2), np.asarray(ref_out2), rtol=1e-4, atol=1e-5)
    for a, r in zip(fmap2, ref_fmap2):
        np.testing.assert_allclose(np.asarray(a), np.asarray(r), rtol=1e-4, atol=1e-5)

    print("KERNEL_OK")
</pallas_src>

<mosaic_0001>
module attributes {stable_mosaic.version = 11 : i64} {
  func.func @_conv_k1_kernel(%arg0: i32, %arg1: i32, %arg2: memref<1x24x64xf32, #tpu.memory_space<vmem>>, %arg3: memref<1x8x64xf32, #tpu.memory_space<vmem>>, %arg4: memref<1x8x64xf32, #tpu.memory_space<vmem>>, %arg5: memref<320x128xf32, #tpu.memory_space<vmem>>, %arg6: memref<1x128xf32, #tpu.memory_space<vmem>>, %arg7: memref<1x8x128xf32, #tpu.memory_space<vmem>>) attributes {dimension_semantics = [#tpu.dimension_semantics<parallel>, #tpu.dimension_semantics<parallel>], iteration_bounds = array<i64: 8, 1>, scalar_prefetch = 0 : i64, scratch_operands = 0 : i64, tpu.core_type = #tpu.core_type<tc>, window_params = [{transform_indices = @transform_0, window_bounds = array<i64: 1, 24, 64>}, {transform_indices = @transform_1, window_bounds = array<i64: 1, 8, 64>}, {transform_indices = @transform_2, window_bounds = array<i64: 1, 8, 64>}, {pipeline_mode = #tpu.pipeline_mode<synchronous>, transform_indices = @transform_3, window_bounds = array<i64: 320, 128>}, {pipeline_mode = #tpu.pipeline_mode<synchronous>, transform_indices = @transform_4, window_bounds = array<i64: 1, 128>}, {transform_indices = @transform_5, window_bounds = array<i64: 1, 8, 128>}]} {
    %c24_i32 = arith.constant 24 : i32
    %0 = arith.muli %arg1, %c24_i32 : i32
    %1 = tpu.iota {dimensions = array<i32: 0>} : vector<7x1xi32>
    %c3_i32 = arith.constant 3 : i32
    %2 = vector.broadcast %c3_i32 : i32 to vector<7x1xi32>
    %3 = arith.muli %1, %2 : vector<7x1xi32>
    %c1_i32 = arith.constant 1 : i32
    %4 = arith.addi %0, %c1_i32 : i32
    %5 = vector.broadcast %4 : i32 to vector<7x1xi32>
    %6 = arith.addi %3, %5 : vector<7x1xi32>
    %c0 = arith.constant 0 : index
    %c1 = arith.constant 1 : index
    %c0_0 = arith.constant 0 : index
    %7 = tpu.strided_load %arg2[%c0, %c1, %c0_0] {strides = array<i32: 1, 3, 1>} : memref<1x24x64xf32, #tpu.memory_space<vmem>>, vector<1x7x64xf32>
    %8 = vector.shape_cast %7 : vector<1x7x64xf32> to vector<7x64xf32>
    %c0_i32 = arith.constant 0 : i32
    %9 = vector.broadcast %c0_i32 : i32 to vector<7x1xi32>
    %10 = arith.addi %6, %9 : vector<7x1xi32>
    %c1_i32_1 = arith.constant 1 : i32
    %11 = vector.broadcast %c1_i32_1 : i32 to vector<7x1xi32>
    %12 = arith.cmpi slt, %10, %11 : vector<7x1xi32>
    %cst = arith.constant 0.000000e+00 : f32
    %13 = vector.broadcast %cst : f32 to vector<7x64xf32>
    %14 = vector.shape_cast %12 : vector<7x1xi1> to vector<7x1xi1>
    %15 = vector.broadcast %14 : vector<7x1xi1> to vector<7x64xi1>
    %16 = arith.select %15, %8, %13 : vector<7x64xi1>, vector<7x64xf32>
    %c0_2 = arith.constant 0 : index
    %c2 = arith.constant 2 : index
    %c0_3 = arith.constant 0 : index
    %17 = tpu.strided_load %arg2[%c0_2, %c2, %c0_3] {strides = array<i32: 1, 3, 1>} : memref<1x24x64xf32, #tpu.memory_space<vmem>>, vector<1x7x64xf32>
    %18 = vector.shape_cast %17 : vector<1x7x64xf32> to vector<7x64xf32>
    %c1_i32_4 = arith.constant 1 : i32
    %19 = vector.broadcast %c1_i32_4 : i32 to vector<7x1xi32>
    %20 = arith.addi %6, %19 : vector<7x1xi32>
    %c1_i32_5 = arith.constant 1 : i32
    %21 = vector.broadcast %c1_i32_5 : i32 to vector<7x1xi32>
    %22 = arith.cmpi slt, %20, %21 : vector<7x1xi32>
    %cst_6 = arith.constant 0.000000e+00 : f32
    %23 = vector.broadcast %cst_6 : f32 to vector<7x64xf32>
    %24 = vector.shape_cast %22 : vector<7x1xi1> to vector<7x1xi1>
    %25 = vector.broadcast %24 : vector<7x1xi1> to vector<7x64xi1>
    %26 = arith.select %25, %18, %23 : vector<7x64xi1>, vector<7x64xf32>
    %c0_7 = arith.constant 0 : index
    %c3 = arith.constant 3 : index
    %c0_8 = arith.constant 0 : index
    %27 = tpu.strided_load %arg2[%c0_7, %c3, %c0_8] {strides = array<i32: 1, 3, 1>} : memref<1x24x64xf32, #tpu.memory_space<vmem>>, vector<1x7x64xf32>
    %28 = vector.shape_cast %27 : vector<1x7x64xf32> to vector<7x64xf32>
    %c2_i32 = arith.constant 2 : i32
    %29 = vector.broadcast %c2_i32 : i32 to vector<7x1xi32>
    %30 = arith.addi %6, %29 : vector<7x1xi32>
    %c1_i32_9 = arith.constant 1 : i32
    %31 = vector.broadcast %c1_i32_9 : i32 to vector<7x1xi32>
    %32 = arith.cmpi slt, %30, %31 : vector<7x1xi32>
    %cst_10 = arith.constant 0.000000e+00 : f32
    %33 = vector.broadcast %cst_10 : f32 to vector<7x64xf32>
    %34 = vector.shape_cast %32 : vector<7x1xi1> to vector<7x1xi1>
    %35 = vector.broadcast %34 : vector<7x1xi1> to vector<7x64xi1>
    %36 = arith.select %35, %28, %33 : vector<7x64xi1>, vector<7x64xf32>
    %c0_11 = arith.constant 0 : index
    %c4 = arith.constant 4 : index
    %c0_12 = arith.constant 0 : index
    %37 = tpu.strided_load %arg2[%c0_11, %c4, %c0_12] {strides = array<i32: 1, 3, 1>} : memref<1x24x64xf32, #tpu.memory_space<vmem>>, vector<1x7x64xf32>
    %38 = vector.shape_cast %37 : vector<1x7x64xf32> to vector<7x64xf32>
    %c3_i32_13 = arith.constant 3 : i32
    %39 = vector.broadcast %c3_i32_13 : i32 to vector<7x1xi32>
    %40 = arith.addi %6, %39 : vector<7x1xi32>
    %c1_i32_14 = arith.constant 1 : i32
    %41 = vector.broadcast %c1_i32_14 : i32 to vector<7x1xi32>
    %42 = arith.cmpi slt, %40, %41 : vector<7x1xi32>
    %cst_15 = arith.constant 0.000000e+00 : f32
    %43 = vector.broadcast %cst_15 : f32 to vector<7x64xf32>
    %44 = vector.shape_cast %42 : vector<7x1xi1> to vector<7x1xi1>
    %45 = vector.broadcast %44 : vector<7x1xi1> to vector<7x64xi1>
    %46 = arith.select %45, %38, %43 : vector<7x64xi1>, vector<7x64xf32>
    %c0_16 = arith.constant 0 : index
    %c5 = arith.constant 5 : index
    %c0_17 = arith.constant 0 : index
    %47 = tpu.strided_load %arg2[%c0_16, %c5, %c0_17] {strides = array<i32: 1, 3, 1>} : memref<1x24x64xf32, #tpu.memory_space<vmem>>, vector<1x7x64xf32>
    %48 = vector.shape_cast %47 : vector<1x7x64xf32> to vector<7x64xf32>
    %c4_i32 = arith.constant 4 : i32
    %49 = vector.broadcast %c4_i32 : i32 to vector<7x1xi32>
    %50 = arith.addi %6, %49 : vector<7x1xi32>
    %c1_i32_18 = arith.constant 1 : i32
    %51 = vector.broadcast %c1_i32_18 : i32 to vector<7x1xi32>
    %52 = arith.cmpi slt, %50, %51 : vector<7x1xi32>
    %cst_19 = arith.constant 0.000000e+00 : f32
    %53 = vector.broadcast %cst_19 : f32 to vector<7x64xf32>
    %54 = vector.shape_cast %52 : vector<7x1xi1> to vector<7x1xi1>
    %55 = vector.broadcast %54 : vector<7x1xi1> to vector<7x64xi1>
    %56 = arith.select %55, %48, %53 : vector<7x64xi1>, vector<7x64xf32>
    %57 = tpu.concatenate %16, %26, %36, %46, %56 in 1 : vector<7x64xf32>, vector<7x64xf32>, vector<7x64xf32>, vector<7x64xf32>, vector<7x64xf32> -> vector<7x320xf32>
    %c0_20 = arith.constant 0 : index
    %c0_21 = arith.constant 0 : index
    %58 = vector.load %arg5[%c0_20, %c0_21] : memref<320x128xf32, #tpu.memory_space<vmem>>, vector<320x128xf32>
    %cst_22 = arith.constant dense<0.000000e+00> : vector<7x128xf32>
    %59 = tpu.matmul %57, %58, %cst_22 {dimension_numbers = #tpu.dot_dimension_numbers<[1], [0], [0], [1], [0, 0, 1, 1], [], []>} : vector<7x320xf32>, vector<320x128xf32>, vector<7x128xf32> -> vector<7x128xf32>
    %c0_23 = arith.constant 0 : index
    %c6 = arith.constant 6 : index
    %c0_24 = arith.constant 0 : index
    %60 = vector.load %arg3[%c0_23, %c6, %c0_24] : memref<1x8x64xf32, #tpu.memory_space<vmem>>, vector<1x1x64xf32>
    %61 = vector.shape_cast %60 : vector<1x1x64xf32> to vector<1x64xf32>
    %c0_i32_25 = arith.constant 0 : i32
    %62 = arith.cmpi sgt, %arg1, %c0_i32_25 : i32
    %c-2_i32 = arith.constant -2 : i32
    %63 = arith.addi %0, %c-2_i32 : i32
    %c1_i32_26 = arith.constant 1 : i32
    %64 = arith.cmpi slt, %63, %c1_i32_26 : i32
    %65 = arith.andi %62, %64 : i1
    %cst_27 = arith.constant 0.000000e+00 : f32
    %66 = vector.broadcast %cst_27 : f32 to vector<1x64xf32>
    %67 = arith.select %65, %61, %66 : vector<1x64xf32>
    %c0_28 = arith.constant 0 : index
    %c7 = arith.constant 7 : index
    %c0_29 = arith.constant 0 : index
    %68 = vector.load %arg3[%c0_28, %c7, %c0_29] : memref<1x8x64xf32, #tpu.memory_space<vmem>>, vector<1x1x64xf32>
    %69 = vector.shape_cast %68 : vector<1x1x64xf32> to vector<1x64xf32>
    %c0_i32_30 = arith.constant 0 : i32
    %70 = arith.cmpi sgt, %arg1, %c0_i32_30 : i32
    %c-1_i32 = arith.constant -1 : i32
    %71 = arith.addi %0, %c-1_i32 : i32
    %c1_i32_31 = arith.constant 1 : i32
    %72 = arith.cmpi slt, %71, %c1_i32_31 : i32
    %73 = arith.andi %70, %72 : i1
    %cst_32 = arith.constant 0.000000e+00 : f32
    %74 = vector.broadcast %cst_32 : f32 to vector<1x64xf32>
    %75 = arith.select %73, %69, %74 : vector<1x64xf32>
    %c0_33 = arith.constant 0 : index
    %c0_34 = arith.constant 0 : index
    %c0_35 = arith.constant 0 : index
    %76 = vector.load %arg2[%c0_33, %c0_34, %c0_35] : memref<1x24x64xf32, #tpu.memory_space<vmem>>, vector<1x1x64xf32>
    %77 = vector.shape_cast %76 : vector<1x1x64xf32> to vector<1x64xf32>
    %c0_i32_36 = arith.constant 0 : i32
    %78 = arith.addi %0, %c0_i32_36 : i32
    %c1_i32_37 = arith.constant 1 : i32
    %79 = arith.cmpi slt, %78, %c1_i32_37 : i32
    %cst_38 = arith.constant 0.000000e+00 : f32
    %80 = vector.broadcast %cst_38 : f32 to vector<1x64xf32>
    %81 = arith.select %79, %77, %80 : vector<1x64xf32>
    %c0_39 = arith.constant 0 : index
    %c1_40 = arith.constant 1 : index
    %c0_41 = arith.constant 0 : index
    %82 = vector.load %arg2[%c0_39, %c1_40, %c0_41] : memref<1x24x64xf32, #tpu.memory_space<vmem>>, vector<1x1x64xf32>
    %83 = vector.shape_cast %82 : vector<1x1x64xf32> to vector<1x64xf32>
    %c1_i32_42 = arith.constant 1 : i32
    %84 = arith.addi %0, %c1_i32_42 : i32
    %c1_i32_43 = arith.constant 1 : i32
    %85 = arith.cmpi slt, %84, %c1_i32_43 : i32
    %cst_44 = arith.constant 0.000000e+00 : f32
    %86 = vector.broadcast %cst_44 : f32 to vector<1x64xf32>
    %87 = arith.select %85, %83, %86 : vector<1x64xf32>
    %c0_45 = arith.constant 0 : index
    %c2_46 = arith.constant 2 : index
    %c0_47 = arith.constant 0 : index
    %88 = vector.load %arg2[%c0_45, %c2_46, %c0_47] : memref<1x24x64xf32, #tpu.memory_space<vmem>>, vector<1x1x64xf32>
    %89 = vector.shape_cast %88 : vector<1x1x64xf32> to vector<1x64xf32>
    %c2_i32_48 = arith.constant 2 : i32
    %90 = arith.addi %0, %c2_i32_48 : i32
    %c1_i32_49 = arith.constant 1 : i32
    %91 = arith.cmpi slt, %90, %c1_i32_49 : i32
    %cst_50 = arith.constant 0.000000e+00 : f32
    %92 = vector.broadcast %cst_50 : f32 to vector<1x64xf32>
    %93 = arith.select %91, %89, %92 : vector<1x64xf32>
    %94 = tpu.concatenate %67, %75, %81, %87, %93 in 1 : vector<1x64xf32>, vector<1x64xf32>, vector<1x64xf32>, vector<1x64xf32>, vector<1x64xf32> -> vector<1x320xf32>
    %c0_51 = arith.constant 0 : index
    %c0_52 = arith.constant 0 : index
    %95 = vector.load %arg5[%c0_51, %c0_52] : memref<320x128xf32, #tpu.memory_space<vmem>>, vector<320x128xf32>
    %cst_53 = arith.constant dense<0.000000e+00> : vector<1x128xf32>
    %96 = tpu.matmul %94, %95, %cst_53 {dimension_numbers = #tpu.dot_dimension_numbers<[1], [0], [0], [1], [0, 0, 1, 1], [], []>} : vector<1x320xf32>, vector<320x128xf32>, vector<1x128xf32> -> vector<1x128xf32>
    %97 = tpu.concatenate %96, %59 in 0 : vector<1x128xf32>, vector<7x128xf32> -> vector<8x128xf32>
    %c0_54 = arith.constant 0 : index
    %c0_55 = arith.constant 0 : index
    %98 = vector.load %arg6[%c0_54, %c0_55] : memref<1x128xf32, #tpu.memory_space<vmem>>, vector<1x128xf32>
    %99 = vector.broadcast %98 : vector<1x128xf32> to vector<8x128xf32>
    %100 = arith.addf %97, %99 : vector<8x128xf32>
    %cst_56 = arith.constant 0.000000e+00 : f32
    %101 = vector.broadcast %cst_56 : f32 to vector<8x128xf32>
    %102 = arith.cmpf oge, %100, %101 : vector<8x128xf32>
    %cst_57 = arith.constant 1.000000e-01 : f32
    %103 = vector.broadcast %cst_57 : f32 to vector<8x128xf32>
    %104 = arith.mulf %103, %100 : vector<8x128xf32>
    %105 = arith.select %102, %100, %104 : vector<8x128xi1>, vector<8x128xf32>
    %c0_58 = arith.constant 0 : index
    %c0_59 = arith.constant 0 : index
    %c0_60 = arith.constant 0 : index
    %106 = vector.load %arg7[%c0_58, %c0_59, %c0_60] : memref<1x8x128xf32, #tpu.memory_space<vmem>>, vector<1x8x128xf32>
    %107 = vector.shape_cast %106 : vector<1x8x128xf32> to vector<8x128xf32>
    %108 = vector.shape_cast %105 : vector<8x128xf32> to vector<1x8x128xf32>
    tpu.vector_store %arg7[%c0_58, %c0_59, %c0_60], %108 {strides = array<i32>} : memref<1x8x128xf32, #tpu.memory_space<vmem>>, vector<1x8x128xf32>,
    return
  }
  func.func @transform_0(%arg0: i32, %arg1: i32) -> (i32, i32, i32) {
    %c0_i32 = arith.constant 0 : i32
    %c0_i32_0 = arith.constant 0 : i32
    return %arg0, %arg1, %c0_i32 : i32, i32, i32
  }
  func.func @transform_1(%arg0: i32, %arg1: i32) -> (i32, i32, i32) {
    %c3_i32 = arith.constant 3 : i32
    %0 = arith.muli %arg1, %c3_i32 : i32
    %c1_i32 = arith.constant 1 : i32
    %1 = arith.subi %0, %c1_i32 : i32
    %c0_i32 = arith.constant 0 : i32
    %2 = arith.maxsi %1, %c0_i32 : i32
    %c0_i32_0 = arith.constant 0 : i32
    %c0_i32_1 = arith.constant 0 : i32
    return %arg0, %2, %c0_i32_0 : i32, i32, i32
  }
  func.func @transform_2(%arg0: i32, %arg1: i32) -> (i32, i32, i32) {
    %c1_i32 = arith.constant 1 : i32
    %0 = arith.addi %arg1, %c1_i32 : i32
    %c3_i32 = arith.constant 3 : i32
    %1 = arith.muli %0, %c3_i32 : i32
    %c0_i32 = arith.constant 0 : i32
    %c0_i32_0 = arith.constant 0 : i32
    return %arg0, %1, %c0_i32 : i32, i32, i32
  }
  func.func @transform_3(%arg0: i32, %arg1: i32) -> (i32, i32) {
    %c0_i32 = arith.constant 0 : i32
    %c0_i32_0 = arith.constant 0 : i32
    %c0_i32_1 = arith.constant 0 : i32
    return %c0_i32, %c0_i32_0 : i32, i32
  }
  func.func @transform_4(%arg0: i32, %arg1: i32) -> (i32, i32) {
    %c0_i32 = arith.constant 0 : i32
    %c0_i32_0 = arith.constant 0 : i32
    %c0_i32_1 = arith.constant 0 : i32
    return %c0_i32, %c0_i32_0 : i32, i32
  }
  func.func @transform_5(%arg0: i32, %arg1: i32) -> (i32, i32, i32) {
    %c0_i32 = arith.constant 0 : i32
    %c0_i32_0 = arith.constant 0 : i32
    return %arg0, %arg1, %c0_i32 : i32, i32, i32
  }
}

module attributes {stable_mosaic.version = 11 : i64} {
  func.func @_conv_k1_kernel(%arg0: i32, %arg1: i32, %arg2: memref<1x24x16xf32, #tpu.memory_space<vmem>>, %arg3: memref<1x8x16xf32, #tpu.memory_space<vmem>>, %arg4: memref<1x8x16xf32, #tpu.memory_space<vmem>>, %arg5: memref<80x32xf32, #tpu.memory_space<vmem>>, %arg6: memref<1x32xf32, #tpu.memory_space<vmem>>, %arg7: memref<1x8x32xf32, #tpu.memory_space<vmem>>) attributes {dimension_semantics = [#tpu.dimension_semantics<parallel>, #tpu.dimension_semantics<parallel>], iteration_bounds = array<i64: 8, 1>, scalar_prefetch = 0 : i64, scratch_operands = 0 : i64, tpu.core_type = #tpu.core_type<tc>, window_params = [{transform_indices = @transform_0, window_bounds = array<i64: 1, 24, 16>}, {transform_indices = @transform_1, window_bounds = array<i64: 1, 8, 16>}, {transform_indices = @transform_2, window_bounds = array<i64: 1, 8, 16>}, {pipeline_mode = #tpu.pipeline_mode<synchronous>, transform_indices = @transform_3, window_bounds = array<i64: 80, 32>}, {pipeline_mode = #tpu.pipeline_mode<synchronous>, transform_indices = @transform_4, window_bounds = array<i64: 1, 32>}, {transform_indices = @transform_5, window_bounds = array<i64: 1, 8, 32>}]} {
    %c24_i32 = arith.constant 24 : i32
    %0 = arith.muli %arg1, %c24_i32 : i32
    %1 = tpu.iota {dimensions = array<i32: 0>} : vector<7x1xi32>
    %c3_i32 = arith.constant 3 : i32
    %2 = vector.broadcast %c3_i32 : i32 to vector<7x1xi32>
    %3 = arith.muli %1, %2 : vector<7x1xi32>
    %c1_i32 = arith.constant 1 : i32
    %4 = arith.addi %0, %c1_i32 : i32
    %5 = vector.broadcast %4 : i32 to vector<7x1xi32>
    %6 = arith.addi %3, %5 : vector<7x1xi32>
    %c0 = arith.constant 0 : index
    %c1 = arith.constant 1 : index
    %c0_0 = arith.constant 0 : index
    %7 = tpu.strided_load %arg2[%c0, %c1, %c0_0] {strides = array<i32: 1, 3, 1>} : memref<1x24x16xf32, #tpu.memory_space<vmem>>, vector<1x7x16xf32>
    %8 = vector.shape_cast %7 : vector<1x7x16xf32> to vector<7x16xf32>
    %c0_i32 = arith.constant 0 : i32
    %9 = vector.broadcast %c0_i32 : i32 to vector<7x1xi32>
    %10 = arith.addi %6, %9 : vector<7x1xi32>
    %c8_i32 = arith.constant 8 : i32
    %11 = vector.broadcast %c8_i32 : i32 to vector<7x1xi32>
    %12 = arith.cmpi slt, %10, %11 : vector<7x1xi32>
    %cst = arith.constant 0.000000e+00 : f32
    %13 = vector.broadcast %cst : f32 to vector<7x16xf32>
    %14 = vector.shape_cast %12 : vector<7x1xi1> to vector<7x1xi1>
    %15 = vector.broadcast %14 : vector<7x1xi1> to vector<7x16xi1>
    %16 = arith.select %15, %8, %13 : vector<7x16xi1>, vector<7x16xf32>
    %c0_1 = arith.constant 0 : index
    %c2 = arith.constant 2 : index
    %c0_2 = arith.constant 0 : index
    %17 = tpu.strided_load %arg2[%c0_1, %c2, %c0_2] {strides = array<i32: 1, 3, 1>} : memref<1x24x16xf32, #tpu.memory_space<vmem>>, vector<1x7x16xf32>
    %18 = vector.shape_cast %17 : vector<1x7x16xf32> to vector<7x16xf32>
    %c1_i32_3 = arith.constant 1 : i32
    %19 = vector.broadcast %c1_i32_3 : i32 to vector<7x1xi32>
    %20 = arith.addi %6, %19 : vector<7x1xi32>
    %c8_i32_4 = arith.constant 8 : i32
    %21 = vector.broadcast %c8_i32_4 : i32 to vector<7x1xi32>
    %22 = arith.cmpi slt, %20, %21 : vector<7x1xi32>
    %cst_5 = arith.constant 0.000000e+00 : f32
    %23 = vector.broadcast %cst_5 : f32 to vector<7x16xf32>
    %24 = vector.shape_cast %22 : vector<7x1xi1> to vector<7x1xi1>
    %25 = vector.broadcast %24 : vector<7x1xi1> to vector<7x16xi1>
    %26 = arith.select %25, %18, %23 : vector<7x16xi1>, vector<7x16xf32>
    %c0_6 = arith.constant 0 : index
    %c3 = arith.constant 3 : index
    %c0_7 = arith.constant 0 : index
    %27 = tpu.strided_load %arg2[%c0_6, %c3, %c0_7] {strides = array<i32: 1, 3, 1>} : memref<1x24x16xf32, #tpu.memory_space<vmem>>, vector<1x7x16xf32>
    %28 = vector.shape_cast %27 : vector<1x7x16xf32> to vector<7x16xf32>
    %c2_i32 = arith.constant 2 : i32
    %29 = vector.broadcast %c2_i32 : i32 to vector<7x1xi32>
    %30 = arith.addi %6, %29 : vector<7x1xi32>
    %c8_i32_8 = arith.constant 8 : i32
    %31 = vector.broadcast %c8_i32_8 : i32 to vector<7x1xi32>
    %32 = arith.cmpi slt, %30, %31 : vector<7x1xi32>
    %cst_9 = arith.constant 0.000000e+00 : f32
    %33 = vector.broadcast %cst_9 : f32 to vector<7x16xf32>
    %34 = vector.shape_cast %32 : vector<7x1xi1> to vector<7x1xi1>
    %35 = vector.broadcast %34 : vector<7x1xi1> to vector<7x16xi1>
    %36 = arith.select %35, %28, %33 : vector<7x16xi1>, vector<7x16xf32>
    %c0_10 = arith.constant 0 : index
    %c4 = arith.constant 4 : index
    %c0_11 = arith.constant 0 : index
    %37 = tpu.strided_load %arg2[%c0_10, %c4, %c0_11] {strides = array<i32: 1, 3, 1>} : memref<1x24x16xf32, #tpu.memory_space<vmem>>, vector<1x7x16xf32>
    %38 = vector.shape_cast %37 : vector<1x7x16xf32> to vector<7x16xf32>
    %c3_i32_12 = arith.constant 3 : i32
    %39 = vector.broadcast %c3_i32_12 : i32 to vector<7x1xi32>
    %40 = arith.addi %6, %39 : vector<7x1xi32>
    %c8_i32_13 = arith.constant 8 : i32
    %41 = vector.broadcast %c8_i32_13 : i32 to vector<7x1xi32>
    %42 = arith.cmpi slt, %40, %41 : vector<7x1xi32>
    %cst_14 = arith.constant 0.000000e+00 : f32
    %43 = vector.broadcast %cst_14 : f32 to vector<7x16xf32>
    %44 = vector.shape_cast %42 : vector<7x1xi1> to vector<7x1xi1>
    %45 = vector.broadcast %44 : vector<7x1xi1> to vector<7x16xi1>
    %46 = arith.select %45, %38, %43 : vector<7x16xi1>, vector<7x16xf32>
    %c0_15 = arith.constant 0 : index
    %c5 = arith.constant 5 : index
    %c0_16 = arith.constant 0 : index
    %47 = tpu.strided_load %arg2[%c0_15, %c5, %c0_16] {strides = array<i32: 1, 3, 1>} : memref<1x24x16xf32, #tpu.memory_space<vmem>>, vector<1x7x16xf32>
    %48 = vector.shape_cast %47 : vector<1x7x16xf32> to vector<7x16xf32>
    %c4_i32 = arith.constant 4 : i32
    %49 = vector.broadcast %c4_i32 : i32 to vector<7x1xi32>
    %50 = arith.addi %6, %49 : vector<7x1xi32>
    %c8_i32_17 = arith.constant 8 : i32
    %51 = vector.broadcast %c8_i32_17 : i32 to vector<7x1xi32>
    %52 = arith.cmpi slt, %50, %51 : vector<7x1xi32>
    %cst_18 = arith.constant 0.000000e+00 : f32
    %53 = vector.broadcast %cst_18 : f32 to vector<7x16xf32>
    %54 = vector.shape_cast %52 : vector<7x1xi1> to vector<7x1xi1>
    %55 = vector.broadcast %54 : vector<7x1xi1> to vector<7x16xi1>
    %56 = arith.select %55, %48, %53 : vector<7x16xi1>, vector<7x16xf32>
    %57 = tpu.concatenate %16, %26, %36, %46, %56 in 1 : vector<7x16xf32>, vector<7x16xf32>, vector<7x16xf32>, vector<7x16xf32>, vector<7x16xf32> -> vector<7x80xf32>
    %c0_19 = arith.constant 0 : index
    %c0_20 = arith.constant 0 : index
    %58 = vector.load %arg5[%c0_19, %c0_20] : memref<80x32xf32, #tpu.memory_space<vmem>>, vector<80x32xf32>
    %cst_21 = arith.constant dense<0.000000e+00> : vector<7x32xf32>
    %59 = tpu.matmul %57, %58, %cst_21 {dimension_numbers = #tpu.dot_dimension_numbers<[1], [0], [0], [1], [0, 0, 1, 1], [], []>} : vector<7x80xf32>, vector<80x32xf32>, vector<7x32xf32> -> vector<7x32xf32>
    %c0_22 = arith.constant 0 : index
    %c6 = arith.constant 6 : index
    %c0_23 = arith.constant 0 : index
    %60 = vector.load %arg3[%c0_22, %c6, %c0_23] : memref<1x8x16xf32, #tpu.memory_space<vmem>>, vector<1x1x16xf32>
    %61 = vector.shape_cast %60 : vector<1x1x16xf32> to vector<1x16xf32>
    %c0_i32_24 = arith.constant 0 : i32
    %62 = arith.cmpi sgt, %arg1, %c0_i32_24 : i32
    %c-2_i32 = arith.constant -2 : i32
    %63 = arith.addi %0, %c-2_i32 : i32
    %c8_i32_25 = arith.constant 8 : i32
    %64 = arith.cmpi slt, %63, %c8_i32_25 : i32
    %65 = arith.andi %62, %64 : i1
    %cst_26 = arith.constant 0.000000e+00 : f32
    %66 = vector.broadcast %cst_26 : f32 to vector<1x16xf32>
    %67 = arith.select %65, %61, %66 : vector<1x16xf32>
    %c0_27 = arith.constant 0 : index
    %c7 = arith.constant 7 : index
    %c0_28 = arith.constant 0 : index
    %68 = vector.load %arg3[%c0_27, %c7, %c0_28] : memref<1x8x16xf32, #tpu.memory_space<vmem>>, vector<1x1x16xf32>
    %69 = vector.shape_cast %68 : vector<1x1x16xf32> to vector<1x16xf32>
    %c0_i32_29 = arith.constant 0 : i32
    %70 = arith.cmpi sgt, %arg1, %c0_i32_29 : i32
    %c-1_i32 = arith.constant -1 : i32
    %71 = arith.addi %0, %c-1_i32 : i32
    %c8_i32_30 = arith.constant 8 : i32
    %72 = arith.cmpi slt, %71, %c8_i32_30 : i32
    %73 = arith.andi %70, %72 : i1
    %cst_31 = arith.constant 0.000000e+00 : f32
    %74 = vector.broadcast %cst_31 : f32 to vector<1x16xf32>
    %75 = arith.select %73, %69, %74 : vector<1x16xf32>
    %c0_32 = arith.constant 0 : index
    %c0_33 = arith.constant 0 : index
    %c0_34 = arith.constant 0 : index
    %76 = vector.load %arg2[%c0_32, %c0_33, %c0_34] : memref<1x24x16xf32, #tpu.memory_space<vmem>>, vector<1x1x16xf32>
    %77 = vector.shape_cast %76 : vector<1x1x16xf32> to vector<1x16xf32>
    %c0_i32_35 = arith.constant 0 : i32
    %78 = arith.addi %0, %c0_i32_35 : i32
    %c8_i32_36 = arith.constant 8 : i32
    %79 = arith.cmpi slt, %78, %c8_i32_36 : i32
    %cst_37 = arith.constant 0.000000e+00 : f32
    %80 = vector.broadcast %cst_37 : f32 to vector<1x16xf32>
    %81 = arith.select %79, %77, %80 : vector<1x16xf32>
    %c0_38 = arith.constant 0 : index
    %c1_39 = arith.constant 1 : index
    %c0_40 = arith.constant 0 : index
    %82 = vector.load %arg2[%c0_38, %c1_39, %c0_40] : memref<1x24x16xf32, #tpu.memory_space<vmem>>, vector<1x1x16xf32>
    %83 = vector.shape_cast %82 : vector<1x1x16xf32> to vector<1x16xf32>
    %c1_i32_41 = arith.constant 1 : i32
    %84 = arith.addi %0, %c1_i32_41 : i32
    %c8_i32_42 = arith.constant 8 : i32
    %85 = arith.cmpi slt, %84, %c8_i32_42 : i32
    %cst_43 = arith.constant 0.000000e+00 : f32
    %86 = vector.broadcast %cst_43 : f32 to vector<1x16xf32>
    %87 = arith.select %85, %83, %86 : vector<1x16xf32>
    %c0_44 = arith.constant 0 : index
    %c2_45 = arith.constant 2 : index
    %c0_46 = arith.constant 0 : index
    %88 = vector.load %arg2[%c0_44, %c2_45, %c0_46] : memref<1x24x16xf32, #tpu.memory_space<vmem>>, vector<1x1x16xf32>
    %89 = vector.shape_cast %88 : vector<1x1x16xf32> to vector<1x16xf32>
    %c2_i32_47 = arith.constant 2 : i32
    %90 = arith.addi %0, %c2_i32_47 : i32
    %c8_i32_48 = arith.constant 8 : i32
    %91 = arith.cmpi slt, %90, %c8_i32_48 : i32
    %cst_49 = arith.constant 0.000000e+00 : f32
    %92 = vector.broadcast %cst_49 : f32 to vector<1x16xf32>
    %93 = arith.select %91, %89, %92 : vector<1x16xf32>
    %94 = tpu.concatenate %67, %75, %81, %87, %93 in 1 : vector<1x16xf32>, vector<1x16xf32>, vector<1x16xf32>, vector<1x16xf32>, vector<1x16xf32> -> vector<1x80xf32>
    %c0_50 = arith.constant 0 : index
    %c0_51 = arith.constant 0 : index
    %95 = vector.load %arg5[%c0_50, %c0_51] : memref<80x32xf32, #tpu.memory_space<vmem>>, vector<80x32xf32>
    %cst_52 = arith.constant dense<0.000000e+00> : vector<1x32xf32>
    %96 = tpu.matmul %94, %95, %cst_52 {dimension_numbers = #tpu.dot_dimension_numbers<[1], [0], [0], [1], [0, 0, 1, 1], [], []>} : vector<1x80xf32>, vector<80x32xf32>, vector<1x32xf32> -> vector<1x32xf32>
    %97 = tpu.concatenate %96, %59 in 0 : vector<1x32xf32>, vector<7x32xf32> -> vector<8x32xf32>
    %c0_53 = arith.constant 0 : index
    %c0_54 = arith.constant 0 : index
    %98 = vector.load %arg6[%c0_53, %c0_54] : memref<1x32xf32, #tpu.memory_space<vmem>>, vector<1x32xf32>
    %99 = vector.broadcast %98 : vector<1x32xf32> to vector<8x32xf32>
    %100 = arith.addf %97, %99 : vector<8x32xf32>
    %cst_55 = arith.constant 0.000000e+00 : f32
    %101 = vector.broadcast %cst_55 : f32 to vector<8x32xf32>
    %102 = arith.cmpf oge, %100, %101 : vector<8x32xf32>
    %cst_56 = arith.constant 1.000000e-01 : f32
    %103 = vector.broadcast %cst_56 : f32 to vector<8x32xf32>
    %104 = arith.mulf %103, %100 : vector<8x32xf32>
    %105 = arith.select %102, %100, %104 : vector<8x32xi1>, vector<8x32xf32>
    %c0_57 = arith.constant 0 : index
    %c0_58 = arith.constant 0 : index
    %c0_59 = arith.constant 0 : index
    %106 = vector.load %arg7[%c0_57, %c0_58, %c0_59] : memref<1x8x32xf32, #tpu.memory_space<vmem>>, vector<1x8x32xf32>
    %107 = vector.shape_cast %106 : vector<1x8x32xf32> to vector<8x32xf32>
    %108 = vector.shape_cast %105 : vector<8x32xf32> to vector<1x8x32xf32>
    tpu.vector_store %arg7[%c0_57, %c0_58, %c0_59], %108 {strides = array<i32>} : memref<1x8x32xf32, #tpu.memory_space<vmem>>, vector<1x8x32xf32>,
    return
  }
  func.func @transform_0(%arg0: i32, %arg1: i32) -> (i32, i32, i32) {
    %c0_i32 = arith.constant 0 : i32
    %c0_i32_0 = arith.constant 0 : i32
    return %arg0, %arg1, %c0_i32 : i32, i32, i32
  }
  func.func @transform_1(%arg0: i32, %arg1: i32) -> (i32, i32, i32) {
    %c3_i32 = arith.constant 3 : i32
    %0 = arith.muli %arg1, %c3_i32 : i32
    %c1_i32 = arith.constant 1 : i32
    %1 = arith.subi %0, %c1_i32 : i32
    %c0_i32 = arith.constant 0 : i32
    %2 = arith.maxsi %1, %c0_i32 : i32
    %c0_i32_0 = arith.constant 0 : i32
    %c0_i32_1 = arith.constant 0 : i32
    return %arg0, %2, %c0_i32_0 : i32, i32, i32
  }
  func.func @transform_2(%arg0: i32, %arg1: i32) -> (i32, i32, i32) {
    %c1_i32 = arith.constant 1 : i32
    %0 = arith.addi %arg1, %c1_i32 : i32
    %c3_i32 = arith.constant 3 : i32
    %1 = arith.muli %0, %c3_i32 : i32
    %c0_i32 = arith.constant 0 : i32
    %c0_i32_0 = arith.constant 0 : i32
    return %arg0, %1, %c0_i32 : i32, i32, i32
  }
  func.func @transform_3(%arg0: i32, %arg1: i32) -> (i32, i32) {
    %c0_i32 = arith.constant 0 : i32
    %c0_i32_0 = arith.constant 0 : i32
    %c0_i32_1 = arith.constant 0 : i32
    return %c0_i32, %c0_i32_0 : i32, i32
  }
  func.func @transform_4(%arg0: i32, %arg1: i32) -> (i32, i32) {
    %c0_i32 = arith.constant 0 : i32
    %c0_i32_0 = arith.constant 0 : i32
    %c0_i32_1 = arith.constant 0 : i32
    return %c0_i32, %c0_i32_0 : i32, i32
  }
  func.func @transform_5(%arg0: i32, %arg1: i32) -> (i32, i32, i32) {
    %c0_i32 = arith.constant 0 : i32
    %c0_i32_0 = arith.constant 0 : i32
    return %arg0, %arg1, %c0_i32 : i32, i32, i32
  }
}

module attributes {stable_mosaic.version = 11 : i64} {
  func.func @_conv_k1_kernel(%arg0: i32, %arg1: i32, %arg2: memref<1x24x1xf32, #tpu.memory_space<vmem>>, %arg3: memref<1x8x1xf32, #tpu.memory_space<vmem>>, %arg4: memref<1x8x1xf32, #tpu.memory_space<vmem>>, %arg5: memref<5x16xf32, #tpu.memory_space<vmem>>, %arg6: memref<1x16xf32, #tpu.memory_space<vmem>>, %arg7: memref<1x8x16xf32, #tpu.memory_space<vmem>>) attributes {dimension_semantics = [#tpu.dimension_semantics<parallel>, #tpu.dimension_semantics<parallel>], iteration_bounds = array<i64: 8, 1>, scalar_prefetch = 0 : i64, scratch_operands = 0 : i64, tpu.core_type = #tpu.core_type<tc>, window_params = [{transform_indices = @transform_0, window_bounds = array<i64: 1, 24, 1>}, {transform_indices = @transform_1, window_bounds = array<i64: 1, 8, 1>}, {transform_indices = @transform_2, window_bounds = array<i64: 1, 8, 1>}, {pipeline_mode = #tpu.pipeline_mode<synchronous>, transform_indices = @transform_3, window_bounds = array<i64: 5, 16>}, {pipeline_mode = #tpu.pipeline_mode<synchronous>, transform_indices = @transform_4, window_bounds = array<i64: 1, 16>}, {transform_indices = @transform_5, window_bounds = array<i64: 1, 8, 16>}]} {
    %c24_i32 = arith.constant 24 : i32
    %0 = arith.muli %arg1, %c24_i32 : i32
    %1 = tpu.iota {dimensions = array<i32: 0>} : vector<7x1xi32>
    %c3_i32 = arith.constant 3 : i32
    %2 = vector.broadcast %c3_i32 : i32 to vector<7x1xi32>
    %3 = arith.muli %1, %2 : vector<7x1xi32>
    %c1_i32 = arith.constant 1 : i32
    %4 = arith.addi %0, %c1_i32 : i32
    %5 = vector.broadcast %4 : i32 to vector<7x1xi32>
    %6 = arith.addi %3, %5 : vector<7x1xi32>
    %c0 = arith.constant 0 : index
    %c1 = arith.constant 1 : index
    %c0_0 = arith.constant 0 : index
    %7 = tpu.strided_load %arg2[%c0, %c1, %c0_0] {strides = array<i32: 1, 3, 1>} : memref<1x24x1xf32, #tpu.memory_space<vmem>>, vector<1x7x1xf32>
    %8 = vector.shape_cast %7 : vector<1x7x1xf32> to vector<7x1xf32>
    %c0_i32 = arith.constant 0 : i32
    %9 = vector.broadcast %c0_i32 : i32 to vector<7x1xi32>
    %10 = arith.addi %6, %9 : vector<7x1xi32>
    %c24_i32_1 = arith.constant 24 : i32
    %11 = vector.broadcast %c24_i32_1 : i32 to vector<7x1xi32>
    %12 = arith.cmpi slt, %10, %11 : vector<7x1xi32>
    %cst = arith.constant 0.000000e+00 : f32
    %13 = vector.broadcast %cst : f32 to vector<7x1xf32>
    %14 = arith.select %12, %8, %13 : vector<7x1xi1>, vector<7x1xf32>
    %c0_2 = arith.constant 0 : index
    %c2 = arith.constant 2 : index
    %c0_3 = arith.constant 0 : index
    %15 = tpu.strided_load %arg2[%c0_2, %c2, %c0_3] {strides = array<i32: 1, 3, 1>} : memref<1x24x1xf32, #tpu.memory_space<vmem>>, vector<1x7x1xf32>
    %16 = vector.shape_cast %15 : vector<1x7x1xf32> to vector<7x1xf32>
    %c1_i32_4 = arith.constant 1 : i32
    %17 = vector.broadcast %c1_i32_4 : i32 to vector<7x1xi32>
    %18 = arith.addi %6, %17 : vector<7x1xi32>
    %c24_i32_5 = arith.constant 24 : i32
    %19 = vector.broadcast %c24_i32_5 : i32 to vector<7x1xi32>
    %20 = arith.cmpi slt, %18, %19 : vector<7x1xi32>
    %cst_6 = arith.constant 0.000000e+00 : f32
    %21 = vector.broadcast %cst_6 : f32 to vector<7x1xf32>
    %22 = arith.select %20, %16, %21 : vector<7x1xi1>, vector<7x1xf32>
    %c0_7 = arith.constant 0 : index
    %c3 = arith.constant 3 : index
    %c0_8 = arith.constant 0 : index
    %23 = tpu.strided_load %arg2[%c0_7, %c3, %c0_8] {strides = array<i32: 1, 3, 1>} : memref<1x24x1xf32, #tpu.memory_space<vmem>>, vector<1x7x1xf32>
    %24 = vector.shape_cast %23 : vector<1x7x1xf32> to vector<7x1xf32>
    %c2_i32 = arith.constant 2 : i32
    %25 = vector.broadcast %c2_i32 : i32 to vector<7x1xi32>
    %26 = arith.addi %6, %25 : vector<7x1xi32>
    %c24_i32_9 = arith.constant 24 : i32
    %27 = vector.broadcast %c24_i32_9 : i32 to vector<7x1xi32>
    %28 = arith.cmpi slt, %26, %27 : vector<7x1xi32>
    %cst_10 = arith.constant 0.000000e+00 : f32
    %29 = vector.broadcast %cst_10 : f32 to vector<7x1xf32>
    %30 = arith.select %28, %24, %29 : vector<7x1xi1>, vector<7x1xf32>
    %c0_11 = arith.constant 0 : index
    %c4 = arith.constant 4 : index
    %c0_12 = arith.constant 0 : index
    %31 = tpu.strided_load %arg2[%c0_11, %c4, %c0_12] {strides = array<i32: 1, 3, 1>} : memref<1x24x1xf32, #tpu.memory_space<vmem>>, vector<1x7x1xf32>
    %32 = vector.shape_cast %31 : vector<1x7x1xf32> to vector<7x1xf32>
    %c3_i32_13 = arith.constant 3 : i32
    %33 = vector.broadcast %c3_i32_13 : i32 to vector<7x1xi32>
    %34 = arith.addi %6, %33 : vector<7x1xi32>
    %c24_i32_14 = arith.constant 24 : i32
    %35 = vector.broadcast %c24_i32_14 : i32 to vector<7x1xi32>
    %36 = arith.cmpi slt, %34, %35 : vector<7x1xi32>
    %cst_15 = arith.constant 0.000000e+00 : f32
    %37 = vector.broadcast %cst_15 : f32 to vector<7x1xf32>
    %38 = arith.select %36, %32, %37 : vector<7x1xi1>, vector<7x1xf32>
    %c0_16 = arith.constant 0 : index
    %c5 = arith.constant 5 : index
    %c0_17 = arith.constant 0 : index
    %39 = tpu.strided_load %arg2[%c0_16, %c5, %c0_17] {strides = array<i32: 1, 3, 1>} : memref<1x24x1xf32, #tpu.memory_space<vmem>>, vector<1x7x1xf32>
    %40 = vector.shape_cast %39 : vector<1x7x1xf32> to vector<7x1xf32>
    %c4_i32 = arith.constant 4 : i32
    %41 = vector.broadcast %c4_i32 : i32 to vector<7x1xi32>
    %42 = arith.addi %6, %41 : vector<7x1xi32>
    %c24_i32_18 = arith.constant 24 : i32
    %43 = vector.broadcast %c24_i32_18 : i32 to vector<7x1xi32>
    %44 = arith.cmpi slt, %42, %43 : vector<7x1xi32>
    %cst_19 = arith.constant 0.000000e+00 : f32
    %45 = vector.broadcast %cst_19 : f32 to vector<7x1xf32>
    %46 = arith.select %44, %40, %45 : vector<7x1xi1>, vector<7x1xf32>
    %47 = tpu.concatenate %14, %22, %30, %38, %46 in 1 : vector<7x1xf32>, vector<7x1xf32>, vector<7x1xf32>, vector<7x1xf32>, vector<7x1xf32> -> vector<7x5xf32>
    %c0_20 = arith.constant 0 : index
    %c0_21 = arith.constant 0 : index
    %48 = vector.load %arg5[%c0_20, %c0_21] : memref<5x16xf32, #tpu.memory_space<vmem>>, vector<5x16xf32>
    %cst_22 = arith.constant dense<0.000000e+00> : vector<7x16xf32>
    %49 = tpu.matmul %47, %48, %cst_22 {dimension_numbers = #tpu.dot_dimension_numbers<[1], [0], [0], [1], [0, 0, 1, 1], [], []>} : vector<7x5xf32>, vector<5x16xf32>, vector<7x16xf32> -> vector<7x16xf32>
    %c0_23 = arith.constant 0 : index
    %c6 = arith.constant 6 : index
    %c0_24 = arith.constant 0 : index
    %50 = vector.load %arg3[%c0_23, %c6, %c0_24] : memref<1x8x1xf32, #tpu.memory_space<vmem>>, vector<1x1x1xf32>
    %51 = vector.shape_cast %50 : vector<1x1x1xf32> to vector<1x1xf32>
    %c0_i32_25 = arith.constant 0 : i32
    %52 = arith.cmpi sgt, %arg1, %c0_i32_25 : i32
    %c-2_i32 = arith.constant -2 : i32
    %53 = arith.addi %0, %c-2_i32 : i32
    %c24_i32_26 = arith.constant 24 : i32
    %54 = arith.cmpi slt, %53, %c24_i32_26 : i32
    %55 = arith.andi %52, %54 : i1
    %cst_27 = arith.constant 0.000000e+00 : f32
    %56 = vector.broadcast %cst_27 : f32 to vector<1x1xf32>
    %57 = arith.select %55, %51, %56 : vector<1x1xf32>
    %c0_28 = arith.constant 0 : index
    %c7 = arith.constant 7 : index
    %c0_29 = arith.constant 0 : index
    %58 = vector.load %arg3[%c0_28, %c7, %c0_29] : memref<1x8x1xf32, #tpu.memory_space<vmem>>, vector<1x1x1xf32>
    %59 = vector.shape_cast %58 : vector<1x1x1xf32> to vector<1x1xf32>
    %c0_i32_30 = arith.constant 0 : i32
    %60 = arith.cmpi sgt, %arg1, %c0_i32_30 : i32
    %c-1_i32 = arith.constant -1 : i32
    %61 = arith.addi %0, %c-1_i32 : i32
    %c24_i32_31 = arith.constant 24 : i32
    %62 = arith.cmpi slt, %61, %c24_i32_31 : i32
    %63 = arith.andi %60, %62 : i1
    %cst_32 = arith.constant 0.000000e+00 : f32
    %64 = vector.broadcast %cst_32 : f32 to vector<1x1xf32>
    %65 = arith.select %63, %59, %64 : vector<1x1xf32>
    %c0_33 = arith.constant 0 : index
    %c0_34 = arith.constant 0 : index
    %c0_35 = arith.constant 0 : index
    %66 = vector.load %arg2[%c0_33, %c0_34, %c0_35] : memref<1x24x1xf32, #tpu.memory_space<vmem>>, vector<1x1x1xf32>
    %67 = vector.shape_cast %66 : vector<1x1x1xf32> to vector<1x1xf32>
    %c0_i32_36 = arith.constant 0 : i32
    %68 = arith.addi %0, %c0_i32_36 : i32
    %c24_i32_37 = arith.constant 24 : i32
    %69 = arith.cmpi slt, %68, %c24_i32_37 : i32
    %cst_38 = arith.constant 0.000000e+00 : f32
    %70 = vector.broadcast %cst_38 : f32 to vector<1x1xf32>
    %71 = arith.select %69, %67, %70 : vector<1x1xf32>
    %c0_39 = arith.constant 0 : index
    %c1_40 = arith.constant 1 : index
    %c0_41 = arith.constant 0 : index
    %72 = vector.load %arg2[%c0_39, %c1_40, %c0_41] : memref<1x24x1xf32, #tpu.memory_space<vmem>>, vector<1x1x1xf32>
    %73 = vector.shape_cast %72 : vector<1x1x1xf32> to vector<1x1xf32>
    %c1_i32_42 = arith.constant 1 : i32
    %74 = arith.addi %0, %c1_i32_42 : i32
    %c24_i32_43 = arith.constant 24 : i32
    %75 = arith.cmpi slt, %74, %c24_i32_43 : i32
    %cst_44 = arith.constant 0.000000e+00 : f32
    %76 = vector.broadcast %cst_44 : f32 to vector<1x1xf32>
    %77 = arith.select %75, %73, %76 : vector<1x1xf32>
    %c0_45 = arith.constant 0 : index
    %c2_46 = arith.constant 2 : index
    %c0_47 = arith.constant 0 : index
    %78 = vector.load %arg2[%c0_45, %c2_46, %c0_47] : memref<1x24x1xf32, #tpu.memory_space<vmem>>, vector<1x1x1xf32>
    %79 = vector.shape_cast %78 : vector<1x1x1xf32> to vector<1x1xf32>
    %c2_i32_48 = arith.constant 2 : i32
    %80 = arith.addi %0, %c2_i32_48 : i32
    %c24_i32_49 = arith.constant 24 : i32
    %81 = arith.cmpi slt, %80, %c24_i32_49 : i32
    %cst_50 = arith.constant 0.000000e+00 : f32
    %82 = vector.broadcast %cst_50 : f32 to vector<1x1xf32>
    %83 = arith.select %81, %79, %82 : vector<1x1xf32>
    %84 = tpu.concatenate %57, %65, %71, %77, %83 in 1 : vector<1x1xf32>, vector<1x1xf32>, vector<1x1xf32>, vector<1x1xf32>, vector<1x1xf32> -> vector<1x5xf32>
    %c0_51 = arith.constant 0 : index
    %c0_52 = arith.constant 0 : index
    %85 = vector.load %arg5[%c0_51, %c0_52] : memref<5x16xf32, #tpu.memory_space<vmem>>, vector<5x16xf32>
    %cst_53 = arith.constant dense<0.000000e+00> : vector<1x16xf32>
    %86 = tpu.matmul %84, %85, %cst_53 {dimension_numbers = #tpu.dot_dimension_numbers<[1], [0], [0], [1], [0, 0, 1, 1], [], []>} : vector<1x5xf32>, vector<5x16xf32>, vector<1x16xf32> -> vector<1x16xf32>
    %87 = tpu.concatenate %86, %49 in 0 : vector<1x16xf32>, vector<7x16xf32> -> vector<8x16xf32>
    %c0_54 = arith.constant 0 : index
    %c0_55 = arith.constant 0 : index
    %88 = vector.load %arg6[%c0_54, %c0_55] : memref<1x16xf32, #tpu.memory_space<vmem>>, vector<1x16xf32>
    %89 = vector.broadcast %88 : vector<1x16xf32> to vector<8x16xf32>
    %90 = arith.addf %87, %89 : vector<8x16xf32>
    %cst_56 = arith.constant 0.000000e+00 : f32
    %91 = vector.broadcast %cst_56 : f32 to vector<8x16xf32>
    %92 = arith.cmpf oge, %90, %91 : vector<8x16xf32>
    %cst_57 = arith.constant 1.000000e-01 : f32
    %93 = vector.broadcast %cst_57 : f32 to vector<8x16xf32>
    %94 = arith.mulf %93, %90 : vector<8x16xf32>
    %95 = arith.select %92, %90, %94 : vector<8x16xi1>, vector<8x16xf32>
    %c0_58 = arith.constant 0 : index
    %c0_59 = arith.constant 0 : index
    %c0_60 = arith.constant 0 : index
    %96 = vector.load %arg7[%c0_58, %c0_59, %c0_60] : memref<1x8x16xf32, #tpu.memory_space<vmem>>, vector<1x8x16xf32>
    %97 = vector.shape_cast %96 : vector<1x8x16xf32> to vector<8x16xf32>
    %98 = vector.shape_cast %95 : vector<8x16xf32> to vector<1x8x16xf32>
    tpu.vector_store %arg7[%c0_58, %c0_59, %c0_60], %98 {strides = array<i32>} : memref<1x8x16xf32, #tpu.memory_space<vmem>>, vector<1x8x16xf32>,
    return
  }
  func.func @transform_0(%arg0: i32, %arg1: i32) -> (i32, i32, i32) {
    %c0_i32 = arith.constant 0 : i32
    %c0_i32_0 = arith.constant 0 : i32
    return %arg0, %arg1, %c0_i32 : i32, i32, i32
  }
  func.func @transform_1(%arg0: i32, %arg1: i32) -> (i32, i32, i32) {
    %c3_i32 = arith.constant 3 : i32
    %0 = arith.muli %arg1, %c3_i32 : i32
    %c1_i32 = arith.constant 1 : i32
    %1 = arith.subi %0, %c1_i32 : i32
    %c0_i32 = arith.constant 0 : i32
    %2 = arith.maxsi %1, %c0_i32 : i32
    %c0_i32_0 = arith.constant 0 : i32
    %c0_i32_1 = arith.constant 0 : i32
    return %arg0, %2, %c0_i32_0 : i32, i32, i32
  }
  func.func @transform_2(%arg0: i32, %arg1: i32) -> (i32, i32, i32) {
    %c1_i32 = arith.constant 1 : i32
    %0 = arith.addi %arg1, %c1_i32 : i32
    %c3_i32 = arith.constant 3 : i32
    %1 = arith.muli %0, %c3_i32 : i32
    %c0_i32 = arith.constant 0 : i32
    %c0_i32_0 = arith.constant 0 : i32
    return %arg0, %1, %c0_i32 : i32, i32, i32
  }
  func.func @transform_3(%arg0: i32, %arg1: i32) -> (i32, i32) {
    %c0_i32 = arith.constant 0 : i32
    %c0_i32_0 = arith.constant 0 : i32
    %c0_i32_1 = arith.constant 0 : i32
    return %c0_i32, %c0_i32_0 : i32, i32
  }
  func.func @transform_4(%arg0: i32, %arg1: i32) -> (i32, i32) {
    %c0_i32 = arith.constant 0 : i32
    %c0_i32_0 = arith.constant 0 : i32
    %c0_i32_1 = arith.constant 0 : i32
    return %c0_i32, %c0_i32_0 : i32, i32
  }
  func.func @transform_5(%arg0: i32, %arg1: i32) -> (i32, i32, i32) {
    %c0_i32 = arith.constant 0 : i32
    %c0_i32_0 = arith.constant 0 : i32
    return %arg0, %arg1, %c0_i32 : i32, i32, i32
  }
}

module attributes {stable_mosaic.version = 11 : i64} {
  func.func @_conv_k1_kernel(%arg0: i32, %arg1: i32, %arg2: memref<1x24x32xf32, #tpu.memory_space<vmem>>, %arg3: memref<1x8x32xf32, #tpu.memory_space<vmem>>, %arg4: memref<1x8x32xf32, #tpu.memory_space<vmem>>, %arg5: memref<160x64xf32, #tpu.memory_space<vmem>>, %arg6: memref<1x64xf32, #tpu.memory_space<vmem>>, %arg7: memref<1x8x64xf32, #tpu.memory_space<vmem>>) attributes {dimension_semantics = [#tpu.dimension_semantics<parallel>, #tpu.dimension_semantics<parallel>], iteration_bounds = array<i64: 8, 1>, scalar_prefetch = 0 : i64, scratch_operands = 0 : i64, tpu.core_type = #tpu.core_type<tc>, window_params = [{transform_indices = @transform_0, window_bounds = array<i64: 1, 24, 32>}, {transform_indices = @transform_1, window_bounds = array<i64: 1, 8, 32>}, {transform_indices = @transform_2, window_bounds = array<i64: 1, 8, 32>}, {pipeline_mode = #tpu.pipeline_mode<synchronous>, transform_indices = @transform_3, window_bounds = array<i64: 160, 64>}, {pipeline_mode = #tpu.pipeline_mode<synchronous>, transform_indices = @transform_4, window_bounds = array<i64: 1, 64>}, {transform_indices = @transform_5, window_bounds = array<i64: 1, 8, 64>}]} {
    %c24_i32 = arith.constant 24 : i32
    %0 = arith.muli %arg1, %c24_i32 : i32
    %1 = tpu.iota {dimensions = array<i32: 0>} : vector<7x1xi32>
    %c3_i32 = arith.constant 3 : i32
    %2 = vector.broadcast %c3_i32 : i32 to vector<7x1xi32>
    %3 = arith.muli %1, %2 : vector<7x1xi32>
    %c1_i32 = arith.constant 1 : i32
    %4 = arith.addi %0, %c1_i32 : i32
    %5 = vector.broadcast %4 : i32 to vector<7x1xi32>
    %6 = arith.addi %3, %5 : vector<7x1xi32>
    %c0 = arith.constant 0 : index
    %c1 = arith.constant 1 : index
    %c0_0 = arith.constant 0 : index
    %7 = tpu.strided_load %arg2[%c0, %c1, %c0_0] {strides = array<i32: 1, 3, 1>} : memref<1x24x32xf32, #tpu.memory_space<vmem>>, vector<1x7x32xf32>
    %8 = vector.shape_cast %7 : vector<1x7x32xf32> to vector<7x32xf32>
    %c0_i32 = arith.constant 0 : i32
    %9 = vector.broadcast %c0_i32 : i32 to vector<7x1xi32>
    %10 = arith.addi %6, %9 : vector<7x1xi32>
    %c3_i32_1 = arith.constant 3 : i32
    %11 = vector.broadcast %c3_i32_1 : i32 to vector<7x1xi32>
    %12 = arith.cmpi slt, %10, %11 : vector<7x1xi32>
    %cst = arith.constant 0.000000e+00 : f32
    %13 = vector.broadcast %cst : f32 to vector<7x32xf32>
    %14 = vector.shape_cast %12 : vector<7x1xi1> to vector<7x1xi1>
    %15 = vector.broadcast %14 : vector<7x1xi1> to vector<7x32xi1>
    %16 = arith.select %15, %8, %13 : vector<7x32xi1>, vector<7x32xf32>
    %c0_2 = arith.constant 0 : index
    %c2 = arith.constant 2 : index
    %c0_3 = arith.constant 0 : index
    %17 = tpu.strided_load %arg2[%c0_2, %c2, %c0_3] {strides = array<i32: 1, 3, 1>} : memref<1x24x32xf32, #tpu.memory_space<vmem>>, vector<1x7x32xf32>
    %18 = vector.shape_cast %17 : vector<1x7x32xf32> to vector<7x32xf32>
    %c1_i32_4 = arith.constant 1 : i32
    %19 = vector.broadcast %c1_i32_4 : i32 to vector<7x1xi32>
    %20 = arith.addi %6, %19 : vector<7x1xi32>
    %c3_i32_5 = arith.constant 3 : i32
    %21 = vector.broadcast %c3_i32_5 : i32 to vector<7x1xi32>
    %22 = arith.cmpi slt, %20, %21 : vector<7x1xi32>
    %cst_6 = arith.constant 0.000000e+00 : f32
    %23 = vector.broadcast %cst_6 : f32 to vector<7x32xf32>
    %24 = vector.shape_cast %22 : vector<7x1xi1> to vector<7x1xi1>
    %25 = vector.broadcast %24 : vector<7x1xi1> to vector<7x32xi1>
    %26 = arith.select %25, %18, %23 : vector<7x32xi1>, vector<7x32xf32>
    %c0_7 = arith.constant 0 : index
    %c3 = arith.constant 3 : index
    %c0_8 = arith.constant 0 : index
    %27 = tpu.strided_load %arg2[%c0_7, %c3, %c0_8] {strides = array<i32: 1, 3, 1>} : memref<1x24x32xf32, #tpu.memory_space<vmem>>, vector<1x7x32xf32>
    %28 = vector.shape_cast %27 : vector<1x7x32xf32> to vector<7x32xf32>
    %c2_i32 = arith.constant 2 : i32
    %29 = vector.broadcast %c2_i32 : i32 to vector<7x1xi32>
    %30 = arith.addi %6, %29 : vector<7x1xi32>
    %c3_i32_9 = arith.constant 3 : i32
    %31 = vector.broadcast %c3_i32_9 : i32 to vector<7x1xi32>
    %32 = arith.cmpi slt, %30, %31 : vector<7x1xi32>
    %cst_10 = arith.constant 0.000000e+00 : f32
    %33 = vector.broadcast %cst_10 : f32 to vector<7x32xf32>
    %34 = vector.shape_cast %32 : vector<7x1xi1> to vector<7x1xi1>
    %35 = vector.broadcast %34 : vector<7x1xi1> to vector<7x32xi1>
    %36 = arith.select %35, %28, %33 : vector<7x32xi1>, vector<7x32xf32>
    %c0_11 = arith.constant 0 : index
    %c4 = arith.constant 4 : index
    %c0_12 = arith.constant 0 : index
    %37 = tpu.strided_load %arg2[%c0_11, %c4, %c0_12] {strides = array<i32: 1, 3, 1>} : memref<1x24x32xf32, #tpu.memory_space<vmem>>, vector<1x7x32xf32>
    %38 = vector.shape_cast %37 : vector<1x7x32xf32> to vector<7x32xf32>
    %c3_i32_13 = arith.constant 3 : i32
    %39 = vector.broadcast %c3_i32_13 : i32 to vector<7x1xi32>
    %40 = arith.addi %6, %39 : vector<7x1xi32>
    %c3_i32_14 = arith.constant 3 : i32
    %41 = vector.broadcast %c3_i32_14 : i32 to vector<7x1xi32>
    %42 = arith.cmpi slt, %40, %41 : vector<7x1xi32>
    %cst_15 = arith.constant 0.000000e+00 : f32
    %43 = vector.broadcast %cst_15 : f32 to vector<7x32xf32>
    %44 = vector.shape_cast %42 : vector<7x1xi1> to vector<7x1xi1>
    %45 = vector.broadcast %44 : vector<7x1xi1> to vector<7x32xi1>
    %46 = arith.select %45, %38, %43 : vector<7x32xi1>, vector<7x32xf32>
    %c0_16 = arith.constant 0 : index
    %c5 = arith.constant 5 : index
    %c0_17 = arith.constant 0 : index
    %47 = tpu.strided_load %arg2[%c0_16, %c5, %c0_17] {strides = array<i32: 1, 3, 1>} : memref<1x24x32xf32, #tpu.memory_space<vmem>>, vector<1x7x32xf32>
    %48 = vector.shape_cast %47 : vector<1x7x32xf32> to vector<7x32xf32>
    %c4_i32 = arith.constant 4 : i32
    %49 = vector.broadcast %c4_i32 : i32 to vector<7x1xi32>
    %50 = arith.addi %6, %49 : vector<7x1xi32>
    %c3_i32_18 = arith.constant 3 : i32
    %51 = vector.broadcast %c3_i32_18 : i32 to vector<7x1xi32>
    %52 = arith.cmpi slt, %50, %51 : vector<7x1xi32>
    %cst_19 = arith.constant 0.000000e+00 : f32
    %53 = vector.broadcast %cst_19 : f32 to vector<7x32xf32>
    %54 = vector.shape_cast %52 : vector<7x1xi1> to vector<7x1xi1>
    %55 = vector.broadcast %54 : vector<7x1xi1> to vector<7x32xi1>
    %56 = arith.select %55, %48, %53 : vector<7x32xi1>, vector<7x32xf32>
    %57 = tpu.concatenate %16, %26, %36, %46, %56 in 1 : vector<7x32xf32>, vector<7x32xf32>, vector<7x32xf32>, vector<7x32xf32>, vector<7x32xf32> -> vector<7x160xf32>
    %c0_20 = arith.constant 0 : index
    %c0_21 = arith.constant 0 : index
    %58 = vector.load %arg5[%c0_20, %c0_21] : memref<160x64xf32, #tpu.memory_space<vmem>>, vector<160x64xf32>
    %cst_22 = arith.constant dense<0.000000e+00> : vector<7x64xf32>
    %59 = tpu.matmul %57, %58, %cst_22 {dimension_numbers = #tpu.dot_dimension_numbers<[1], [0], [0], [1], [0, 0, 1, 1], [], []>} : vector<7x160xf32>, vector<160x64xf32>, vector<7x64xf32> -> vector<7x64xf32>
    %c0_23 = arith.constant 0 : index
    %c6 = arith.constant 6 : index
    %c0_24 = arith.constant 0 : index
    %60 = vector.load %arg3[%c0_23, %c6, %c0_24] : memref<1x8x32xf32, #tpu.memory_space<vmem>>, vector<1x1x32xf32>
    %61 = vector.shape_cast %60 : vector<1x1x32xf32> to vector<1x32xf32>
    %c0_i32_25 = arith.constant 0 : i32
    %62 = arith.cmpi sgt, %arg1, %c0_i32_25 : i32
    %c-2_i32 = arith.constant -2 : i32
    %63 = arith.addi %0, %c-2_i32 : i32
    %c3_i32_26 = arith.constant 3 : i32
    %64 = arith.cmpi slt, %63, %c3_i32_26 : i32
    %65 = arith.andi %62, %64 : i1
    %cst_27 = arith.constant 0.000000e+00 : f32
    %66 = vector.broadcast %cst_27 : f32 to vector<1x32xf32>
    %67 = arith.select %65, %61, %66 : vector<1x32xf32>
    %c0_28 = arith.constant 0 : index
    %c7 = arith.constant 7 : index
    %c0_29 = arith.constant 0 : index
    %68 = vector.load %arg3[%c0_28, %c7, %c0_29] : memref<1x8x32xf32, #tpu.memory_space<vmem>>, vector<1x1x32xf32>
    %69 = vector.shape_cast %68 : vector<1x1x32xf32> to vector<1x32xf32>
    %c0_i32_30 = arith.constant 0 : i32
    %70 = arith.cmpi sgt, %arg1, %c0_i32_30 : i32
    %c-1_i32 = arith.constant -1 : i32
    %71 = arith.addi %0, %c-1_i32 : i32
    %c3_i32_31 = arith.constant 3 : i32
    %72 = arith.cmpi slt, %71, %c3_i32_31 : i32
    %73 = arith.andi %70, %72 : i1
    %cst_32 = arith.constant 0.000000e+00 : f32
    %74 = vector.broadcast %cst_32 : f32 to vector<1x32xf32>
    %75 = arith.select %73, %69, %74 : vector<1x32xf32>
    %c0_33 = arith.constant 0 : index
    %c0_34 = arith.constant 0 : index
    %c0_35 = arith.constant 0 : index
    %76 = vector.load %arg2[%c0_33, %c0_34, %c0_35] : memref<1x24x32xf32, #tpu.memory_space<vmem>>, vector<1x1x32xf32>
    %77 = vector.shape_cast %76 : vector<1x1x32xf32> to vector<1x32xf32>
    %c0_i32_36 = arith.constant 0 : i32
    %78 = arith.addi %0, %c0_i32_36 : i32
    %c3_i32_37 = arith.constant 3 : i32
    %79 = arith.cmpi slt, %78, %c3_i32_37 : i32
    %cst_38 = arith.constant 0.000000e+00 : f32
    %80 = vector.broadcast %cst_38 : f32 to vector<1x32xf32>
    %81 = arith.select %79, %77, %80 : vector<1x32xf32>
    %c0_39 = arith.constant 0 : index
    %c1_40 = arith.constant 1 : index
    %c0_41 = arith.constant 0 : index
    %82 = vector.load %arg2[%c0_39, %c1_40, %c0_41] : memref<1x24x32xf32, #tpu.memory_space<vmem>>, vector<1x1x32xf32>
    %83 = vector.shape_cast %82 : vector<1x1x32xf32> to vector<1x32xf32>
    %c1_i32_42 = arith.constant 1 : i32
    %84 = arith.addi %0, %c1_i32_42 : i32
    %c3_i32_43 = arith.constant 3 : i32
    %85 = arith.cmpi slt, %84, %c3_i32_43 : i32
    %cst_44 = arith.constant 0.000000e+00 : f32
    %86 = vector.broadcast %cst_44 : f32 to vector<1x32xf32>
    %87 = arith.select %85, %83, %86 : vector<1x32xf32>
    %c0_45 = arith.constant 0 : index
    %c2_46 = arith.constant 2 : index
    %c0_47 = arith.constant 0 : index
    %88 = vector.load %arg2[%c0_45, %c2_46, %c0_47] : memref<1x24x32xf32, #tpu.memory_space<vmem>>, vector<1x1x32xf32>
    %89 = vector.shape_cast %88 : vector<1x1x32xf32> to vector<1x32xf32>
    %c2_i32_48 = arith.constant 2 : i32
    %90 = arith.addi %0, %c2_i32_48 : i32
    %c3_i32_49 = arith.constant 3 : i32
    %91 = arith.cmpi slt, %90, %c3_i32_49 : i32
    %cst_50 = arith.constant 0.000000e+00 : f32
    %92 = vector.broadcast %cst_50 : f32 to vector<1x32xf32>
    %93 = arith.select %91, %89, %92 : vector<1x32xf32>
    %94 = tpu.concatenate %67, %75, %81, %87, %93 in 1 : vector<1x32xf32>, vector<1x32xf32>, vector<1x32xf32>, vector<1x32xf32>, vector<1x32xf32> -> vector<1x160xf32>
    %c0_51 = arith.constant 0 : index
    %c0_52 = arith.constant 0 : index
    %95 = vector.load %arg5[%c0_51, %c0_52] : memref<160x64xf32, #tpu.memory_space<vmem>>, vector<160x64xf32>
    %cst_53 = arith.constant dense<0.000000e+00> : vector<1x64xf32>
    %96 = tpu.matmul %94, %95, %cst_53 {dimension_numbers = #tpu.dot_dimension_numbers<[1], [0], [0], [1], [0, 0, 1, 1], [], []>} : vector<1x160xf32>, vector<160x64xf32>, vector<1x64xf32> -> vector<1x64xf32>
    %97 = tpu.concatenate %96, %59 in 0 : vector<1x64xf32>, vector<7x64xf32> -> vector<8x64xf32>
    %c0_54 = arith.constant 0 : index
    %c0_55 = arith.constant 0 : index
    %98 = vector.load %arg6[%c0_54, %c0_55] : memref<1x64xf32, #tpu.memory_space<vmem>>, vector<1x64xf32>
    %99 = vector.broadcast %98 : vector<1x64xf32> to vector<8x64xf32>
    %100 = arith.addf %97, %99 : vector<8x64xf32>
    %cst_56 = arith.constant 0.000000e+00 : f32
    %101 = vector.broadcast %cst_56 : f32 to vector<8x64xf32>
    %102 = arith.cmpf oge, %100, %101 : vector<8x64xf32>
    %cst_57 = arith.constant 1.000000e-01 : f32
    %103 = vector.broadcast %cst_57 : f32 to vector<8x64xf32>
    %104 = arith.mulf %103, %100 : vector<8x64xf32>
    %105 = arith.select %102, %100, %104 : vector<8x64xi1>, vector<8x64xf32>
    %c0_58 = arith.constant 0 : index
    %c0_59 = arith.constant 0 : index
    %c0_60 = arith.constant 0 : index
    %106 = vector.load %arg7[%c0_58, %c0_59, %c0_60] : memref<1x8x64xf32, #tpu.memory_space<vmem>>, vector<1x8x64xf32>
    %107 = vector.shape_cast %106 : vector<1x8x64xf32> to vector<8x64xf32>
    %108 = vector.shape_cast %105 : vector<8x64xf32> to vector<1x8x64xf32>
    tpu.vector_store %arg7[%c0_58, %c0_59, %c0_60], %108 {strides = array<i32>} : memref<1x8x64xf32, #tpu.memory_space<vmem>>, vector<1x8x64xf32>,
    return
  }
  func.func @transform_0(%arg0: i32, %arg1: i32) -> (i32, i32, i32) {
    %c0_i32 = arith.constant 0 : i32
    %c0_i32_0 = arith.constant 0 : i32
    return %arg0, %arg1, %c0_i32 : i32, i32, i32
  }
  func.func @transform_1(%arg0: i32, %arg1: i32) -> (i32, i32, i32) {
    %c3_i32 = arith.constant 3 : i32
    %0 = arith.muli %arg1, %c3_i32 : i32
    %c1_i32 = arith.constant 1 : i32
    %1 = arith.subi %0, %c1_i32 : i32
    %c0_i32 = arith.constant 0 : i32
    %2 = arith.maxsi %1, %c0_i32 : i32
    %c0_i32_0 = arith.constant 0 : i32
    %c0_i32_1 = arith.constant 0 : i32
    return %arg0, %2, %c0_i32_0 : i32, i32, i32
  }
  func.func @transform_2(%arg0: i32, %arg1: i32) -> (i32, i32, i32) {
    %c1_i32 = arith.constant 1 : i32
    %0 = arith.addi %arg1, %c1_i32 : i32
    %c3_i32 = arith.constant 3 : i32
    %1 = arith.muli %0, %c3_i32 : i32
    %c0_i32 = arith.constant 0 : i32
    %c0_i32_0 = arith.constant 0 : i32
    return %arg0, %1, %c0_i32 : i32, i32, i32
  }
  func.func @transform_3(%arg0: i32, %arg1: i32) -> (i32, i32) {
    %c0_i32 = arith.constant 0 : i32
    %c0_i32_0 = arith.constant 0 : i32
    %c0_i32_1 = arith.constant 0 : i32
    return %c0_i32, %c0_i32_0 : i32, i32
  }
  func.func @transform_4(%arg0: i32, %arg1: i32) -> (i32, i32) {
    %c0_i32 = arith.constant 0 : i32
    %c0_i32_0 = arith.constant 0 : i32
    %c0_i32_1 = arith.constant 0 : i32
    return %c0_i32, %c0_i32_0 : i32, i32
  }
  func.func @transform_5(%arg0: i32, %arg1: i32) -> (i32, i32, i32) {
    %c0_i32 = arith.constant 0 : i32
    %c0_i32_0 = arith.constant 0 : i32
    return %arg0, %arg1, %c0_i32 : i32, i32, i32
  }
}

module attributes {stable_mosaic.version = 11 : i64} {
  func.func @_conv_k1_kernel(%arg0: i32, %arg1: i32, %arg2: memref<1x24x128xf32, #tpu.memory_space<vmem>>, %arg3: memref<1x8x128xf32, #tpu.memory_space<vmem>>, %arg4: memref<1x8x128xf32, #tpu.memory_space<vmem>>, %arg5: memref<640x256xf32, #tpu.memory_space<vmem>>, %arg6: memref<1x256xf32, #tpu.memory_space<vmem>>, %arg7: memref<1x8x256xf32, #tpu.memory_space<vmem>>) attributes {dimension_semantics = [#tpu.dimension_semantics<parallel>, #tpu.dimension_semantics<parallel>], iteration_bounds = array<i64: 8, 1>, scalar_prefetch = 0 : i64, scratch_operands = 0 : i64, tpu.core_type = #tpu.core_type<tc>, window_params = [{transform_indices = @transform_0, window_bounds = array<i64: 1, 24, 128>}, {transform_indices = @transform_1, window_bounds = array<i64: 1, 8, 128>}, {transform_indices = @transform_2, window_bounds = array<i64: 1, 8, 128>}, {pipeline_mode = #tpu.pipeline_mode<synchronous>, transform_indices = @transform_3, window_bounds = array<i64: 640, 256>}, {pipeline_mode = #tpu.pipeline_mode<synchronous>, transform_indices = @transform_4, window_bounds = array<i64: 1, 256>}, {transform_indices = @transform_5, window_bounds = array<i64: 1, 8, 256>}]} {
    %c24_i32 = arith.constant 24 : i32
    %0 = arith.muli %arg1, %c24_i32 : i32
    %1 = tpu.iota {dimensions = array<i32: 0>} : vector<7x1xi32>
    %c3_i32 = arith.constant 3 : i32
    %2 = vector.broadcast %c3_i32 : i32 to vector<7x1xi32>
    %3 = arith.muli %1, %2 : vector<7x1xi32>
    %c1_i32 = arith.constant 1 : i32
    %4 = arith.addi %0, %c1_i32 : i32
    %5 = vector.broadcast %4 : i32 to vector<7x1xi32>
    %6 = arith.addi %3, %5 : vector<7x1xi32>
    %c0 = arith.constant 0 : index
    %c1 = arith.constant 1 : index
    %c0_0 = arith.constant 0 : index
    %7 = tpu.strided_load %arg2[%c0, %c1, %c0_0] {strides = array<i32: 1, 3, 1>} : memref<1x24x128xf32, #tpu.memory_space<vmem>>, vector<1x7x128xf32>
    %8 = vector.shape_cast %7 : vector<1x7x128xf32> to vector<7x128xf32>
    %c0_i32 = arith.constant 0 : i32
    %9 = vector.broadcast %c0_i32 : i32 to vector<7x1xi32>
    %10 = arith.addi %6, %9 : vector<7x1xi32>
    %c1_i32_1 = arith.constant 1 : i32
    %11 = vector.broadcast %c1_i32_1 : i32 to vector<7x1xi32>
    %12 = arith.cmpi slt, %10, %11 : vector<7x1xi32>
    %cst = arith.constant 0.000000e+00 : f32
    %13 = vector.broadcast %cst : f32 to vector<7x128xf32>
    %14 = vector.shape_cast %12 : vector<7x1xi1> to vector<7x1xi1>
    %15 = vector.broadcast %14 : vector<7x1xi1> to vector<7x128xi1>
    %16 = arith.select %15, %8, %13 : vector<7x128xi1>, vector<7x128xf32>
    %c0_2 = arith.constant 0 : index
    %c2 = arith.constant 2 : index
    %c0_3 = arith.constant 0 : index
    %17 = tpu.strided_load %arg2[%c0_2, %c2, %c0_3] {strides = array<i32: 1, 3, 1>} : memref<1x24x128xf32, #tpu.memory_space<vmem>>, vector<1x7x128xf32>
    %18 = vector.shape_cast %17 : vector<1x7x128xf32> to vector<7x128xf32>
    %c1_i32_4 = arith.constant 1 : i32
    %19 = vector.broadcast %c1_i32_4 : i32 to vector<7x1xi32>
    %20 = arith.addi %6, %19 : vector<7x1xi32>
    %c1_i32_5 = arith.constant 1 : i32
    %21 = vector.broadcast %c1_i32_5 : i32 to vector<7x1xi32>
    %22 = arith.cmpi slt, %20, %21 : vector<7x1xi32>
    %cst_6 = arith.constant 0.000000e+00 : f32
    %23 = vector.broadcast %cst_6 : f32 to vector<7x128xf32>
    %24 = vector.shape_cast %22 : vector<7x1xi1> to vector<7x1xi1>
    %25 = vector.broadcast %24 : vector<7x1xi1> to vector<7x128xi1>
    %26 = arith.select %25, %18, %23 : vector<7x128xi1>, vector<7x128xf32>
    %c0_7 = arith.constant 0 : index
    %c3 = arith.constant 3 : index
    %c0_8 = arith.constant 0 : index
    %27 = tpu.strided_load %arg2[%c0_7, %c3, %c0_8] {strides = array<i32: 1, 3, 1>} : memref<1x24x128xf32, #tpu.memory_space<vmem>>, vector<1x7x128xf32>
    %28 = vector.shape_cast %27 : vector<1x7x128xf32> to vector<7x128xf32>
    %c2_i32 = arith.constant 2 : i32
    %29 = vector.broadcast %c2_i32 : i32 to vector<7x1xi32>
    %30 = arith.addi %6, %29 : vector<7x1xi32>
    %c1_i32_9 = arith.constant 1 : i32
    %31 = vector.broadcast %c1_i32_9 : i32 to vector<7x1xi32>
    %32 = arith.cmpi slt, %30, %31 : vector<7x1xi32>
    %cst_10 = arith.constant 0.000000e+00 : f32
    %33 = vector.broadcast %cst_10 : f32 to vector<7x128xf32>
    %34 = vector.shape_cast %32 : vector<7x1xi1> to vector<7x1xi1>
    %35 = vector.broadcast %34 : vector<7x1xi1> to vector<7x128xi1>
    %36 = arith.select %35, %28, %33 : vector<7x128xi1>, vector<7x128xf32>
    %c0_11 = arith.constant 0 : index
    %c4 = arith.constant 4 : index
    %c0_12 = arith.constant 0 : index
    %37 = tpu.strided_load %arg2[%c0_11, %c4, %c0_12] {strides = array<i32: 1, 3, 1>} : memref<1x24x128xf32, #tpu.memory_space<vmem>>, vector<1x7x128xf32>
    %38 = vector.shape_cast %37 : vector<1x7x128xf32> to vector<7x128xf32>
    %c3_i32_13 = arith.constant 3 : i32
    %39 = vector.broadcast %c3_i32_13 : i32 to vector<7x1xi32>
    %40 = arith.addi %6, %39 : vector<7x1xi32>
    %c1_i32_14 = arith.constant 1 : i32
    %41 = vector.broadcast %c1_i32_14 : i32 to vector<7x1xi32>
    %42 = arith.cmpi slt, %40, %41 : vector<7x1xi32>
    %cst_15 = arith.constant 0.000000e+00 : f32
    %43 = vector.broadcast %cst_15 : f32 to vector<7x128xf32>
    %44 = vector.shape_cast %42 : vector<7x1xi1> to vector<7x1xi1>
    %45 = vector.broadcast %44 : vector<7x1xi1> to vector<7x128xi1>
    %46 = arith.select %45, %38, %43 : vector<7x128xi1>, vector<7x128xf32>
    %c0_16 = arith.constant 0 : index
    %c5 = arith.constant 5 : index
    %c0_17 = arith.constant 0 : index
    %47 = tpu.strided_load %arg2[%c0_16, %c5, %c0_17] {strides = array<i32: 1, 3, 1>} : memref<1x24x128xf32, #tpu.memory_space<vmem>>, vector<1x7x128xf32>
    %48 = vector.shape_cast %47 : vector<1x7x128xf32> to vector<7x128xf32>
    %c4_i32 = arith.constant 4 : i32
    %49 = vector.broadcast %c4_i32 : i32 to vector<7x1xi32>
    %50 = arith.addi %6, %49 : vector<7x1xi32>
    %c1_i32_18 = arith.constant 1 : i32
    %51 = vector.broadcast %c1_i32_18 : i32 to vector<7x1xi32>
    %52 = arith.cmpi slt, %50, %51 : vector<7x1xi32>
    %cst_19 = arith.constant 0.000000e+00 : f32
    %53 = vector.broadcast %cst_19 : f32 to vector<7x128xf32>
    %54 = vector.shape_cast %52 : vector<7x1xi1> to vector<7x1xi1>
    %55 = vector.broadcast %54 : vector<7x1xi1> to vector<7x128xi1>
    %56 = arith.select %55, %48, %53 : vector<7x128xi1>, vector<7x128xf32>
    %57 = tpu.concatenate %16, %26, %36, %46, %56 in 1 : vector<7x128xf32>, vector<7x128xf32>, vector<7x128xf32>, vector<7x128xf32>, vector<7x128xf32> -> vector<7x640xf32>
    %c0_20 = arith.constant 0 : index
    %c0_21 = arith.constant 0 : index
    %58 = vector.load %arg5[%c0_20, %c0_21] : memref<640x256xf32, #tpu.memory_space<vmem>>, vector<640x256xf32>
    %cst_22 = arith.constant dense<0.000000e+00> : vector<7x256xf32>
    %59 = tpu.matmul %57, %58, %cst_22 {dimension_numbers = #tpu.dot_dimension_numbers<[1], [0], [0], [1], [0, 0, 1, 1], [], []>} : vector<7x640xf32>, vector<640x256xf32>, vector<7x256xf32> -> vector<7x256xf32>
    %c0_23 = arith.constant 0 : index
    %c6 = arith.constant 6 : index
    %c0_24 = arith.constant 0 : index
    %60 = vector.load %arg3[%c0_23, %c6, %c0_24] : memref<1x8x128xf32, #tpu.memory_space<vmem>>, vector<1x1x128xf32>
    %61 = vector.shape_cast %60 : vector<1x1x128xf32> to vector<1x128xf32>
    %c0_i32_25 = arith.constant 0 : i32
    %62 = arith.cmpi sgt, %arg1, %c0_i32_25 : i32
    %c-2_i32 = arith.constant -2 : i32
    %63 = arith.addi %0, %c-2_i32 : i32
    %c1_i32_26 = arith.constant 1 : i32
    %64 = arith.cmpi slt, %63, %c1_i32_26 : i32
    %65 = arith.andi %62, %64 : i1
    %cst_27 = arith.constant 0.000000e+00 : f32
    %66 = vector.broadcast %cst_27 : f32 to vector<1x128xf32>
    %67 = arith.select %65, %61, %66 : vector<1x128xf32>
    %c0_28 = arith.constant 0 : index
    %c7 = arith.constant 7 : index
    %c0_29 = arith.constant 0 : index
    %68 = vector.load %arg3[%c0_28, %c7, %c0_29] : memref<1x8x128xf32, #tpu.memory_space<vmem>>, vector<1x1x128xf32>
    %69 = vector.shape_cast %68 : vector<1x1x128xf32> to vector<1x128xf32>
    %c0_i32_30 = arith.constant 0 : i32
    %70 = arith.cmpi sgt, %arg1, %c0_i32_30 : i32
    %c-1_i32 = arith.constant -1 : i32
    %71 = arith.addi %0, %c-1_i32 : i32
    %c1_i32_31 = arith.constant 1 : i32
    %72 = arith.cmpi slt, %71, %c1_i32_31 : i32
    %73 = arith.andi %70, %72 : i1
    %cst_32 = arith.constant 0.000000e+00 : f32
    %74 = vector.broadcast %cst_32 : f32 to vector<1x128xf32>
    %75 = arith.select %73, %69, %74 : vector<1x128xf32>
    %c0_33 = arith.constant 0 : index
    %c0_34 = arith.constant 0 : index
    %c0_35 = arith.constant 0 : index
    %76 = vector.load %arg2[%c0_33, %c0_34, %c0_35] : memref<1x24x128xf32, #tpu.memory_space<vmem>>, vector<1x1x128xf32>
    %77 = vector.shape_cast %76 : vector<1x1x128xf32> to vector<1x128xf32>
    %c0_i32_36 = arith.constant 0 : i32
    %78 = arith.addi %0, %c0_i32_36 : i32
    %c1_i32_37 = arith.constant 1 : i32
    %79 = arith.cmpi slt, %78, %c1_i32_37 : i32
    %cst_38 = arith.constant 0.000000e+00 : f32
    %80 = vector.broadcast %cst_38 : f32 to vector<1x128xf32>
    %81 = arith.select %79, %77, %80 : vector<1x128xf32>
    %c0_39 = arith.constant 0 : index
    %c1_40 = arith.constant 1 : index
    %c0_41 = arith.constant 0 : index
    %82 = vector.load %arg2[%c0_39, %c1_40, %c0_41] : memref<1x24x128xf32, #tpu.memory_space<vmem>>, vector<1x1x128xf32>
    %83 = vector.shape_cast %82 : vector<1x1x128xf32> to vector<1x128xf32>
    %c1_i32_42 = arith.constant 1 : i32
    %84 = arith.addi %0, %c1_i32_42 : i32
    %c1_i32_43 = arith.constant 1 : i32
    %85 = arith.cmpi slt, %84, %c1_i32_43 : i32
    %cst_44 = arith.constant 0.000000e+00 : f32
    %86 = vector.broadcast %cst_44 : f32 to vector<1x128xf32>
    %87 = arith.select %85, %83, %86 : vector<1x128xf32>
    %c0_45 = arith.constant 0 : index
    %c2_46 = arith.constant 2 : index
    %c0_47 = arith.constant 0 : index
    %88 = vector.load %arg2[%c0_45, %c2_46, %c0_47] : memref<1x24x128xf32, #tpu.memory_space<vmem>>, vector<1x1x128xf32>
    %89 = vector.shape_cast %88 : vector<1x1x128xf32> to vector<1x128xf32>
    %c2_i32_48 = arith.constant 2 : i32
    %90 = arith.addi %0, %c2_i32_48 : i32
    %c1_i32_49 = arith.constant 1 : i32
    %91 = arith.cmpi slt, %90, %c1_i32_49 : i32
    %cst_50 = arith.constant 0.000000e+00 : f32
    %92 = vector.broadcast %cst_50 : f32 to vector<1x128xf32>
    %93 = arith.select %91, %89, %92 : vector<1x128xf32>
    %94 = tpu.concatenate %67, %75, %81, %87, %93 in 1 : vector<1x128xf32>, vector<1x128xf32>, vector<1x128xf32>, vector<1x128xf32>, vector<1x128xf32> -> vector<1x640xf32>
    %c0_51 = arith.constant 0 : index
    %c0_52 = arith.constant 0 : index
    %95 = vector.load %arg5[%c0_51, %c0_52] : memref<640x256xf32, #tpu.memory_space<vmem>>, vector<640x256xf32>
    %cst_53 = arith.constant dense<0.000000e+00> : vector<1x256xf32>
    %96 = tpu.matmul %94, %95, %cst_53 {dimension_numbers = #tpu.dot_dimension_numbers<[1], [0], [0], [1], [0, 0, 1, 1], [], []>} : vector<1x640xf32>, vector<640x256xf32>, vector<1x256xf32> -> vector<1x256xf32>
    %97 = tpu.concatenate %96, %59 in 0 : vector<1x256xf32>, vector<7x256xf32> -> vector<8x256xf32>
    %c0_54 = arith.constant 0 : index
    %c0_55 = arith.constant 0 : index
    %98 = vector.load %arg6[%c0_54, %c0_55] : memref<1x256xf32, #tpu.memory_space<vmem>>, vector<1x256xf32>
    %99 = vector.broadcast %98 : vector<1x256xf32> to vector<8x256xf32>
    %100 = arith.addf %97, %99 : vector<8x256xf32>
    %cst_56 = arith.constant 0.000000e+00 : f32
    %101 = vector.broadcast %cst_56 : f32 to vector<8x256xf32>
    %102 = arith.cmpf oge, %100, %101 : vector<8x256xf32>
    %cst_57 = arith.constant 1.000000e-01 : f32
    %103 = vector.broadcast %cst_57 : f32 to vector<8x256xf32>
    %104 = arith.mulf %103, %100 : vector<8x256xf32>
    %105 = arith.select %102, %100, %104 : vector<8x256xi1>, vector<8x256xf32>
    %c0_58 = arith.constant 0 : index
    %c0_59 = arith.constant 0 : index
    %c0_60 = arith.constant 0 : index
    %106 = vector.load %arg7[%c0_58, %c0_59, %c0_60] : memref<1x8x256xf32, #tpu.memory_space<vmem>>, vector<1x8x256xf32>
    %107 = vector.shape_cast %106 : vector<1x8x256xf32> to vector<8x256xf32>
    %108 = vector.shape_cast %105 : vector<8x256xf32> to vector<1x8x256xf32>
    tpu.vector_store %arg7[%c0_58, %c0_59, %c0_60], %108 {strides = array<i32>} : memref<1x8x256xf32, #tpu.memory_space<vmem>>, vector<1x8x256xf32>,
    return
  }
  func.func @transform_0(%arg0: i32, %arg1: i32) -> (i32, i32, i32) {
    %c0_i32 = arith.constant 0 : i32
    %c0_i32_0 = arith.constant 0 : i32
    return %arg0, %arg1, %c0_i32 : i32, i32, i32
  }
  func.func @transform_1(%arg0: i32, %arg1: i32) -> (i32, i32, i32) {
    %c3_i32 = arith.constant 3 : i32
    %0 = arith.muli %arg1, %c3_i32 : i32
    %c1_i32 = arith.constant 1 : i32
    %1 = arith.subi %0, %c1_i32 : i32
    %c0_i32 = arith.constant 0 : i32
    %2 = arith.maxsi %1, %c0_i32 : i32
    %c0_i32_0 = arith.constant 0 : i32
    %c0_i32_1 = arith.constant 0 : i32
    return %arg0, %2, %c0_i32_0 : i32, i32, i32
  }
  func.func @transform_2(%arg0: i32, %arg1: i32) -> (i32, i32, i32) {
    %c1_i32 = arith.constant 1 : i32
    %0 = arith.addi %arg1, %c1_i32 : i32
    %c3_i32 = arith.constant 3 : i32
    %1 = arith.muli %0, %c3_i32 : i32
    %c0_i32 = arith.constant 0 : i32
    %c0_i32_0 = arith.constant 0 : i32
    return %arg0, %1, %c0_i32 : i32, i32, i32
  }
  func.func @transform_3(%arg0: i32, %arg1: i32) -> (i32, i32) {
    %c0_i32 = arith.constant 0 : i32
    %c0_i32_0 = arith.constant 0 : i32
    %c0_i32_1 = arith.constant 0 : i32
    return %c0_i32, %c0_i32_0 : i32, i32
  }
  func.func @transform_4(%arg0: i32, %arg1: i32) -> (i32, i32) {
    %c0_i32 = arith.constant 0 : i32
    %c0_i32_0 = arith.constant 0 : i32
    %c0_i32_1 = arith.constant 0 : i32
    return %c0_i32, %c0_i32_0 : i32, i32
  }
  func.func @transform_5(%arg0: i32, %arg1: i32) -> (i32, i32, i32) {
    %c0_i32 = arith.constant 0 : i32
    %c0_i32_0 = arith.constant 0 : i32
    return %arg0, %arg1, %c0_i32 : i32, i32, i32
  }
}

module attributes {stable_mosaic.version = 11 : i64} {
  func.func @_conv_k1_kernel(%arg0: i32, %arg1: i32, %arg2: memref<1x8x256xf32, #tpu.memory_space<vmem>>, %arg3: memref<1x8x256xf32, #tpu.memory_space<vmem>>, %arg4: memref<1x8x256xf32, #tpu.memory_space<vmem>>, %arg5: memref<768x1xf32, #tpu.memory_space<vmem>>, %arg6: memref<1x1xf32, #tpu.memory_space<vmem>>, %arg7: memref<1x8x1xf32, #tpu.memory_space<vmem>>) attributes {dimension_semantics = [#tpu.dimension_semantics<parallel>, #tpu.dimension_semantics<parallel>], iteration_bounds = array<i64: 8, 1>, scalar_prefetch = 0 : i64, scratch_operands = 0 : i64, tpu.core_type = #tpu.core_type<tc>, window_params = [{transform_indices = @transform_0, window_bounds = array<i64: 1, 8, 256>}, {transform_indices = @transform_1, window_bounds = array<i64: 1, 8, 256>}, {transform_indices = @transform_2, window_bounds = array<i64: 1, 8, 256>}, {pipeline_mode = #tpu.pipeline_mode<synchronous>, transform_indices = @transform_3, window_bounds = array<i64: 768, 1>}, {pipeline_mode = #tpu.pipeline_mode<synchronous>, transform_indices = @transform_4, window_bounds = array<i64: 1, 1>}, {transform_indices = @transform_5, window_bounds = array<i64: 1, 8, 1>}]} {
    %c8_i32 = arith.constant 8 : i32
    %0 = arith.muli %arg1, %c8_i32 : i32
    %1 = tpu.iota {dimensions = array<i32: 0>} : vector<6x1xi32>
    %c1_i32 = arith.constant 1 : i32
    %2 = vector.broadcast %c1_i32 : i32 to vector<6x1xi32>
    %3 = arith.muli %1, %2 : vector<6x1xi32>
    %c0_i32 = arith.constant 0 : i32
    %4 = arith.addi %0, %c0_i32 : i32
    %5 = vector.broadcast %4 : i32 to vector<6x1xi32>
    %6 = arith.addi %3, %5 : vector<6x1xi32>
    %c0 = arith.constant 0 : index
    %c0_0 = arith.constant 0 : index
    %c0_1 = arith.constant 0 : index
    %7 = vector.load %arg2[%c0, %c0_0, %c0_1] : memref<1x8x256xf32, #tpu.memory_space<vmem>>, vector<1x6x256xf32>
    %8 = vector.shape_cast %7 : vector<1x6x256xf32> to vector<6x256xf32>
    %c0_i32_2 = arith.constant 0 : i32
    %9 = vector.broadcast %c0_i32_2 : i32 to vector<6x1xi32>
    %10 = arith.addi %6, %9 : vector<6x1xi32>
    %c1_i32_3 = arith.constant 1 : i32
    %11 = vector.broadcast %c1_i32_3 : i32 to vector<6x1xi32>
    %12 = arith.cmpi slt, %10, %11 : vector<6x1xi32>
    %cst = arith.constant 0.000000e+00 : f32
    %13 = vector.broadcast %cst : f32 to vector<6x256xf32>
    %14 = vector.shape_cast %12 : vector<6x1xi1> to vector<6x1xi1>
    %15 = vector.broadcast %14 : vector<6x1xi1> to vector<6x256xi1>
    %16 = arith.select %15, %8, %13 : vector<6x256xi1>, vector<6x256xf32>
    %c0_4 = arith.constant 0 : index
    %c1 = arith.constant 1 : index
    %c0_5 = arith.constant 0 : index
    %17 = vector.load %arg2[%c0_4, %c1, %c0_5] : memref<1x8x256xf32, #tpu.memory_space<vmem>>, vector<1x6x256xf32>
    %18 = vector.shape_cast %17 : vector<1x6x256xf32> to vector<6x256xf32>
    %c1_i32_6 = arith.constant 1 : i32
    %19 = vector.broadcast %c1_i32_6 : i32 to vector<6x1xi32>
    %20 = arith.addi %6, %19 : vector<6x1xi32>
    %c1_i32_7 = arith.constant 1 : i32
    %21 = vector.broadcast %c1_i32_7 : i32 to vector<6x1xi32>
    %22 = arith.cmpi slt, %20, %21 : vector<6x1xi32>
    %cst_8 = arith.constant 0.000000e+00 : f32
    %23 = vector.broadcast %cst_8 : f32 to vector<6x256xf32>
    %24 = vector.shape_cast %22 : vector<6x1xi1> to vector<6x1xi1>
    %25 = vector.broadcast %24 : vector<6x1xi1> to vector<6x256xi1>
    %26 = arith.select %25, %18, %23 : vector<6x256xi1>, vector<6x256xf32>
    %c0_9 = arith.constant 0 : index
    %c2 = arith.constant 2 : index
    %c0_10 = arith.constant 0 : index
    %27 = vector.load %arg2[%c0_9, %c2, %c0_10] : memref<1x8x256xf32, #tpu.memory_space<vmem>>, vector<1x6x256xf32>
    %28 = vector.shape_cast %27 : vector<1x6x256xf32> to vector<6x256xf32>
    %c2_i32 = arith.constant 2 : i32
    %29 = vector.broadcast %c2_i32 : i32 to vector<6x1xi32>
    %30 = arith.addi %6, %29 : vector<6x1xi32>
    %c1_i32_11 = arith.constant 1 : i32
    %31 = vector.broadcast %c1_i32_11 : i32 to vector<6x1xi32>
    %32 = arith.cmpi slt, %30, %31 : vector<6x1xi32>
    %cst_12 = arith.constant 0.000000e+00 : f32
    %33 = vector.broadcast %cst_12 : f32 to vector<6x256xf32>
    %34 = vector.shape_cast %32 : vector<6x1xi1> to vector<6x1xi1>
    %35 = vector.broadcast %34 : vector<6x1xi1> to vector<6x256xi1>
    %36 = arith.select %35, %28, %33 : vector<6x256xi1>, vector<6x256xf32>
    %37 = tpu.concatenate %16, %26, %36 in 1 : vector<6x256xf32>, vector<6x256xf32>, vector<6x256xf32> -> vector<6x768xf32>
    %c0_13 = arith.constant 0 : index
    %c0_14 = arith.constant 0 : index
    %38 = vector.load %arg5[%c0_13, %c0_14] : memref<768x1xf32, #tpu.memory_space<vmem>>, vector<768x1xf32>
    %cst_15 = arith.constant dense<0.000000e+00> : vector<6x1xf32>
    %39 = tpu.matmul %37, %38, %cst_15 {dimension_numbers = #tpu.dot_dimension_numbers<[1], [0], [0], [1], [0, 0, 1, 1], [], []>} : vector<6x768xf32>, vector<768x1xf32>, vector<6x1xf32> -> vector<6x1xf32>
    %c0_16 = arith.constant 0 : index
    %c7 = arith.constant 7 : index
    %c0_17 = arith.constant 0 : index
    %40 = vector.load %arg3[%c0_16, %c7, %c0_17] : memref<1x8x256xf32, #tpu.memory_space<vmem>>, vector<1x1x256xf32>
    %41 = vector.shape_cast %40 : vector<1x1x256xf32> to vector<1x256xf32>
    %c0_i32_18 = arith.constant 0 : i32
    %42 = arith.cmpi sgt, %arg1, %c0_i32_18 : i32
    %c-1_i32 = arith.constant -1 : i32
    %43 = arith.addi %0, %c-1_i32 : i32
    %c1_i32_19 = arith.constant 1 : i32
    %44 = arith.cmpi slt, %43, %c1_i32_19 : i32
    %45 = arith.andi %42, %44 : i1
    %cst_20 = arith.constant 0.000000e+00 : f32
    %46 = vector.broadcast %cst_20 : f32 to vector<1x256xf32>
    %47 = arith.select %45, %41, %46 : vector<1x256xf32>
    %c0_21 = arith.constant 0 : index
    %c0_22 = arith.constant 0 : index
    %c0_23 = arith.constant 0 : index
    %48 = vector.load %arg2[%c0_21, %c0_22, %c0_23] : memref<1x8x256xf32, #tpu.memory_space<vmem>>, vector<1x1x256xf32>
    %49 = vector.shape_cast %48 : vector<1x1x256xf32> to vector<1x256xf32>
    %c0_i32_24 = arith.constant 0 : i32
    %50 = arith.addi %0, %c0_i32_24 : i32
    %c1_i32_25 = arith.constant 1 : i32
    %51 = arith.cmpi slt, %50, %c1_i32_25 : i32
    %cst_26 = arith.constant 0.000000e+00 : f32
    %52 = vector.broadcast %cst_26 : f32 to vector<1x256xf32>
    %53 = arith.select %51, %49, %52 : vector<1x256xf32>
    %c0_27 = arith.constant 0 : index
    %c1_28 = arith.constant 1 : index
    %c0_29 = arith.constant 0 : index
    %54 = vector.load %arg2[%c0_27, %c1_28, %c0_29] : memref<1x8x256xf32, #tpu.memory_space<vmem>>, vector<1x1x256xf32>
    %55 = vector.shape_cast %54 : vector<1x1x256xf32> to vector<1x256xf32>
    %c1_i32_30 = arith.constant 1 : i32
    %56 = arith.addi %0, %c1_i32_30 : i32
    %c1_i32_31 = arith.constant 1 : i32
    %57 = arith.cmpi slt, %56, %c1_i32_31 : i32
    %cst_32 = arith.constant 0.000000e+00 : f32
    %58 = vector.broadcast %cst_32 : f32 to vector<1x256xf32>
    %59 = arith.select %57, %55, %58 : vector<1x256xf32>
    %60 = tpu.concatenate %47, %53, %59 in 1 : vector<1x256xf32>, vector<1x256xf32>, vector<1x256xf32> -> vector<1x768xf32>
    %c0_33 = arith.constant 0 : index
    %c0_34 = arith.constant 0 : index
    %61 = vector.load %arg5[%c0_33, %c0_34] : memref<768x1xf32, #tpu.memory_space<vmem>>, vector<768x1xf32>
    %cst_35 = arith.constant dense<0.000000e+00> : vector<1x1xf32>
    %62 = tpu.matmul %60, %61, %cst_35 {dimension_numbers = #tpu.dot_dimension_numbers<[1], [0], [0], [1], [0, 0, 1, 1], [], []>} : vector<1x768xf32>, vector<768x1xf32>, vector<1x1xf32> -> vector<1x1xf32>
    %c0_36 = arith.constant 0 : index
    %c6 = arith.constant 6 : index
    %c0_37 = arith.constant 0 : index
    %63 = vector.load %arg2[%c0_36, %c6, %c0_37] : memref<1x8x256xf32, #tpu.memory_space<vmem>>, vector<1x1x256xf32>
    %64 = vector.shape_cast %63 : vector<1x1x256xf32> to vector<1x256xf32>
    %c6_i32 = arith.constant 6 : i32
    %65 = arith.addi %0, %c6_i32 : i32
    %c1_i32_38 = arith.constant 1 : i32
    %66 = arith.cmpi slt, %65, %c1_i32_38 : i32
    %cst_39 = arith.constant 0.000000e+00 : f32
    %67 = vector.broadcast %cst_39 : f32 to vector<1x256xf32>
    %68 = arith.select %66, %64, %67 : vector<1x256xf32>
    %c0_40 = arith.constant 0 : index
    %c7_41 = arith.constant 7 : index
    %c0_42 = arith.constant 0 : index
    %69 = vector.load %arg2[%c0_40, %c7_41, %c0_42] : memref<1x8x256xf32, #tpu.memory_space<vmem>>, vector<1x1x256xf32>
    %70 = vector.shape_cast %69 : vector<1x1x256xf32> to vector<1x256xf32>
    %c7_i32 = arith.constant 7 : i32
    %71 = arith.addi %0, %c7_i32 : i32
    %c1_i32_43 = arith.constant 1 : i32
    %72 = arith.cmpi slt, %71, %c1_i32_43 : i32
    %cst_44 = arith.constant 0.000000e+00 : f32
    %73 = vector.broadcast %cst_44 : f32 to vector<1x256xf32>
    %74 = arith.select %72, %70, %73 : vector<1x256xf32>
    %c0_45 = arith.constant 0 : index
    %c0_46 = arith.constant 0 : index
    %c0_47 = arith.constant 0 : index
    %75 = vector.load %arg4[%c0_45, %c0_46, %c0_47] : memref<1x8x256xf32, #tpu.memory_space<vmem>>, vector<1x1x256xf32>
    %76 = vector.shape_cast %75 : vector<1x1x256xf32> to vector<1x256xf32>
    %c8_i32_48 = arith.constant 8 : i32
    %77 = arith.addi %0, %c8_i32_48 : i32
    %c1_i32_49 = arith.constant 1 : i32
    %78 = arith.cmpi slt, %77, %c1_i32_49 : i32
    %cst_50 = arith.constant 0.000000e+00 : f32
    %79 = vector.broadcast %cst_50 : f32 to vector<1x256xf32>
    %80 = arith.select %78, %76, %79 : vector<1x256xf32>
    %81 = tpu.concatenate %68, %74, %80 in 1 : vector<1x256xf32>, vector<1x256xf32>, vector<1x256xf32> -> vector<1x768xf32>
    %c0_51 = arith.constant 0 : index
    %c0_52 = arith.constant 0 : index
    %82 = vector.load %arg5[%c0_51, %c0_52] : memref<768x1xf32, #tpu.memory_space<vmem>>, vector<768x1xf32>
    %cst_53 = arith.constant dense<0.000000e+00> : vector<1x1xf32>
    %83 = tpu.matmul %81, %82, %cst_53 {dimension_numbers = #tpu.dot_dimension_numbers<[1], [0], [0], [1], [0, 0, 1, 1], [], []>} : vector<1x768xf32>, vector<768x1xf32>, vector<1x1xf32> -> vector<1x1xf32>
    %84 = tpu.concatenate %62, %39, %83 in 0 : vector<1x1xf32>, vector<6x1xf32>, vector<1x1xf32> -> vector<8x1xf32>
    %c0_54 = arith.constant 0 : index
    %c0_55 = arith.constant 0 : index
    %85 = vector.load %arg6[%c0_54, %c0_55] : memref<1x1xf32, #tpu.memory_space<vmem>>, vector<1x1xf32>
    %86 = vector.broadcast %85 : vector<1x1xf32> to vector<8x1xf32>
    %87 = arith.addf %84, %86 : vector<8x1xf32>
    %c0_56 = arith.constant 0 : index
    %c0_57 = arith.constant 0 : index
    %c0_58 = arith.constant 0 : index
    %88 = vector.load %arg7[%c0_56, %c0_57, %c0_58] : memref<1x8x1xf32, #tpu.memory_space<vmem>>, vector<1x8x1xf32>
    %89 = vector.shape_cast %88 : vector<1x8x1xf32> to vector<8x1xf32>
    %90 = vector.shape_cast %87 : vector<8x1xf32> to vector<1x8x1xf32>
    tpu.vector_store %arg7[%c0_56, %c0_57, %c0_58], %90 {strides = array<i32>} : memref<1x8x1xf32, #tpu.memory_space<vmem>>, vector<1x8x1xf32>,
    return
  }
  func.func @transform_0(%arg0: i32, %arg1: i32) -> (i32, i32, i32) {
    %c0_i32 = arith.constant 0 : i32
    %c0_i32_0 = arith.constant 0 : i32
    return %arg0, %arg1, %c0_i32 : i32, i32, i32
  }
  func.func @transform_1(%arg0: i32, %arg1: i32) -> (i32, i32, i32) {
    %c1_i32 = arith.constant 1 : i32
    %0 = arith.muli %arg1, %c1_i32 : i32
    %c1_i32_0 = arith.constant 1 : i32
    %1 = arith.subi %0, %c1_i32_0 : i32
    %c0_i32 = arith.constant 0 : i32
    %2 = arith.maxsi %1, %c0_i32 : i32
    %c0_i32_1 = arith.constant 0 : i32
    %c0_i32_2 = arith.constant 0 : i32
    return %arg0, %2, %c0_i32_1 : i32, i32, i32
  }
  func.func @transform_2(%arg0: i32, %arg1: i32) -> (i32, i32, i32) {
    %c1_i32 = arith.constant 1 : i32
    %0 = arith.addi %arg1, %c1_i32 : i32
    %c1_i32_0 = arith.constant 1 : i32
    %1 = arith.muli %0, %c1_i32_0 : i32
    %c0_i32 = arith.constant 0 : i32
    %c0_i32_1 = arith.constant 0 : i32
    return %arg0, %1, %c0_i32 : i32, i32, i32
  }
  func.func @transform_3(%arg0: i32, %arg1: i32) -> (i32, i32) {
    %c0_i32 = arith.constant 0 : i32
    %c0_i32_0 = arith.constant 0 : i32
    %c0_i32_1 = arith.constant 0 : i32
    return %c0_i32, %c0_i32_0 : i32, i32
  }
  func.func @transform_4(%arg0: i32, %arg1: i32) -> (i32, i32) {
    %c0_i32 = arith.constant 0 : i32
    %c0_i32_0 = arith.constant 0 : i32
    %c0_i32_1 = arith.constant 0 : i32
    return %c0_i32, %c0_i32_0 : i32, i32
  }
  func.func @transform_5(%arg0: i32, %arg1: i32) -> (i32, i32, i32) {
    %c0_i32 = arith.constant 0 : i32
    %c0_i32_0 = arith.constant 0 : i32
    return %arg0, %arg1, %c0_i32 : i32, i32, i32
  }
}

</mosaic_0001>

<bundles_post_ra>
// kernel: discriminator_p_forward.7
= control target key start
LH: loop header
LB: loop body
LE: loop exit
PB: predicated region body
PF: predicated region fallthrough
CT: control target
= control target key end

     0   :  { %s983_s18 = smov 0   ;;  %s985_s19 = smov 0   ;;  %s1099_s0 = inlined_call_operand.vmem [shape: f32[8,32,16], index: 0, kind: input, shape index: {}, may-alias: {0,1,2}]   ;;  %s1100_s1 = inlined_call_operand.vmem [shape: f32[8,32,16], index: 1, kind: input, shape index: {}, may-alias: {0,1,2}]   ;;  %s1101_s2 = inlined_call_operand.vmem [shape: f32[8,32,16], index: 2, kind: input, shape index: {}, may-alias: {0,1,2}]   ;;  %s1102_s3 = inlined_call_operand.vmem [shape: f32[80,32], index: 3, kind: input, shape index: {}]   ;;  %s1103_s4 = inlined_call_operand.vmem [shape: f32[1,32], index: 4, kind: input, shape index: {}]   ;;  %s1104_s5 = inlined_call_operand.vmem [shape: f32[8,32,32], index: 5, kind: output, shape index: {}]  }
   0x1   :  { %s987_s20 = smov 0  }
   0x2 LB: > { %s27_s1 = sadd.s32 1, %s941_s19  ;;  %p805_p0 = scmp.ge.s32.totalorder %s945_s20, 1  ;;  %s945_s20 = sphi %s987_s20, %s15_s20   ;;  %s941_s19 = sphi %s985_s19, %s1106_s19   ;;  %s937_s18 = sphi %s983_s18, %s1105_s18  }
   0x3   : > { %p29_p1 = scmp.ge.s32.totalorder %s27_s1, 8  ;;  %p270_p2 = scmp.lt.s32.totalorder %s945_s20, 9 }
   0x5   : > { %s1108_s1 = smov (%p29_p1, %s27_s1), 0  ;;  %p271_p3 = pnand %p805_p0, %p270_p2 }
   0x6   : > { %p336_p4 = scmp.lt.s32.totalorder (!%p271_p3), %s937_s18, 7  ;;  %s948_s22 = smov (!%p271_p3), 16  }
   0x7   : > { %274 = sbr.rel (%p271_p3) target bundleno = 353 (0x161), region = 40  ;;  %s949_s8 = smov (!%p271_p3), 32  }
   0x8   : > { %s950_s13 = smov (!%p271_p3), 48   ;;  %s951_s2 = smov (!%p271_p3), 64  }
   0xc   : > { %v386_v0 = vlaneseq  ;;  %v459_v1 = vld [vmem:[%s1102_s3 + $0x48] sm:$0xff]  ;;  %v947_v2 = vmov 0.0   ;;  %v458_v3 = vld [vmem:[%s1102_s3 + $0x40] sm:$0xff]  ;;  %s1110_s18 = smov (!%p336_p4, %s937_s18), 7  ;;  %v457_v5 = vld [vmem:[%s1102_s3 + $0x38] sm:$0xff]  ;;  %vm952_vm5 = vmmov 0  }
   0xd   : > { %573 = vrot.lane.b32.xlu1 %v947_v2, %s948_s22  ;;  %847 = vmatprep.subr.mxu0 %v947_v2  ;;  %s822_s27 = sshll.u32 %s1110_s18, 5  ;;  %v456_v7 = vld [vmem:[%s1102_s3 + $0x30] sm:$0xff]  ;;  %v455_v11 = vld [vmem:[%s1102_s3 + $0x28] sm:$0xff]  ;;  %v454_v18 = vld [vmem:[%s1102_s3 + $0x20] sm:$0xff]  ;;  %vm442_vm6 = vcmask 130048   ;;  %vm444_vm7 = vcmask 261120  }
   0xe   : > { %v387_v4 = vshrl.u32 %v386_v0, 7  ;;  %848 = vmatpush3.msra.mxu0 %v459_v1  ;;  %870 = vmatprep.subr.mxu1 %v947_v2  ;;  %s1024_s30 = scalar_lea.vmem %s1099_s0, %s822_s27  ;;  %v453_v23 = vld [vmem:[%s1102_s3 + $0x18] sm:$0xff]  ;;  %v452_v27 = vld [vmem:[%s1102_s3 + $0x10] sm:$0xff]  ;;  %v451_v29 = vld [vmem:[%s1102_s3 + $0x8] sm:$0xff]  ;;  %vm446_vm8 = vcmask 392192   ;;  %vm448_vm9 = vcmask 523264  }
   0xf   : > { %849 = vmatprep.subr.mxu0 %v947_v2  ;;  %871 = vmatpush3.msra.mxu1 %v459_v1  ;;  %v553_v9 = vld [vmem:[%s1024_s30] sm:$0x1]  ;;  %v813_v10 = vld [vmem:[%s1024_s30 + $0x2] ss:$3 sm:$0x7f]  ;;  %vm460_vm10 = vcmask 654336  }
  0x10   : > { %v388_v6 = vmul.u32 3, %v387_v4  ;;  %850 = vmatpush3.msra.mxu0 %v458_v3  ;;  %872 = vmatprep.subr.mxu1 %v947_v2  ;;  %v815_v14 = vld [vmem:[%s1024_s30 + $0x4] ss:$3 sm:$0x7f]  ;;  %v565_v25 = vld [vmem:[%s1024_s30 + $0x2] sm:$0x1] }
  0x11   : > { %851 = vmatprep.subr.mxu0 %v947_v2  ;;  %873 = vmatpush3.msra.mxu1 %v458_v3  ;;  %v814_v16 = vld [vmem:[%s1024_s30 + $0x3] ss:$3 sm:$0x7f]  ;;  %v812_v19 = vld [vmem:[%s1024_s30 + $0x1] ss:$3 sm:$0x7f] }
  0x12   : > { %v391_v8 = vadd.s32 1, %v388_v6  ;;  %852 = vmatpush3.msra.mxu0 %v457_v5  ;;  %874 = vmatprep.subr.mxu1 %v947_v2  ;;  %v816_v26 = vld [vmem:[%s1024_s30 + $0x5] ss:$3 sm:$0x7f]  ;;  %v559_v31 = vld [vmem:[%s1024_s30 + $0x1] sm:$0x1]  ;;  %s384_s30 = scalar_lea.vmem %s1104_s5, %s822_s27 }
  0x13   : > { %577 = vrot.lane.b32.xlu1 %v553_v9, %s949_s8  ;;  %853 = vmatprep.subr.mxu0 %v947_v2  ;;  %v450_v30 = vld [vmem:[%s1102_s3] sm:$0xff]  ;;  %vm668_vm11 = vcmask 1040384  }
  0x14   : > { %v400_v12 = vadd.s32 1, %v391_v8  ;;  %v407_v13 = vadd.s32 2, %v391_v8  ;;  %v414_v15 = vadd.s32 3, %v391_v8  ;;  %854 = vmatpush3.msra.mxu0 %v456_v7  ;;  %875 = vmatpush3.msra.mxu1 %v457_v5  ;;  %v421_v17 = vadd.s32 4, %v391_v8  ;;  %v819_v51 = vld [vmem:[%s1103_s4] ss:$0 sm:$0xff] }
  0x15   : > { %855 = vmatprep.subr.mxu0 %v947_v2  ;;  %vm394_vm0 = vcmp.lt.s32.totalorder %v391_v8, 8  ;;  %876 = vmatprep.subr.mxu1 %v947_v2 }
  0x16   : > { %vm401_vm1 = vcmp.lt.s32.totalorder %v400_v12, 8  ;;  %vm408_vm2 = vcmp.lt.s32.totalorder %v407_v13, 8  ;;  %vm415_vm3 = vcmp.lt.s32.totalorder %v414_v15, 8  ;;  %856 = vmatpush3.msra.mxu0 %v455_v11  ;;  %877 = vmatpush3.msra.mxu1 %v456_v7  ;;  %v397_v22 = vsel %vm394_vm0, %v812_v19, 0.0 }
  0x17   : > { %v404_v20 = vsel %vm401_vm1, %v813_v10, 0.0  ;;  %v418_v21 = vsel %vm415_vm3, %v815_v14, 0.0  ;;  %857 = vmatprep.subr.mxu0 %v947_v2  ;;  %878 = vmatprep.subr.mxu1 %v947_v2  ;;  %v411_v24 = vsel %vm408_vm2, %v814_v16, 0.0  ;;  %vm422_vm4 = vcmp.lt.s32.totalorder %v421_v17, 8 }
  0x18   : > { %427 = vrot.lane.b32.xlu0 %v404_v20, %s948_s22  ;;  %435 = vrot.lane.b32.xlu1 %v418_v21, %s950_s13  ;;  %v425_v28 = vsel %vm422_vm4, %v816_v26, 0.0 }
  0x19   : > { %858 = vmatpush3.msra.mxu0 %v454_v18  ;;  %879 = vmatpush3.msra.mxu1 %v455_v11 }
  0x1a   : > { %859 = vmatprep.subr.mxu0 %v947_v2  ;;  %880 = vmatprep.subr.mxu1 %v947_v2 }
  0x1b   : > { %860 = vmatpush3.msra.mxu0 %v453_v23  ;;  %881 = vmatpush3.msra.mxu1 %v454_v18 }
  0x1c   : > { %431 = vrot.lane.b32.xlu0 %v411_v24, %s949_s8  ;;  %585 = vrot.lane.b32.xlu1 %v565_v25, %s951_s2 }
  0x1d   : > { %861 = vmatprep.subr.mxu0 %v947_v2  ;;  %882 = vmatprep.subr.mxu1 %v947_v2 }
  0x1e   : > { %862 = vmatpush3.msra.mxu0 %v452_v27  ;;  %883 = vmatpush3.msra.mxu1 %v453_v23 }
  0x1f   : > { %863 = vmatprep.subr.mxu0 %v947_v2  ;;  %867 = vmatprep.mubr.msk.f32.mxu0 %vm952_vm5, %v947_v2 }
  0x20   : > { %439 = vrot.lane.b32.xlu0 %v425_v28, %s951_s2  ;;  %864 = vmatpush3.msra.mxu0 %v451_v29 }
  0x21   : > { %865 = vmatprep.subr.mxu0 %v947_v2  ;;  %884 = vmatprep.subr.mxu1 %v947_v2 }
  0x22   : > { %866 = vmatpush3.msra.mxu0 %v450_v30  ;;  %885 = vmatpush3.msra.mxu1 %v452_v27 }
  0x23   : > { %886 = vmatprep.subr.mxu1 %v947_v2  ;;  %890 = vmatprep.mubr.msk.f32.mxu1 %vm952_vm5, %v947_v2 }
  0x24   : > { %581 = vrot.lane.b32.xlu0 %v559_v31, %s950_s13  ;;  %887 = vmatpush3.msra.mxu1 %v451_v29 }
  0x25   : > { %888 = vmatprep.subr.mxu1 %v947_v2 }
  0x26   : > { %889 = vmatpush3.msra.mxu1 %v450_v30 }
  0x7f   : > { %v574_v32 = vpop.permute.xlu1 %573 }
  0x80   : > { %v588_v41 = vsel %vm442_vm6, 0.0, %v574_v32 }
  0x85   : > { %v578_v33 = vpop.permute.xlu1 %577 }
  0x86   : > { %v589_v44 = vsel %vm444_vm7, %v588_v41, %v578_v33 }
  0x8a   : > { %v428_v34 = vpop.permute.xlu0 %427  ;;  %v436_v38 = vpop.permute.xlu1 %435 }
  0x8b   : > { %v443_v35 = vsel %vm442_vm6, %v397_v22, %v428_v34 }
  0x8e   : > { %v432_v36 = vpop.permute.xlu0 %431  ;;  %v586_v43 = vpop.permute.xlu1 %585 }
  0x8f   : > { %v445_v37 = vsel %vm444_vm7, %v443_v35, %v432_v36 }
  0x90   : > { %v447_v39 = vsel %vm446_vm8, %v445_v37, %v436_v38 }
  0x92   : > { %v440_v40 = vpop.permute.xlu0 %439 }
  0x93   : > { %v449_v42 = vsel %vm448_vm9, %v447_v39, %v440_v40 }
  0x94   : > { %868 = vmatmul.mubr.msk.f32.vlgmr.msra.gmra.mxu0 %vm460_vm10, %v449_v42 }
  0x96   : > { %v582_v45 = vpop.permute.xlu0 %581 }
  0x97   : > { %v590_v46 = vsel %vm446_vm8, %v589_v44, %v582_v45 }
  0x98   : > { %v591_v47 = vsel %vm448_vm9, %v590_v46, %v586_v43 }
  0x99   : > { %891 = vmatmul.mubr.msk.f32.vlgmr.msra.gmra.mxu1 %vm460_vm10, %v591_v47 }
 0x154   : > { %v530_v48 = vpop.f32.mrf.mxu0 }
 0x155   : > { %v666_v50 = vrot.slane %v530_v48, 7 }
 0x156   : > { %v869_v49 = vpop.f32.mrf.mxu0 }
 0x159   : > { %v661_v52 = vpop.f32.mrf.mxu1 }
 0x15a   : > { %v669_v53 = vsel %vm668_vm11, %v661_v52, %v666_v50 }
 0x15b   : > { %v677_v54 = vadd.f32 %v819_v51, %v669_v53  ;;  %v892_v55 = vpop.f32.mrf.mxu1 }
 0x15d   : > { %vm678_vm12 = vcmp.ge.f32.partialorder %v677_v54, 0.0  ;;  %v679_v56 = vmul.f32 0.1, %v677_v54 }
 0x15f   : > { %v680_v57 = vsel %vm678_vm12, %v677_v54, %v679_v56 }
 0x160   : > { %681 = vst.msk [vmem:[%s384_s30] sm:$0xff] %vm444_vm7, %v680_v57 }
 0x161 PF: > { %s15_s20 = sadd.s32 1, %s945_s20   ;;  %s1105_s18 = smov %s941_s19 }
 0x162   : > { %p12_p5 = scmp.ge.s32.totalorder %s15_s20, 10   ;;  %s1106_s19 = smov %s1108_s1 }
 0x164   :  { %14 = sbr.rel (!%p12_p5) target bundleno = 2 (0x2), region = 81 }

// kernel: discriminator_p_forward.8
= control target key start
LH: loop header
LB: loop body
LE: loop exit
PB: predicated region body
PF: predicated region fallthrough
CT: control target
= control target key end

     0   :  { %s919_s18 = smov 0   ;;  %s921_s19 = smov 0   ;;  %s1092_s0 = inlined_call_operand.vmem [shape: f32[8,32,32], index: 0, kind: input, shape index: {}, may-alias: {0,1,2}]   ;;  %s1093_s1 = inlined_call_operand.vmem [shape: f32[8,32,32], index: 1, kind: input, shape index: {}, may-alias: {0,1,2}]   ;;  %s1094_s2 = inlined_call_operand.vmem [shape: f32[8,32,32], index: 2, kind: input, shape index: {}, may-alias: {0,1,2}]   ;;  %s1095_s3 = inlined_call_operand.vmem [shape: f32[160,64], index: 3, kind: input, shape index: {}]   ;;  %s1096_s4 = inlined_call_operand.vmem [shape: f32[1,64], index: 4, kind: input, shape index: {}]   ;;  %s1097_s5 = inlined_call_operand.vmem [shape: f32[8,32,64], index: 5, kind: output, shape index: {}]  }
   0x1   :  { %s923_s20 = smov 0  }
   0x2 LB: > { %s27_s1 = sadd.s32 1, %s879_s19  ;;  %p803_p0 = scmp.ge.s32.totalorder %s883_s20, 1  ;;  %s883_s20 = sphi %s923_s20, %s15_s20   ;;  %s879_s19 = sphi %s921_s19, %s1099_s19   ;;  %s875_s18 = sphi %s919_s18, %s1098_s18  }
   0x3   : > { %p29_p1 = scmp.ge.s32.totalorder %s27_s1, 8  ;;  %p270_p2 = scmp.lt.s32.totalorder %s883_s20, 9 }
   0x5   : > { %s1101_s1 = smov (%p29_p1, %s27_s1), 0  ;;  %p271_p3 = pnand %p803_p0, %p270_p2 }
   0x6   : > { %p336_p4 = scmp.lt.s32.totalorder (!%p271_p3), %s875_s18, 7  ;;  %s886_s11 = smov (!%p271_p3), 96  }
   0x7   : > { %274 = sbr.rel (%p271_p3) target bundleno = 351 (0x15f), region = 40  ;;  %s887_s14 = smov (!%p271_p3), 32  }
   0x8   : > { %s888_s21 = smov (!%p271_p3), 64  }
   0xc   : > { %v386_v0 = vlaneseq  ;;  %v459_v1 = vld [vmem:[%s1095_s3 + $0x78] sm:$0xff]  ;;  %v885_v2 = vmov 0.0   ;;  %v458_v3 = vld [vmem:[%s1095_s3 + $0x70] sm:$0xff]  ;;  %s1103_s18 = smov (!%p336_p4, %s875_s18), 7  ;;  %v457_v5 = vld [vmem:[%s1095_s3 + $0x68] sm:$0xff]  ;;  %vm438_vm5 = vcmask 261120  }
   0xd   : > { %467 = vmatprep.subr.mxu0 %v885_v2  ;;  %593 = vmatprep.subr.mxu1 %v885_v2  ;;  %s820_s26 = sshll.u32 %s1103_s18, 5  ;;  %v456_v7 = vld [vmem:[%s1095_s3 + $0x60] sm:$0xff]  ;;  %v455_v9 = vld [vmem:[%s1095_s3 + $0x58] sm:$0xff]  ;;  %v454_v16 = vld [vmem:[%s1095_s3 + $0x50] sm:$0xff]  ;;  %vm440_vm6 = vcmask 523264   ;;  %vm442_vm7 = vcmask 785408  }
   0xe   : > { %v387_v4 = vshrl.u32 %v386_v0, 7  ;;  %468 = vmatpush1.msra.mxu0 %v459_v1  ;;  %594 = vmatpush1.msra.mxu1 %v459_v1  ;;  %s958_s29 = scalar_lea.vmem %s1092_s0, %s820_s26  ;;  %v453_v22 = vld [vmem:[%s1095_s3 + $0x48] sm:$0xff]  ;;  %v452_v27 = vld [vmem:[%s1095_s3 + $0x40] sm:$0xff]  ;;  %v451_v28 = vld [vmem:[%s1095_s3 + $0x38] sm:$0xff]  ;;  %vm666_vm8 = vcmask 1040384   ;;  %s384_s27 = scalar_lea.vmem %s1097_s5, %s820_s26 }
   0xf   : > { %469 = vmatprep.subr.mxu0 %v885_v2  ;;  %595 = vmatprep.subr.mxu1 %v885_v2  ;;  %v811_v10 = vld [vmem:[%s958_s29 + $0x2] ss:$3 sm:$0x7f]  ;;  %v813_v11 = vld [vmem:[%s958_s29 + $0x4] ss:$3 sm:$0x7f] }
  0x10   : > { %v388_v6 = vmul.u32 3, %v387_v4  ;;  %470 = vmatpush1.msra.mxu0 %v458_v3  ;;  %596 = vmatpush1.msra.mxu1 %v458_v3  ;;  %v812_v14 = vld [vmem:[%s958_s29 + $0x3] ss:$3 sm:$0x7f]  ;;  %v556_v20 = vld [vmem:[%s958_s29] sm:$0x1] }
  0x11   : > { %471 = vmatprep.subr.mxu0 %v885_v2  ;;  %597 = vmatprep.subr.mxu1 %v885_v2  ;;  %v810_v23 = vld [vmem:[%s958_s29 + $0x1] ss:$3 sm:$0x7f]  ;;  %v447_v32 = vld [vmem:[%s1095_s3 + $0x18] sm:$0xff]  ;;  %v568_v43 = vld [vmem:[%s958_s29 + $0x2] sm:$0x1] }
  0x12   : > { %v965_v8 = vadd.s32 1, %v388_v6  ;;  %472 = vmatpush1.msra.mxu0 %v457_v5  ;;  %598 = vmatpush1.msra.mxu1 %v457_v5  ;;  %v562_v24 = vld [vmem:[%s958_s29 + $0x1] sm:$0x1]  ;;  %v450_v29 = vld [vmem:[%s1095_s3 + $0x30] sm:$0xff]  ;;  %v449_v30 = vld [vmem:[%s1095_s3 + $0x28] sm:$0xff] }
  0x13   : > { %473 = vmatprep.subr.mxu0 %v885_v2  ;;  %599 = vmatprep.subr.mxu1 %v885_v2  ;;  %v448_v31 = vld [vmem:[%s1095_s3 + $0x20] sm:$0xff]  ;;  %v446_v33 = vld [vmem:[%s1095_s3 + $0x10] sm:$0xff]  ;;  %v445_v34 = vld [vmem:[%s1095_s3 + $0x8] sm:$0xff] }
  0x14   : > { %v400_v12 = vadd.s32 1, %v965_v8  ;;  %v414_v13 = vadd.s32 3, %v965_v8  ;;  %v407_v15 = vadd.s32 2, %v965_v8  ;;  %474 = vmatpush1.msra.mxu0 %v456_v7  ;;  %600 = vmatpush1.msra.mxu1 %v456_v7  ;;  %vm394_vm3 = vcmp.lt.s32.totalorder %v965_v8, 3  ;;  %v444_v35 = vld [vmem:[%s1095_s3] sm:$0xff]  ;;  %v463_v37 = vld [vmem:[%s1095_s3 + $0x98] sm:$0xff] }
  0x15   : > { %475 = vmatprep.subr.mxu0 %v885_v2  ;;  %601 = vmatprep.subr.mxu1 %v885_v2  ;;  %v996_v25 = vsel %vm394_vm3, %v810_v23, 0.0  ;;  %v421_v36 = vadd.s32 4, %v965_v8  ;;  %v462_v38 = vld [vmem:[%s1095_s3 + $0x90] sm:$0xff]  ;;  %v461_v40 = vld [vmem:[%s1095_s3 + $0x88] sm:$0xff]  ;;  %v460_v41 = vld [vmem:[%s1095_s3 + $0x80] sm:$0xff] }
  0x16   : > { %vm401_vm0 = vcmp.lt.s32.totalorder %v400_v12, 3  ;;  %vm415_vm1 = vcmp.lt.s32.totalorder %v414_v13, 3  ;;  %vm408_vm2 = vcmp.lt.s32.totalorder %v407_v15, 3  ;;  %476 = vmatpush1.msra.mxu0 %v455_v9  ;;  %602 = vmatpush1.msra.mxu1 %v455_v9  ;;  %v814_v39 = vld [vmem:[%s958_s29 + $0x5] ss:$3 sm:$0x7f] }
  0x17   : > { %v404_v17 = vsel %vm401_vm0, %v811_v10, 0.0  ;;  %v418_v18 = vsel %vm415_vm1, %v813_v11, 0.0  ;;  %v411_v19 = vsel %vm408_vm2, %v812_v14, 0.0  ;;  %477 = vmatprep.subr.mxu0 %v885_v2  ;;  %603 = vmatprep.subr.mxu1 %v885_v2  ;;  %vm422_vm4 = vcmp.lt.s32.totalorder %v421_v36, 3  ;;  %v817_v61 = vld [vmem:[%s1096_s4] ss:$0 sm:$0xff] }
  0x18   : > { %v851_v21 = vpack.i.bf16 %v885_v2, %v404_v17  ;;  %435 = vrot.lane.b32.xlu1 %v418_v18, %s886_s11  ;;  %478 = vmatpush1.msra.mxu0 %v454_v16  ;;  %v856_v26 = vpack.i.bf16 %v556_v20, %v411_v19  ;;  %v425_v42 = vsel %vm422_vm4, %v814_v39, 0.0 }
  0x19   : > { %604 = vmatpush1.msra.mxu1 %v454_v16  ;;  %479 = vmatprep.subr.mxu0 %v885_v2 }
  0x1a   : > { %852 = vrot.lane.b32.xlu0 %v851_v21, %s887_s14  ;;  %605 = vmatprep.subr.mxu1 %v885_v2 }
  0x1b   : > { %480 = vmatpush1.msra.mxu0 %v453_v22  ;;  %606 = vmatpush1.msra.mxu1 %v453_v22 }
  0x1c   : > { %584 = vrot.lane.b32.xlu1 %v562_v24, %s886_s11  ;;  %481 = vmatprep.subr.mxu0 %v885_v2 }
  0x1d   : > { %607 = vmatprep.subr.mxu1 %v885_v2  ;;  %482 = vmatpush1.msra.mxu0 %v452_v27 }
  0x1e   : > { %857 = vrot.lane.b32.xlu0 %v856_v26, %s888_s21  ;;  %608 = vmatpush1.msra.mxu1 %v452_v27 }
  0x1f   : > { %483 = vmatprep.subr.mxu0 %v885_v2  ;;  %609 = vmatprep.subr.mxu1 %v885_v2 }
  0x20   : > { %484 = vmatpush1.msra.mxu0 %v451_v28  ;;  %610 = vmatpush1.msra.mxu1 %v451_v28 }
  0x21   : > { %485 = vmatprep.subr.mxu0 %v885_v2  ;;  %611 = vmatprep.subr.mxu1 %v885_v2 }
  0x22   : > { %486 = vmatpush1.msra.mxu0 %v450_v29  ;;  %612 = vmatpush1.msra.mxu1 %v450_v29 }
  0x23   : > { %487 = vmatprep.subr.mxu0 %v885_v2  ;;  %613 = vmatprep.subr.mxu1 %v885_v2 }
  0x24   : > { %488 = vmatpush1.msra.mxu0 %v449_v30  ;;  %614 = vmatpush1.msra.mxu1 %v449_v30 }
  0x25   : > { %489 = vmatprep.subr.mxu0 %v885_v2  ;;  %615 = vmatprep.subr.mxu1 %v885_v2 }
  0x26   : > { %490 = vmatpush1.msra.mxu0 %v448_v31  ;;  %616 = vmatpush1.msra.mxu1 %v448_v31 }
  0x27   : > { %491 = vmatprep.subr.mxu0 %v885_v2  ;;  %617 = vmatprep.subr.mxu1 %v885_v2 }
  0x28   : > { %492 = vmatpush1.msra.mxu0 %v447_v32  ;;  %618 = vmatpush1.msra.mxu1 %v447_v32 }
  0x29   : > { %493 = vmatprep.subr.mxu0 %v885_v2  ;;  %619 = vmatprep.subr.mxu1 %v885_v2 }
  0x2a   : > { %494 = vmatpush1.msra.mxu0 %v446_v33  ;;  %620 = vmatpush1.msra.mxu1 %v446_v33 }
  0x2b   : > { %495 = vmatprep.subr.mxu0 %v885_v2  ;;  %621 = vmatprep.subr.mxu1 %v885_v2 }
  0x2c   : > { %496 = vmatpush1.msra.mxu0 %v445_v34  ;;  %622 = vmatpush1.msra.mxu1 %v445_v34 }
  0x2d   : > { %497 = vmatprep.subr.mxu0 %v885_v2  ;;  %623 = vmatprep.subr.mxu1 %v885_v2 }
  0x2e   : > { %498 = vmatpush1.msra.mxu0 %v444_v35  ;;  %624 = vmatpush1.msra.mxu1 %v444_v35 }
  0x2f   : > { %523 = vmatprep.subr.mxu0 %v885_v2  ;;  %649 = vmatprep.subr.mxu1 %v885_v2 }
  0x30   : > { %524 = vmatpush2.msra.mxu0 %v463_v37  ;;  %650 = vmatpush2.msra.mxu1 %v463_v37 }
  0x31   : > { %525 = vmatprep.subr.mxu0 %v885_v2  ;;  %651 = vmatprep.subr.mxu1 %v885_v2 }
  0x32   : > { %526 = vmatpush2.msra.mxu0 %v462_v38  ;;  %652 = vmatpush2.msra.mxu1 %v462_v38 }
  0x33   : > { %527 = vmatprep.subr.mxu0 %v885_v2  ;;  %653 = vmatprep.subr.mxu1 %v885_v2 }
  0x34   : > { %528 = vmatpush2.msra.mxu0 %v461_v40  ;;  %654 = vmatpush2.msra.mxu1 %v461_v40 }
  0x35   : > { %529 = vmatprep.subr.mxu0 %v885_v2  ;;  %655 = vmatprep.subr.mxu1 %v885_v2 }
  0x36   : > { %530 = vmatpush2.msra.mxu0 %v460_v41  ;;  %815 = vmatprep.mubr.msk.f32.mxu0 %vm438_vm5, %v425_v42 }
  0x37   : > { %656 = vmatpush2.msra.mxu1 %v460_v41  ;;  %816 = vmatprep.mubr.msk.f32.mxu1 %vm438_vm5, %v568_v43 }
  0x8a   : > { %v436_v44 = vpop.permute.xlu1 %435 }
  0x8c   : > { %v853_v45 = vpop.permute.xlu0 %852 }
  0x8d   : > { %v855_v46 = vunpack.i.h.bf16 %v853_v45  ;;  %v854_v47 = vunpack.i.l.bf16 %v853_v45 }
  0x8e   : > { %v585_v51 = vpop.permute.xlu1 %584 }
  0x8f   : > { %v439_v52 = vsel %vm438_vm5, %v996_v25, %v854_v47  ;;  %v587_v53 = vsel %vm438_vm5, 0.0, %v855_v46 }
  0x90   : > { %v858_v48 = vpop.permute.xlu0 %857 }
  0x91   : > { %v860_v49 = vunpack.i.h.bf16 %v858_v48  ;;  %v859_v50 = vunpack.i.l.bf16 %v858_v48 }
  0x93   : > { %v441_v54 = vsel %vm440_vm6, %v439_v52, %v859_v50  ;;  %v588_v55 = vsel %vm440_vm6, %v587_v53, %v860_v49 }
  0x94   : > { %v443_v56 = vsel %vm442_vm7, %v441_v54, %v436_v44  ;;  %v589_v57 = vsel %vm442_vm7, %v588_v55, %v585_v51 }
  0x95   : > { %532 = vmatmul.mubr.f32.vlgmr.msra.gmra.mxu0 %v443_v56  ;;  %658 = vmatmul.mubr.f32.vlgmr.msra.gmra.mxu1 %v589_v57 }
 0x155   : > { %v533_v58 = vpop.f32.mrf.mxu0  ;;  %v659_v59 = vpop.f32.mrf.mxu1 }
 0x156   : > { %v664_v60 = vrot.slane %v533_v58, 7 }
 0x157   : > { %v535_v62 = vpop.f32.mrf.mxu0  ;;  %v661_v63 = vpop.f32.mrf.mxu1 }
 0x158   : > { %v667_v0 = vsel %vm666_vm8, %v659_v59, %v664_v60 }
 0x159   : > { %v675_v1 = vadd.f32 %v817_v61, %v667_v0 }
 0x15b   : > { %vm676_vm9 = vcmp.ge.f32.partialorder %v675_v1, 0.0  ;;  %v677_v2 = vmul.f32 0.1, %v675_v1 }
 0x15d   : > { %v678_v3 = vsel %vm676_vm9, %v675_v1, %v677_v2 }
 0x15e   : > { %679 = vst.msk [vmem:[%s384_s27] sm:$0xff] %vm440_vm6, %v678_v3 }
 0x15f PF: > { %s15_s20 = sadd.s32 1, %s883_s20   ;;  %s1098_s18 = smov %s879_s19 }
 0x160   : > { %p12_p5 = scmp.ge.s32.totalorder %s15_s20, 10   ;;  %s1099_s19 = smov %s1101_s1 }
 0x162   :  { %14 = sbr.rel (!%p12_p5) target bundleno = 2 (0x2), region = 81 }

// kernel: discriminator_p_forward.9
= control target key start
LH: loop header
LB: loop body
LE: loop exit
PB: predicated region body
PF: predicated region fallthrough
CT: control target
= control target key end

     0   :  { %s1187_s18 = smov 0   ;;  %s1189_s19 = smov 0   ;;  %s1471_s0 = inlined_call_operand.vmem [shape: f32[8,32,64], index: 0, kind: input, shape index: {}, may-alias: {0,1,2}]   ;;  %s1472_s1 = inlined_call_operand.vmem [shape: f32[8,32,64], index: 1, kind: input, shape index: {}, may-alias: {0,1,2}]   ;;  %s1473_s2 = inlined_call_operand.vmem [shape: f32[8,32,64], index: 2, kind: input, shape index: {}, may-alias: {0,1,2}]   ;;  %s1474_s3 = inlined_call_operand.vmem [shape: f32[320,128], index: 3, kind: input, shape index: {}]   ;;  %s1475_s4 = inlined_call_operand.vmem [shape: f32[1,128], index: 4, kind: input, shape index: {}]   ;;  %s1476_s5 = inlined_call_operand.vmem [shape: f32[8,32,128], index: 5, kind: output, shape index: {}]  }
   0x1   :  { %s1191_s20 = smov 0  }
   0x2 LB: > { %s27_s1 = sadd.s32 1, %s1148_s19  ;;  %p951_p0 = scmp.ge.s32.totalorder %s1152_s20, 1  ;;  %s1152_s20 = sphi %s1191_s20, %s15_s20   ;;  %s1148_s19 = sphi %s1189_s19, %s1478_s19   ;;  %s1144_s18 = sphi %s1187_s18, %s1477_s18  }
   0x3   : > { %p29_p1 = scmp.ge.s32.totalorder %s27_s1, 8  ;;  %p270_p2 = scmp.lt.s32.totalorder %s1152_s20, 9 }
   0x5   : > { %s1480_s1 = smov (%p29_p1, %s27_s1), 0  ;;  %p271_p3 = pnand %p951_p0, %p270_p2 }
   0x6   : > { %p336_p4 = scmp.lt.s32.totalorder (!%p271_p3), %s1144_s18, 7  ;;  %s1155_s22 = smov (!%p271_p3), 64  }
   0x7   : > { %274 = sbr.rel (%p271_p3) target bundleno = 363 (0x16b), region = 40 }
   0xc   : > { %v386_v0 = vlaneseq  ;;  %v1208_v1 = vld [vmem:[%s1474_s3 + $0x138] sm:$0xff]  ;;  %v1154_v2 = vmov 0.0   ;;  %v1216_v3 = vld [vmem:[%s1474_s3 + $0x130] sm:$0xff]  ;;  %s1482_s18 = smov (!%p336_p4, %s1144_s18), 7  ;;  %v1246_v9 = vld [vmem:[%s1474_s3 + $0x128] sm:$0xff]  ;;  %vm1156_vm4 = vmmov 0  }
   0xd   : > { %659 = vrot.lane.b32.xlu1 %v1154_v2, %s1155_s22  ;;  %1060 = vmatprep.subr.mxu1 %v1154_v2  ;;  %v1221_v4 = vld [vmem:[%s1474_s3 + $0xf8] sm:$0xff]  ;;  %v1235_v7 = vld [vmem:[%s1474_s3 + $0xf0] sm:$0xff]  ;;  %v1252_v10 = vld [vmem:[%s1474_s3 + $0xe8] sm:$0xff]  ;;  %s969_s12 = sshll.u32 %s1482_s18, 5  ;;  %vm434_vm6 = vcmask 523264   ;;  %vm814_vm8 = vcmask 1040384  }
   0xe   : > { %v1226_v5 = vld [vmem:[%s1474_s3 + $0x78] sm:$0xff]  ;;  %v387_v6 = vshrl.u32 %v386_v0, 7  ;;  %1061 = vmatpush3.msra.mxu1 %v1208_v1  ;;  %972 = vmatprep.subr.mxu0 %v1221_v4  ;;  %v1240_v8 = vld [vmem:[%s1474_s3 + $0x70] sm:$0xff]  ;;  %v1260_v12 = vld [vmem:[%s1474_s3 + $0x68] sm:$0xff]  ;;  %s1267_s17 = scalar_lea.vmem %s1471_s0, %s969_s12  ;;  %s384_s24 = scalar_lea.vmem %s1476_s5, %s969_s12 }
   0xf   : > { %1062 = vmatprep.subr.mxu1 %v1154_v2  ;;  %973 = vmatpush3.msra.mxu0 %v1226_v5  ;;  %v1273_v13 = vld [vmem:[%s1474_s3 + $0x120] sm:$0xff]  ;;  %v1285_v16 = vld [vmem:[%s1474_s3 + $0x118] sm:$0xff]  ;;  %v1313_v25 = vld [vmem:[%s1474_s3 + $0x110] sm:$0xff] }
  0x10   : > { %v388_v11 = vmul.u32 3, %v387_v6  ;;  %1063 = vmatpush3.msra.mxu1 %v1216_v3  ;;  %974 = vmatprep.subr.mxu0 %v1235_v7  ;;  %v1279_v14 = vld [vmem:[%s1474_s3 + $0xe0] sm:$0xff]  ;;  %v1299_v19 = vld [vmem:[%s1474_s3 + $0xd8] sm:$0xff]  ;;  %v1319_v26 = vld [vmem:[%s1474_s3 + $0xd0] sm:$0xff] }
  0x11   : > { %1064 = vmatprep.subr.mxu1 %v1154_v2  ;;  %975 = vmatpush3.msra.mxu0 %v1240_v8  ;;  %v1291_v17 = vld [vmem:[%s1474_s3 + $0x60] sm:$0xff]  ;;  %v1304_v20 = vld [vmem:[%s1474_s3 + $0x58] sm:$0xff]  ;;  %v1325_v28 = vld [vmem:[%s1474_s3 + $0x108] sm:$0xff] }
  0x12   : > { %v391_v15 = vadd.s32 1, %v388_v11  ;;  %1065 = vmatpush3.msra.mxu1 %v1246_v9  ;;  %976 = vmatprep.subr.mxu0 %v1252_v10  ;;  %v959_v18 = vld [vmem:[%s1267_s17 + $0x2] ss:$3 sm:$0x7f]  ;;  %v460_v44 = vld [vmem:[%s1474_s3 + $0xb8] sm:$0xff]  ;;  %vm964_vm7 = vmneg %vm434_vm6 }
  0x13   : > { %1066 = vmatprep.subr.mxu1 %v1154_v2  ;;  %977 = vmatpush3.msra.mxu0 %v1260_v12  ;;  %v961_v22 = vld [vmem:[%s1267_s17 + $0x4] ss:$3 sm:$0x7f]  ;;  %v962_v31 = vld [vmem:[%s1267_s17 + $0x5] ss:$3 sm:$0x7f] }
  0x14   : > { %v400_v21 = vadd.s32 1, %v391_v15  ;;  %v414_v23 = vadd.s32 3, %v391_v15  ;;  %1067 = vmatpush3.msra.mxu1 %v1273_v13  ;;  %978 = vmatprep.subr.mxu0 %v1279_v14  ;;  %v421_v24 = vadd.s32 4, %v391_v15  ;;  %v407_v27 = vadd.s32 2, %v391_v15  ;;  %v447_v33 = vld [vmem:[%s1474_s3 + $0x50] sm:$0xff]  ;;  %v1340_v34 = vld [vmem:[%s1474_s3 + $0x100] sm:$0xff] }
  0x15   : > { %1068 = vmatprep.subr.mxu1 %v1154_v2  ;;  %979 = vmatpush3.msra.mxu0 %v1291_v17  ;;  %v462_v35 = vld [vmem:[%s1474_s3 + $0xc8] sm:$0xff]  ;;  %vm394_vm5 = vcmp.lt.s32.totalorder %v391_v15, 1  ;;  %v461_v42 = vld [vmem:[%s1474_s3 + $0xc0] sm:$0xff]  ;;  %v444_v45 = vld [vmem:[%s1474_s3 + $0x38] sm:$0xff] }
  0x16   : > { %vm401_vm0 = vcmp.lt.s32.totalorder %v400_v21, 1  ;;  %vm415_vm1 = vcmp.lt.s32.totalorder %v414_v23, 1  ;;  %1069 = vmatpush3.msra.mxu1 %v1285_v16  ;;  %980 = vmatprep.subr.mxu0 %v1299_v19  ;;  %vm422_vm2 = vcmp.lt.s32.totalorder %v421_v24, 1  ;;  %vm408_vm3 = vcmp.lt.s32.totalorder %v407_v27, 1  ;;  %v446_v40 = vld [vmem:[%s1474_s3 + $0x48] sm:$0xff]  ;;  %v445_v43 = vld [vmem:[%s1474_s3 + $0x40] sm:$0xff] }
  0x17   : > { %v404_v29 = vsel %vm401_vm0, %v959_v18, 0.0  ;;  %v418_v30 = vsel %vm415_vm1, %v961_v22, 0.0  ;;  %1070 = vmatprep.subr.mxu1 %v1154_v2  ;;  %981 = vmatpush3.msra.mxu0 %v1304_v20  ;;  %v425_v36 = vsel %vm422_vm2, %v962_v31, 0.0  ;;  %v960_v37 = vld [vmem:[%s1267_s17 + $0x3] ss:$3 sm:$0x7f] }
  0x18   : > { %v1125_v32 = vpack.i.bf16 %v404_v29, %v418_v30  ;;  %1071 = vmatpush3.msra.mxu1 %v1313_v25  ;;  %982 = vmatprep.subr.mxu0 %v1319_v26  ;;  %v1351_v38 = vsel %vm408_vm3, %v960_v37, 0.0  ;;  %v958_v39 = vld [vmem:[%s1267_s17 + $0x1] ss:$3 sm:$0x7f]  ;;  %v456_v52 = vld [vmem:[%s1474_s3 + $0x98] sm:$0xff] }
  0x19   : > { %1072 = vmatprep.subr.mxu1 %v1154_v2  ;;  %1076 = vmatprep.mubr.msk.f32.mxu1 %vm1156_vm4, %v1154_v2  ;;  %v1358_v41 = vsel %vm394_vm5, %v958_v39, 0.0  ;;  %v459_v46 = vld [vmem:[%s1474_s3 + $0xb0] sm:$0xff]  ;;  %v458_v48 = vld [vmem:[%s1474_s3 + $0xa8] sm:$0xff]  ;;  %v457_v50 = vld [vmem:[%s1474_s3 + $0xa0] sm:$0xff] }
  0x1a   : > { %1126 = vrot.lane.b32.xlu0 %v1125_v32, %s1155_s22  ;;  %1073 = vmatpush3.msra.mxu1 %v1325_v28  ;;  %v443_v47 = vld [vmem:[%s1474_s3 + $0x30] sm:$0xff]  ;;  %v442_v49 = vld [vmem:[%s1474_s3 + $0x28] sm:$0xff]  ;;  %v441_v51 = vld [vmem:[%s1474_s3 + $0x20] sm:$0xff] }
  0x1b   : > { %1074 = vmatprep.subr.mxu1 %v1154_v2  ;;  %983 = vmatpush3.msra.mxu0 %v447_v33  ;;  %v440_v53 = vld [vmem:[%s1474_s3 + $0x18] sm:$0xff]  ;;  %v455_v54 = vld [vmem:[%s1474_s3 + $0x90] sm:$0xff]  ;;  %v454_v56 = vld [vmem:[%s1474_s3 + $0x88] sm:$0xff] }
  0x1c   : > { %1075 = vmatpush3.msra.mxu1 %v1340_v34  ;;  %984 = vmatprep.subr.mxu0 %v462_v35  ;;  %v439_v55 = vld [vmem:[%s1474_s3 + $0x10] sm:$0xff]  ;;  %v438_v57 = vld [vmem:[%s1474_s3 + $0x8] sm:$0xff]  ;;  %v453_v58 = vld [vmem:[%s1474_s3 + $0x80] sm:$0xff] }
  0x1d   : > { %1016 = vmatprep.subr.mxu1 %v1221_v4  ;;  %1077 = vmatmul.mubr.msk.f32.vlgmr.msra.gmra.mxu1 %vm434_vm6, %v425_v36  ;;  %v437_v59 = vld [vmem:[%s1474_s3] sm:$0xff] }
  0x1e   : > { %663 = vrot.lane.b32.xlu0 %v1154_v2, %s1155_s22  ;;  %1017 = vmatpush3.msra.mxu1 %v1226_v5  ;;  %v639_v63 = vld [vmem:[%s1267_s17] sm:$0x1] }
  0x1f   : > { %1018 = vmatprep.subr.mxu1 %v1235_v7  ;;  %985 = vmatpush3.msra.mxu0 %v446_v40  ;;  %v966_v18 = vld [vmem:[%s1475_s4] ss:$0 sm:$0xff] }
  0x20   : > { %1019 = vmatpush3.msra.mxu1 %v1240_v8  ;;  %986 = vmatprep.subr.mxu0 %v461_v42 }
  0x21   : > { %1020 = vmatprep.subr.mxu1 %v1252_v10  ;;  %987 = vmatpush3.msra.mxu0 %v445_v43 }
  0x22   : > { %1021 = vmatpush3.msra.mxu1 %v1260_v12  ;;  %988 = vmatprep.subr.mxu0 %v460_v44 }
  0x23   : > { %1022 = vmatprep.subr.mxu1 %v1279_v14  ;;  %989 = vmatpush3.msra.mxu0 %v444_v45 }
  0x24   : > { %1023 = vmatpush3.msra.mxu1 %v1291_v17  ;;  %990 = vmatprep.subr.mxu0 %v459_v46 }
  0x25   : > { %1024 = vmatprep.subr.mxu1 %v1299_v19  ;;  %991 = vmatpush3.msra.mxu0 %v443_v47 }
  0x26   : > { %1025 = vmatpush3.msra.mxu1 %v1304_v20  ;;  %992 = vmatprep.subr.mxu0 %v458_v48 }
  0x27   : > { %1026 = vmatprep.subr.mxu1 %v1319_v26  ;;  %993 = vmatpush3.msra.mxu0 %v442_v49 }
  0x28   : > { %1027 = vmatpush3.msra.mxu1 %v447_v33  ;;  %994 = vmatprep.subr.mxu0 %v457_v50 }
  0x29   : > { %1028 = vmatprep.subr.mxu1 %v462_v35  ;;  %995 = vmatpush3.msra.mxu0 %v441_v51 }
  0x2a   : > { %1029 = vmatpush3.msra.mxu1 %v446_v40  ;;  %996 = vmatprep.subr.mxu0 %v456_v52 }
  0x2b   : > { %1030 = vmatprep.subr.mxu1 %v461_v42  ;;  %997 = vmatpush3.msra.mxu0 %v440_v53 }
  0x2c   : > { %1031 = vmatpush3.msra.mxu1 %v445_v43  ;;  %998 = vmatprep.subr.mxu0 %v455_v54 }
  0x2d   : > { %1032 = vmatprep.subr.mxu1 %v460_v44  ;;  %999 = vmatpush3.msra.mxu0 %v439_v55 }
  0x2e   : > { %1033 = vmatpush3.msra.mxu1 %v444_v45  ;;  %1000 = vmatprep.subr.mxu0 %v454_v56 }
  0x2f   : > { %1034 = vmatprep.subr.mxu1 %v459_v46  ;;  %1001 = vmatpush3.msra.mxu0 %v438_v57 }
  0x30   : > { %1035 = vmatpush3.msra.mxu1 %v443_v47  ;;  %1002 = vmatprep.subr.mxu0 %v453_v58 }
  0x31   : > { %1036 = vmatprep.subr.mxu1 %v458_v48  ;;  %1003 = vmatpush3.msra.mxu0 %v437_v59 }
  0x32   : > { %1037 = vmatpush3.msra.mxu1 %v442_v49  ;;  %1079 = vmatprep.subr.mxu0 %v1154_v2 }
  0x33   : > { %1038 = vmatprep.subr.mxu1 %v457_v50 }
  0x34   : > { %1039 = vmatpush3.msra.mxu1 %v441_v51 }
  0x35   : > { %1040 = vmatprep.subr.mxu1 %v456_v52 }
  0x36   : > { %1041 = vmatpush3.msra.mxu1 %v440_v53 }
  0x37   : > { %1042 = vmatprep.subr.mxu1 %v455_v54 }
  0x38   : > { %1043 = vmatpush3.msra.mxu1 %v439_v55 }
  0x39   : > { %1044 = vmatprep.subr.mxu1 %v454_v56 }
  0x3a   : > { %1045 = vmatpush3.msra.mxu1 %v438_v57 }
  0x3b   : > { %1046 = vmatprep.subr.mxu1 %v453_v58 }
  0x3c   : > { %1047 = vmatpush3.msra.mxu1 %v437_v59 }
  0x7f   : > { %v660_v6 = vpop.permute.xlu1 %659 }
  0x8c   : > { %v1127_v60 = vpop.permute.xlu0 %1126 }
  0x8d   : > { %v1129_v61 = vunpack.i.h.bf16 %v1127_v60  ;;  %v1128_v62 = vunpack.i.l.bf16 %v1127_v60 }
  0x8f   : > { %v436_v0 = vsel %vm434_vm6, %v1351_v38, %v1128_v62  ;;  %v435_v4 = vsel %vm434_vm6, %v1358_v41, %v1129_v61 }
  0x90   : > { %544 = vmatprep.mubr.f32.mxu0 %v436_v0  ;;  %v664_v5 = vpop.permute.xlu0 %663 }
  0x91   : > { %545 = vmatmul.mubr.f32.vlgmr.msra.gmra.mxu0 %v435_v4  ;;  %v667_v7 = vsel %vm434_vm6, %v639_v63, %v664_v5 }
  0x92   : > { %1080 = vmatpush3.msra.mxu0 %v1208_v1  ;;  %735 = vmatprep.mubr.f32.mxu1 %v667_v7 }
  0x93   : > { %1081 = vmatprep.subr.mxu0 %v1154_v2  ;;  %965 = vmatmul.mubr.msk.f32.vlgmr.msra.gmra.mxu1 %vm964_vm7, %v660_v6 }
  0x94   : > { %1082 = vmatpush3.msra.mxu0 %v1216_v3  ;;  %1095 = vmatprep.mubr.msk.f32.mxu0 %vm1156_vm4, %v1154_v2 }
  0x95   : > { %1083 = vmatprep.subr.mxu0 %v1154_v2 }
  0x96   : > { %1084 = vmatpush3.msra.mxu0 %v1246_v9 }
  0x97   : > { %1085 = vmatprep.subr.mxu0 %v1154_v2 }
  0x98   : > { %1086 = vmatpush3.msra.mxu0 %v1273_v13 }
  0x99   : > { %1087 = vmatprep.subr.mxu0 %v1154_v2 }
  0x9a   : > { %1088 = vmatpush3.msra.mxu0 %v1285_v16 }
  0x9b   : > { %1089 = vmatprep.subr.mxu0 %v1154_v2 }
  0x9c   : > { %1090 = vmatpush3.msra.mxu0 %v1313_v25 }
  0x9d   : > { %1091 = vmatprep.subr.mxu0 %v1154_v2 }
  0x9e   : > { %1092 = vmatpush3.msra.mxu0 %v1325_v28 }
  0x9f   : > { %1093 = vmatprep.subr.mxu0 %v1154_v2 }
  0xa0   : > { %1094 = vmatpush3.msra.mxu0 %v1340_v34 }
  0xa1   : > { %1096 = vmatmul.mubr.f32.vlgmr.msra.gmra.mxu0 %v1154_v2 }
  0xdd   : > { %v616_v1 = vpop.f32.mrf.mxu1 }
  0xdf   : > { %v1078_v3 = vpop.f32.mrf.mxu1 }
 0x151   : > { %v1004_v8 = vpop.f32.mrf.mxu0 }
 0x153   : > { %v1005_v9 = vpop.f32.mrf.mxu0  ;;  %v1048_v10 = vpop.f32.mrf.mxu1 }
 0x154   : > { %v1006_v11 = vadd.f32 %v1005_v9, %v1004_v8 }
 0x155   : > { %v1049_v12 = vpop.f32.mrf.mxu1 }
 0x156   : > { %v617_v13 = vadd.f32 %v1006_v11, %v616_v1  ;;  %v1050_v14 = vadd.f32 %v1049_v12, %v1048_v10 }
 0x158   : > { %v812_v16 = vrot.slane %v617_v13, 7 }
 0x161   : > { %v807_v15 = vpop.f32.mrf.mxu0 }
 0x162   : > { %v808_v17 = vadd.f32 %v1050_v14, %v807_v15 }
 0x163   : > { %v1097_v19 = vpop.f32.mrf.mxu0 }
 0x164   : > { %v815_v2 = vsel %vm814_vm8, %v808_v17, %v812_v16 }
 0x165   : > { %v823_v20 = vadd.f32 %v966_v18, %v815_v2 }
 0x167   : > { %vm824_vm9 = vcmp.ge.f32.partialorder %v823_v20, 0.0  ;;  %v825_v21 = vmul.f32 0.1, %v823_v20 }
 0x169   : > { %v826_v22 = vsel %vm824_vm9, %v823_v20, %v825_v21 }
 0x16a   : > { %827 = vst [vmem:[%s384_s24] sm:$0xff] %v826_v22 }
 0x16b PF: > { %s15_s20 = sadd.s32 1, %s1152_s20   ;;  %s1477_s18 = smov %s1148_s19 }
 0x16c   : > { %p12_p5 = scmp.ge.s32.totalorder %s15_s20, 10   ;;  %s1478_s19 = smov %s1480_s1 }
 0x16e   :  { %14 = sbr.rel (!%p12_p5) target bundleno = 2 (0x2), region = 81 }

// kernel: discriminator_p_forward.6
= control target key start
LH: loop header
LB: loop body
LE: loop exit
PB: predicated region body
PF: predicated region fallthrough
CT: control target
= control target key end

     0   :  { %s917_s18 = smov 0   ;;  %s919_s19 = smov 0   ;;  %s973_s0 = inlined_call_operand.vmem [shape: f32[8,32,1], index: 0, kind: input, shape index: {}, may-alias: {0,1,2}]   ;;  %s974_s1 = inlined_call_operand.vmem [shape: f32[8,32,1], index: 1, kind: input, shape index: {}, may-alias: {0,1,2}]   ;;  %s975_s2 = inlined_call_operand.vmem [shape: f32[8,32,1], index: 2, kind: input, shape index: {}, may-alias: {0,1,2}]   ;;  %s976_s3 = inlined_call_operand.vmem [shape: f32[5,16], index: 3, kind: input, shape index: {}]   ;;  %s977_s4 = inlined_call_operand.vmem [shape: f32[1,16], index: 4, kind: input, shape index: {}]   ;;  %s978_s5 = inlined_call_operand.vmem [shape: f32[8,32,16], index: 5, kind: output, shape index: {}]  }
   0x1   :  { %s921_s20 = smov 0  }
   0x2 LB: > { %s27_s1 = sadd.s32 1, %s875_s19  ;;  %p791_p0 = scmp.ge.s32.totalorder %s879_s20, 1  ;;  %s879_s20 = sphi %s921_s20, %s15_s20   ;;  %s875_s19 = sphi %s919_s19, %s980_s19   ;;  %s871_s18 = sphi %s917_s18, %s979_s18  }
   0x3   : > { %p29_p1 = scmp.ge.s32.totalorder %s27_s1, 8  ;;  %p270_p2 = scmp.lt.s32.totalorder %s879_s20, 9 }
   0x5   : > { %s982_s1 = smov (%p29_p1, %s27_s1), 0  ;;  %p271_p3 = pnand %p791_p0, %p270_p2 }
   0x6   : > { %p336_p4 = scmp.lt.s32.totalorder (!%p271_p3), %s871_s18, 7  ;;  %s882_s2 = smov (!%p271_p3), 1  }
   0x7   : > { %274 = sbr.rel (%p271_p3) target bundleno = 353 (0x161), region = 40  ;;  %s883_s25 = smov (!%p271_p3), 2  }
   0x8   : > { %s884_s28 = smov (!%p271_p3), 3   ;;  %s886_s29 = smov (!%p271_p3), 4  }
   0xc   : > { %v386_v0 = vlaneseq  ;;  %v881_v1 = vmov 0.0   ;;  %s984_s18 = smov (!%p336_p4, %s871_s18), 7  ;;  %v440_v16 = vld [vmem:[%s976_s3] sm:$0x1f]  ;;  %vm445_vm4 = vcmask 1044480   ;;  %vm885_vm5 = vmmov 0  }
   0xd   : > { %558 = vrot.lane.b32.xlu1 %v881_v1, %s882_s2  ;;  %817 = vmatprep.subr.mxu0 %v881_v1  ;;  %s810_s21 = sshll.u32 %s984_s18, 5  ;;  %vm432_vm7 = vcmask 7168   ;;  %vm434_vm8 = vcmask 15360   ;;  %vm436_vm9 = vcmask 23552   ;;  %vm438_vm10 = vcmask 31744  }
   0xe   : > { %v387_v2 = vshrl.u32 %v386_v0, 7  ;;  %822 = vmatprep.subr.mxu1 %v881_v1  ;;  %s943_s24 = scalar_lea.vmem %s973_s0, %s810_s21  ;;  %818 = vmatpush3.msk.msra.mxu0 %vm445_vm4, %v440_v16  ;;  %vm441_vm11 = vcmask 39936   ;;  %vm653_vm12 = vcmask 1040384   ;;  %v807_v42 = vld [vmem:[%s977_s4] ss:$0 sm:$0xff]  ;;  %s384_s9 = scalar_lea.vmem %s978_s5, %s810_s21  ;;  %vm666_vm14 = vcmask 130048  }
   0xf   : > { %v538_v5 = vld [vmem:[%s943_s24] sm:$0x1]  ;;  %v799_v6 = vld [vmem:[%s943_s24 + $0x2] ss:$3 sm:$0x7f]  ;;  %819 = vmatprep.mubr.msk.f32.mxu0 %vm885_vm5, %v881_v1  ;;  %823 = vmatpush3.msk.msra.mxu1 %vm445_vm4, %v440_v16 }
  0x10   : > { %v388_v3 = vmul.u32 3, %v387_v2  ;;  %v801_v9 = vld [vmem:[%s943_s24 + $0x4] ss:$3 sm:$0x7f]  ;;  %v550_v19 = vld [vmem:[%s943_s24 + $0x2] sm:$0x1]  ;;  %824 = vmatprep.mubr.msk.f32.mxu1 %vm885_vm5, %v881_v1 }
  0x11   : > { %562 = vrot.lane.b32.xlu1 %v538_v5, %s883_s25  ;;  %v800_v11 = vld [vmem:[%s943_s24 + $0x3] ss:$3 sm:$0x7f]  ;;  %v798_v13 = vld [vmem:[%s943_s24 + $0x1] ss:$3 sm:$0x7f] }
  0x12   : > { %v391_v4 = vadd.s32 1, %v388_v3  ;;  %v802_v20 = vld [vmem:[%s943_s24 + $0x5] ss:$3 sm:$0x7f]  ;;  %v544_v22 = vld [vmem:[%s943_s24 + $0x1] sm:$0x1] }
  0x14   : > { %v398_v7 = vadd.s32 1, %v391_v4  ;;  %v403_v8 = vadd.s32 2, %v391_v4  ;;  %v408_v10 = vadd.s32 3, %v391_v4  ;;  %v413_v12 = vadd.s32 4, %v391_v4 }
  0x15   : > { %vm394_vm0 = vcmp.lt.s32.totalorder %v391_v4, 24 }
  0x16   : > { %vm399_vm1 = vcmp.lt.s32.totalorder %v398_v7, 24  ;;  %vm404_vm2 = vcmp.lt.s32.totalorder %v403_v8, 24  ;;  %vm409_vm3 = vcmp.lt.s32.totalorder %v408_v10, 24  ;;  %v395_v17 = vsel %vm394_vm0, %v798_v13, 0.0 }
  0x17   : > { %v400_v14 = vsel %vm399_vm1, %v799_v6, 0.0  ;;  %v410_v15 = vsel %vm409_vm3, %v801_v9, 0.0  ;;  %v405_v18 = vsel %vm404_vm2, %v800_v11, 0.0  ;;  %vm414_vm6 = vcmp.lt.s32.totalorder %v413_v12, 24 }
  0x18   : > { %417 = vrot.lane.b32.xlu0 %v400_v14, %s882_s2  ;;  %425 = vrot.lane.b32.xlu1 %v410_v15, %s884_s28  ;;  %v415_v21 = vsel %vm414_vm6, %v802_v20, 0.0 }
  0x1c   : > { %421 = vrot.lane.b32.xlu0 %v405_v18, %s883_s25  ;;  %570 = vrot.lane.b32.xlu1 %v550_v19, %s886_s29 }
  0x20   : > { %429 = vrot.lane.b32.xlu0 %v415_v21, %s886_s29 }
  0x24   : > { %566 = vrot.lane.b32.xlu0 %v544_v22, %s884_s28 }
  0x7f   : > { %v559_v23 = vpop.permute.xlu1 %558 }
  0x80   : > { %v573_v32 = vsel %vm432_vm7, 0.0, %v559_v23 }
  0x83   : > { %v563_v24 = vpop.permute.xlu1 %562 }
  0x84   : > { %v574_v35 = vsel %vm434_vm8, %v573_v32, %v563_v24 }
  0x8a   : > { %v418_v25 = vpop.permute.xlu0 %417  ;;  %v426_v29 = vpop.permute.xlu1 %425 }
  0x8b   : > { %v433_v26 = vsel %vm432_vm7, %v395_v17, %v418_v25 }
  0x8e   : > { %v422_v27 = vpop.permute.xlu0 %421  ;;  %v571_v34 = vpop.permute.xlu1 %570 }
  0x8f   : > { %v435_v28 = vsel %vm434_vm8, %v433_v26, %v422_v27 }
  0x90   : > { %v437_v30 = vsel %vm436_vm9, %v435_v28, %v426_v29 }
  0x92   : > { %v430_v31 = vpop.permute.xlu0 %429 }
  0x93   : > { %v439_v33 = vsel %vm438_vm10, %v437_v30, %v430_v31 }
  0x94   : > { %820 = vmatmul.mubr.msk.f32.vlgmr.msra.gmra.mxu0 %vm441_vm11, %v439_v33 }
  0x96   : > { %v567_v36 = vpop.permute.xlu0 %566 }
  0x97   : > { %v575_v37 = vsel %vm436_vm9, %v574_v35, %v567_v36 }
  0x98   : > { %v576_v38 = vsel %vm438_vm10, %v575_v37, %v571_v34 }
  0x99   : > { %825 = vmatmul.mubr.msk.f32.vlgmr.msra.gmra.mxu1 %vm441_vm11, %v576_v38 }
 0x154   : > { %v515_v39 = vpop.f32.mrf.mxu0 }
 0x155   : > { %v651_v41 = vrot.slane %v515_v39, 7 }
 0x156   : > { %v821_v40 = vpop.f32.mrf.mxu0 }
 0x159   : > { %v646_v43 = vpop.f32.mrf.mxu1 }
 0x15a   : > { %v654_v44 = vsel %vm653_vm12, %v646_v43, %v651_v41 }
 0x15b   : > { %v662_v45 = vadd.f32 %v807_v42, %v654_v44  ;;  %v826_v46 = vpop.f32.mrf.mxu1 }
 0x15d   : > { %vm663_vm13 = vcmp.ge.f32.partialorder %v662_v45, 0.0  ;;  %v664_v47 = vmul.f32 0.1, %v662_v45 }
 0x15f   : > { %v665_v48 = vsel %vm663_vm13, %v662_v45, %v664_v47 }
 0x160   : > { %667 = vst.msk [vmem:[%s384_s9] sm:$0xff] %vm666_vm14, %v665_v48 }
 0x161 PF: > { %s15_s20 = sadd.s32 1, %s879_s20   ;;  %s979_s18 = smov %s875_s19 }
 0x162   : > { %p12_p5 = scmp.ge.s32.totalorder %s15_s20, 10   ;;  %s980_s19 = smov %s982_s1 }
 0x164   :  { %14 = sbr.rel (!%p12_p5) target bundleno = 2 (0x2), region = 81 }

// kernel: discriminator_p_forward.10
= control target key start
LH: loop header
LB: loop body
LE: loop exit
PB: predicated region body
PF: predicated region fallthrough
CT: control target
= control target key end

     0   :  { %s1314_s18 = smov 0   ;;  %s1316_s19 = smov 0   ;;  %s2511_s0 = inlined_call_operand.vmem [shape: f32[8,32,128], index: 0, kind: input, shape index: {}, may-alias: {0,1,2}]   ;;  %s2512_s1 = inlined_call_operand.vmem [shape: f32[8,32,128], index: 1, kind: input, shape index: {}, may-alias: {0,1,2}]   ;;  %s2513_s2 = inlined_call_operand.vmem [shape: f32[8,32,128], index: 2, kind: input, shape index: {}, may-alias: {0,1,2}]   ;;  %s2514_s3 = inlined_call_operand.vmem [shape: f32[640,256], index: 3, kind: input, shape index: {}]   ;;  %s2515_s4 = inlined_call_operand.vmem [shape: f32[1,256], index: 4, kind: input, shape index: {}]   ;;  %s2516_s5 = inlined_call_operand.vmem [shape: f32[8,16,256], index: 5, kind: output, shape index: {}]  }
   0x1   :  { %s1318_s20 = smov 0  }
   0x2 LB: > { %s27_s1 = sadd.s32 1, %s1277_s19  ;;  %p1212_p0 = scmp.ge.s32.totalorder %s1281_s20, 1  ;;  %s1281_s20 = sphi %s1318_s20, %s15_s20   ;;  %s1277_s19 = sphi %s1316_s19, %s2738_s19   ;;  %s1273_s18 = sphi %s1314_s18, %s2737_s18  }
   0x3   : > { %p29_p1 = scmp.ge.s32.totalorder %s27_s1, 8  ;;  %p270_p2 = scmp.lt.s32.totalorder %s1281_s20, 9 }
   0x5   : > { %s2740_s1 = smov (%p29_p1, %s27_s1), 0  ;;  %p271_p3 = pnand %p1212_p0, %p270_p2 }
   0x7   : > { %274 = sbr.rel (%p271_p3) target bundleno = 384 (0x180), region = 40 }
   0xc   : > { %v1337_v0 = vld [vmem:[%s2514_s3 + $0xf8] sm:$0xff]  ;;  %v1347_v2 = vld [vmem:[%s2514_s3 + $0xf0] sm:$0xff]  ;;  %v1359_v4 = vld [vmem:[%s2514_s3 + $0xe8] sm:$0xff]  ;;  %p337_p4 = scmp.lt.s32.totalorder %s1273_s18, 7  ;;  %vm1058_vm5 = vcmask 1040384  }
   0xd   : > { %v1342_v1 = vld [vmem:[%s2514_s3 + $0x2f8] sm:$0xff]  ;;  %588 = vmatprep.subr.mxu0 %v1337_v0  ;;  %v1354_v3 = vld [vmem:[%s2514_s3 + $0x2f0] sm:$0xff]  ;;  %v1364_v5 = vld [vmem:[%s2514_s3 + $0x2e8] sm:$0xff] }
   0xe   : > { %659 = vmatprep.subr.mxu1 %v1342_v1  ;;  %589 = vmatpush1.msra.mxu0 %v1347_v2  ;;  %v1371_v6 = vld [vmem:[%s2514_s3 + $0xe0] sm:$0xff]  ;;  %v1381_v8 = vld [vmem:[%s2514_s3 + $0xd8] sm:$0xff]  ;;  %v1393_v10 = vld [vmem:[%s2514_s3 + $0xd0] sm:$0xff]  ;;  %s2742_s18 = smov (!%p337_p4, %s1273_s18), 7 }
   0xf   : > { %660 = vmatpush1.msra.mxu1 %v1354_v3  ;;  %v1376_v7 = vld [vmem:[%s2514_s3 + $0x2e0] sm:$0xff]  ;;  %590 = vmatprep.subr.mxu0 %v1359_v4  ;;  %v1388_v9 = vld [vmem:[%s2514_s3 + $0x2d8] sm:$0xff]  ;;  %v1398_v11 = vld [vmem:[%s2514_s3 + $0x2d0] sm:$0xff]  ;;  %s1231_s22 = sshll.u32 %s2742_s18, 5 }
  0x10   : > { %661 = vmatprep.subr.mxu1 %v1364_v5  ;;  %591 = vmatpush1.msra.mxu0 %v1371_v6  ;;  %v1405_v12 = vld [vmem:[%s2514_s3 + $0xc8] sm:$0xff]  ;;  %v1417_v14 = vld [vmem:[%s2514_s3 + $0xc0] sm:$0xff]  ;;  %v1429_v16 = vld [vmem:[%s2514_s3 + $0xb8] sm:$0xff]  ;;  %s2078_s12 = scalar_lea.vmem %s2511_s0, %s1231_s22  ;;  %s386_s7 = scalar_lea.vmem %s2516_s5, %s1231_s22 }
  0x11   : > { %662 = vmatpush1.msra.mxu1 %v1376_v7  ;;  %v1410_v13 = vld [vmem:[%s2514_s3 + $0x2c8] sm:$0xff]  ;;  %592 = vmatprep.subr.mxu0 %v1381_v8  ;;  %v1422_v15 = vld [vmem:[%s2514_s3 + $0x2c0] sm:$0xff]  ;;  %v1434_v17 = vld [vmem:[%s2514_s3 + $0x2b8] sm:$0xff] }
  0x12   : > { %663 = vmatprep.subr.mxu1 %v1388_v9  ;;  %593 = vmatpush1.msra.mxu0 %v1393_v10  ;;  %v1441_v18 = vld [vmem:[%s2514_s3 + $0xb0] sm:$0xff]  ;;  %v1453_v20 = vld [vmem:[%s2514_s3 + $0xa8] sm:$0xff]  ;;  %v1465_v22 = vld [vmem:[%s2514_s3 + $0xa0] sm:$0xff] }
  0x13   : > { %664 = vmatpush1.msra.mxu1 %v1398_v11  ;;  %594 = vmatprep.subr.mxu0 %v1405_v12  ;;  %v1446_v19 = vld [vmem:[%s2514_s3 + $0x2b0] sm:$0xff]  ;;  %v1458_v21 = vld [vmem:[%s2514_s3 + $0x2a8] sm:$0xff]  ;;  %v1470_v23 = vld [vmem:[%s2514_s3 + $0x2a0] sm:$0xff] }
  0x14   : > { %665 = vmatprep.subr.mxu1 %v1410_v13  ;;  %2591 = vst [vmem:[#allocation2_spill] sm:$0xff] %v1446_v19  ;;  %595 = vmatpush1.msra.mxu0 %v1417_v14  ;;  %2592 = vst [vmem:[#allocation3_spill] sm:$0xff] %v1458_v21  ;;  %v1477_v24 = vld [vmem:[%s2514_s3 + $0x98] sm:$0xff]  ;;  %v1489_v26 = vld [vmem:[%s2514_s3 + $0x90] sm:$0xff] }
  0x15   : > { %666 = vmatpush1.msra.mxu1 %v1422_v15  ;;  %596 = vmatprep.subr.mxu0 %v1429_v16  ;;  %2593 = vst [vmem:[#allocation4_spill] sm:$0xff] %v1470_v23  ;;  %v1482_v25 = vld [vmem:[%s2514_s3 + $0x298] sm:$0xff]  ;;  %v1494_v27 = vld [vmem:[%s2514_s3 + $0x290] sm:$0xff]  ;;  %v1501_v28 = vld [vmem:[%s2514_s3 + $0x88] sm:$0xff] }
  0x16   : > { %667 = vmatprep.subr.mxu1 %v1434_v17  ;;  %597 = vmatpush1.msra.mxu0 %v1441_v18  ;;  %2594 = vst [vmem:[#allocation5_spill] sm:$0xff] %v1482_v25  ;;  %2595 = vst [vmem:[#allocation6_spill] sm:$0xff] %v1494_v27  ;;  %v1506_v29 = vld [vmem:[%s2514_s3 + $0x288] sm:$0xff]  ;;  %v1513_v30 = vld [vmem:[%s2514_s3 + $0x80] sm:$0xff] }
  0x17   : > { %668 = vmatpush1.msra.mxu1 %v1446_v19  ;;  %598 = vmatprep.subr.mxu0 %v1453_v20  ;;  %2596 = vst [vmem:[#allocation7_spill] sm:$0xff] %v1506_v29  ;;  %v1518_v31 = vld [vmem:[%s2514_s3 + $0x280] sm:$0xff]  ;;  %v1525_v32 = vld [vmem:[%s2514_s3 + $0x78] sm:$0xff]  ;;  %v1537_v34 = vld [vmem:[%s2514_s3 + $0x70] sm:$0xff] }
  0x18   : > { %669 = vmatprep.subr.mxu1 %v1458_v21  ;;  %599 = vmatpush1.msra.mxu0 %v1465_v22  ;;  %2597 = vst [vmem:[#allocation8_spill] sm:$0xff] %v1518_v31  ;;  %v1530_v33 = vld [vmem:[%s2514_s3 + $0x278] sm:$0xff]  ;;  %v1542_v35 = vld [vmem:[%s2514_s3 + $0x270] sm:$0xff]  ;;  %v1549_v36 = vld [vmem:[%s2514_s3 + $0x68] sm:$0xff] }
  0x19   : > { %670 = vmatpush1.msra.mxu1 %v1470_v23  ;;  %600 = vmatprep.subr.mxu0 %v1477_v24  ;;  %2598 = vst [vmem:[#allocation9_spill] sm:$0xff] %v1530_v33  ;;  %2599 = vst [vmem:[#allocation10_spill] sm:$0xff] %v1542_v35  ;;  %v1554_v37 = vld [vmem:[%s2514_s3 + $0x268] sm:$0xff]  ;;  %v1561_v38 = vld [vmem:[%s2514_s3 + $0x60] sm:$0xff] }
  0x1a   : > { %671 = vmatprep.subr.mxu1 %v1482_v25  ;;  %601 = vmatpush1.msra.mxu0 %v1489_v26  ;;  %2600 = vst [vmem:[#allocation11_spill] sm:$0xff] %v1554_v37  ;;  %v1566_v39 = vld [vmem:[%s2514_s3 + $0x260] sm:$0xff]  ;;  %v1573_v40 = vld [vmem:[%s2514_s3 + $0x58] sm:$0xff]  ;;  %v1585_v42 = vld [vmem:[%s2514_s3 + $0x50] sm:$0xff] }
  0x1b   : > { %672 = vmatpush1.msra.mxu1 %v1494_v27  ;;  %602 = vmatprep.subr.mxu0 %v1501_v28  ;;  %2601 = vst [vmem:[#allocation12_spill] sm:$0xff] %v1566_v39  ;;  %v1578_v41 = vld [vmem:[%s2514_s3 + $0x258] sm:$0xff]  ;;  %v1590_v43 = vld [vmem:[%s2514_s3 + $0x250] sm:$0xff]  ;;  %v1597_v44 = vld [vmem:[%s2514_s3 + $0x48] sm:$0xff] }
  0x1c   : > { %673 = vmatprep.subr.mxu1 %v1506_v29  ;;  %603 = vmatpush1.msra.mxu0 %v1513_v30  ;;  %2602 = vst [vmem:[#allocation13_spill] sm:$0xff] %v1578_v41  ;;  %2603 = vst [vmem:[#allocation14_spill] sm:$0xff] %v1590_v43  ;;  %v1602_v45 = vld [vmem:[%s2514_s3 + $0x248] sm:$0xff]  ;;  %v1609_v46 = vld [vmem:[%s2514_s3 + $0x40] sm:$0xff] }
  0x1d   : > { %674 = vmatpush1.msra.mxu1 %v1518_v31  ;;  %604 = vmatprep.subr.mxu0 %v1525_v32  ;;  %2604 = vst [vmem:[#allocation15_spill] sm:$0xff] %v1602_v45  ;;  %v1614_v47 = vld [vmem:[%s2514_s3 + $0x240] sm:$0xff]  ;;  %v1621_v48 = vld [vmem:[%s2514_s3 + $0x38] sm:$0xff]  ;;  %v1633_v50 = vld [vmem:[%s2514_s3 + $0x30] sm:$0xff]  ;;  %v388_v31 = vlaneseq }
  0x1e   : > { %675 = vmatprep.subr.mxu1 %v1530_v33  ;;  %605 = vmatpush1.msra.mxu0 %v1537_v34  ;;  %2605 = vst [vmem:[#allocation16_spill] sm:$0xff] %v1614_v47  ;;  %v1626_v49 = vld [vmem:[%s2514_s3 + $0x238] sm:$0xff]  ;;  %v1638_v51 = vld [vmem:[%s2514_s3 + $0x230] sm:$0xff]  ;;  %v1645_v52 = vld [vmem:[%s2514_s3 + $0x28] sm:$0xff] }
  0x1f   : > { %676 = vmatpush1.msra.mxu1 %v1542_v35  ;;  %606 = vmatprep.subr.mxu0 %v1549_v36  ;;  %2606 = vst [vmem:[#allocation17_spill] sm:$0xff] %v1626_v49  ;;  %2607 = vst [vmem:[#allocation18_spill] sm:$0xff] %v1638_v51  ;;  %v1650_v53 = vld [vmem:[%s2514_s3 + $0x228] sm:$0xff]  ;;  %v1657_v54 = vld [vmem:[%s2514_s3 + $0x20] sm:$0xff] }
  0x20   : > { %677 = vmatprep.subr.mxu1 %v1554_v37  ;;  %607 = vmatpush1.msra.mxu0 %v1561_v38  ;;  %2608 = vst [vmem:[#allocation19_spill] sm:$0xff] %v1650_v53  ;;  %v1662_v55 = vld [vmem:[%s2514_s3 + $0x220] sm:$0xff]  ;;  %v1669_v56 = vld [vmem:[%s2514_s3 + $0x18] sm:$0xff]  ;;  %v1681_v58 = vld [vmem:[%s2514_s3 + $0x10] sm:$0xff] }
  0x21   : > { %678 = vmatpush1.msra.mxu1 %v1566_v39  ;;  %608 = vmatprep.subr.mxu0 %v1573_v40  ;;  %2609 = vst [vmem:[#allocation20_spill] sm:$0xff] %v1662_v55  ;;  %v1674_v57 = vld [vmem:[%s2514_s3 + $0x218] sm:$0xff]  ;;  %v1686_v59 = vld [vmem:[%s2514_s3 + $0x210] sm:$0xff]  ;;  %v1693_v60 = vld [vmem:[%s2514_s3 + $0x8] sm:$0xff] }
  0x22   : > { %679 = vmatprep.subr.mxu1 %v1578_v41  ;;  %609 = vmatpush1.msra.mxu0 %v1585_v42  ;;  %2610 = vst [vmem:[#allocation21_spill] sm:$0xff] %v1674_v57  ;;  %2611 = vst [vmem:[#allocation22_spill] sm:$0xff] %v1686_v59  ;;  %v1698_v61 = vld [vmem:[%s2514_s3 + $0x208] sm:$0xff]  ;;  %v1705_v62 = vld [vmem:[%s2514_s3] sm:$0xff] }
  0x23   : > { %680 = vmatpush1.msra.mxu1 %v1590_v43  ;;  %610 = vmatprep.subr.mxu0 %v1597_v44  ;;  %2612 = vst [vmem:[#allocation23_spill] sm:$0xff] %v1698_v61  ;;  %v1710_v63 = vld [vmem:[%s2514_s3 + $0x200] sm:$0xff]  ;;  %v1789_v43 = vld [vmem:[%s2514_s3 + $0x1c8] sm:$0xff]  ;;  %v1813_v39 = vld [vmem:[%s2514_s3 + $0x1b8] sm:$0xff] }
  0x24   : > { %681 = vmatprep.subr.mxu1 %v1602_v45  ;;  %611 = vmatpush1.msra.mxu0 %v1609_v46  ;;  %2613 = vst [vmem:[#allocation24_spill] sm:$0xff] %v1710_v63  ;;  %v1777_v45 = vld [vmem:[%s2514_s3 + $0x1d0] sm:$0xff]  ;;  %v1801_v41 = vld [vmem:[%s2514_s3 + $0x1c0] sm:$0xff]  ;;  %v1837_v35 = vld [vmem:[%s2514_s3 + $0x1a8] sm:$0xff] }
  0x25   : > { %682 = vmatpush1.msra.mxu1 %v1614_v47  ;;  %612 = vmatprep.subr.mxu0 %v1621_v48  ;;  %v1765_v47 = vld [vmem:[%s2514_s3 + $0x1d8] sm:$0xff]  ;;  %v1825_v37 = vld [vmem:[%s2514_s3 + $0x1b0] sm:$0xff]  ;;  %2624 = vst [vmem:[#allocation35_spill] sm:$0xff] %v1837_v35  ;;  %v1849_v33 = vld [vmem:[%s2514_s3 + $0x1a0] sm:$0xff] }
  0x26   : > { %683 = vmatprep.subr.mxu1 %v1626_v49  ;;  %613 = vmatpush1.msra.mxu0 %v1633_v50  ;;  %v1753_v49 = vld [vmem:[%s2514_s3 + $0x1e0] sm:$0xff]  ;;  %2626 = vst [vmem:[#allocation37_spill] sm:$0xff] %v1849_v33  ;;  %v1861_v29 = vld [vmem:[%s2514_s3 + $0x198] sm:$0xff]  ;;  %v1873_v27 = vld [vmem:[%s2514_s3 + $0x190] sm:$0xff] }
  0x27   : > { %684 = vmatpush1.msra.mxu1 %v1638_v51  ;;  %614 = vmatprep.subr.mxu0 %v1645_v52  ;;  %v1741_v51 = vld [vmem:[%s2514_s3 + $0x1e8] sm:$0xff]  ;;  %2628 = vst [vmem:[#allocation39_spill] sm:$0xff] %v1861_v29  ;;  %2630 = vst [vmem:[#allocation41_spill] sm:$0xff] %v1873_v27  ;;  %v1897_v23 = vld [vmem:[%s2514_s3 + $0x180] sm:$0xff] }
  0x28   : > { %685 = vmatprep.subr.mxu1 %v1650_v53  ;;  %615 = vmatpush1.msra.mxu0 %v1657_v54  ;;  %v1729_v53 = vld [vmem:[%s2514_s3 + $0x1f0] sm:$0xff]  ;;  %v1885_v25 = vld [vmem:[%s2514_s3 + $0x188] sm:$0xff]  ;;  %2634 = vst [vmem:[#allocation45_spill] sm:$0xff] %v1897_v23  ;;  %v2120_v19 = vld [vmem:[%s2514_s3 + $0x300] sm:$0xff] }
  0x29   : > { %686 = vmatpush1.msra.mxu1 %v1662_v55  ;;  %616 = vmatprep.subr.mxu0 %v1669_v56  ;;  %v1717_v55 = vld [vmem:[%s2514_s3 + $0x1f8] sm:$0xff]  ;;  %2632 = vst [vmem:[#allocation43_spill] sm:$0xff] %v1885_v25  ;;  %v2087_v21 = vld [vmem:[%s2514_s3 + $0x110] sm:$0xff] }
  0x2a   : > { %687 = vmatprep.subr.mxu1 %v1674_v57  ;;  %617 = vmatpush1.msra.mxu0 %v1681_v58  ;;  %v1722_v57 = vld [vmem:[%s2514_s3 + $0x3f8] sm:$0xff] }
  0x2b   : > { %688 = vmatpush1.msra.mxu1 %v1686_v59  ;;  %2614 = vst [vmem:[#allocation25_spill] sm:$0xff] %v1722_v57  ;;  %618 = vmatprep.subr.mxu0 %v1693_v60  ;;  %v1734_v59 = vld [vmem:[%s2514_s3 + $0x3f0] sm:$0xff] }
  0x2c   : > { %689 = vmatprep.subr.mxu1 %v1698_v61  ;;  %2615 = vst [vmem:[#allocation26_spill] sm:$0xff] %v1734_v59  ;;  %619 = vmatpush1.msra.mxu0 %v1705_v62  ;;  %v1746_v61 = vld [vmem:[%s2514_s3 + $0x3e8] sm:$0xff] }
  0x2d   : > { %690 = vmatpush1.msra.mxu1 %v1710_v63  ;;  %2616 = vst [vmem:[#allocation27_spill] sm:$0xff] %v1746_v61  ;;  %620 = vmatprep.subr.mxu0 %v1717_v55  ;;  %v1758_v63 = vld [vmem:[%s2514_s3 + $0x3e0] sm:$0xff] }
  0x2e   : > { %691 = vmatprep.subr.mxu1 %v1722_v57  ;;  %2617 = vst [vmem:[#allocation28_spill] sm:$0xff] %v1758_v63  ;;  %621 = vmatpush2.msra.mxu0 %v1729_v53  ;;  %v1770_v57 = vld [vmem:[%s2514_s3 + $0x3d8] sm:$0xff] }
  0x2f   : > { %692 = vmatpush2.msra.mxu1 %v1734_v59  ;;  %2618 = vst [vmem:[#allocation29_spill] sm:$0xff] %v1770_v57  ;;  %622 = vmatprep.subr.mxu0 %v1741_v51  ;;  %v1782_v59 = vld [vmem:[%s2514_s3 + $0x3d0] sm:$0xff] }
  0x30   : > { %693 = vmatprep.subr.mxu1 %v1746_v61  ;;  %2619 = vst [vmem:[#allocation30_spill] sm:$0xff] %v1782_v59  ;;  %623 = vmatpush2.msra.mxu0 %v1753_v49  ;;  %v1794_v61 = vld [vmem:[%s2514_s3 + $0x3c8] sm:$0xff] }
  0x31   : > { %694 = vmatpush2.msra.mxu1 %v1758_v63  ;;  %2620 = vst [vmem:[#allocation31_spill] sm:$0xff] %v1794_v61  ;;  %624 = vmatprep.subr.mxu0 %v1765_v47  ;;  %v1806_v63 = vld [vmem:[%s2514_s3 + $0x3c0] sm:$0xff] }
  0x32   : > { %695 = vmatprep.subr.mxu1 %v1770_v57  ;;  %2621 = vst [vmem:[#allocation32_spill] sm:$0xff] %v1806_v63  ;;  %625 = vmatpush2.msra.mxu0 %v1777_v45  ;;  %v1818_v57 = vld [vmem:[%s2514_s3 + $0x3b8] sm:$0xff] }
  0x33   : > { %696 = vmatpush2.msra.mxu1 %v1782_v59  ;;  %2622 = vst [vmem:[#allocation33_spill] sm:$0xff] %v1818_v57  ;;  %626 = vmatprep.subr.mxu0 %v1789_v43  ;;  %v1830_v59 = vld [vmem:[%s2514_s3 + $0x3b0] sm:$0xff] }
  0x34   : > { %697 = vmatprep.subr.mxu1 %v1794_v61  ;;  %2623 = vst [vmem:[#allocation34_spill] sm:$0xff] %v1830_v59  ;;  %627 = vmatpush2.msra.mxu0 %v1801_v41  ;;  %v1842_v61 = vld [vmem:[%s2514_s3 + $0x3a8] sm:$0xff] }
  0x35   : > { %698 = vmatpush2.msra.mxu1 %v1806_v63  ;;  %2625 = vst [vmem:[#allocation36_spill] sm:$0xff] %v1842_v61  ;;  %628 = vmatprep.subr.mxu0 %v1813_v39  ;;  %v1854_v63 = vld [vmem:[%s2514_s3 + $0x3a0] sm:$0xff] }
  0x36   : > { %699 = vmatprep.subr.mxu1 %v1818_v57  ;;  %2627 = vst [vmem:[#allocation38_spill] sm:$0xff] %v1854_v63  ;;  %629 = vmatpush2.msra.mxu0 %v1825_v37  ;;  %v1866_v57 = vld [vmem:[%s2514_s3 + $0x398] sm:$0xff] }
  0x37   : > { %700 = vmatpush2.msra.mxu1 %v1830_v59  ;;  %2629 = vst [vmem:[#allocation40_spill] sm:$0xff] %v1866_v57  ;;  %630 = vmatprep.subr.mxu0 %v1837_v35  ;;  %v1878_v59 = vld [vmem:[%s2514_s3 + $0x390] sm:$0xff] }
  0x38   : > { %701 = vmatprep.subr.mxu1 %v1842_v61  ;;  %2631 = vst [vmem:[#allocation42_spill] sm:$0xff] %v1878_v59  ;;  %631 = vmatpush2.msra.mxu0 %v1849_v33  ;;  %v1890_v61 = vld [vmem:[%s2514_s3 + $0x388] sm:$0xff]  ;;  %v1904_v33 = vshrl.u32 %v388_v31, 7  ;;  %v1923_v31 = vld [vmem:[%s2514_s3 + $0x170] sm:$0xff] }
  0x39   : > { %702 = vmatpush2.msra.mxu1 %v1854_v63  ;;  %2633 = vst [vmem:[#allocation44_spill] sm:$0xff] %v1890_v61  ;;  %632 = vmatprep.subr.mxu0 %v1861_v29  ;;  %v1902_v63 = vld [vmem:[%s2514_s3 + $0x380] sm:$0xff]  ;;  %v1916_v29 = vld [vmem:[%s2514_s3 + $0x378] sm:$0xff]  ;;  %2639 = vst [vmem:[#allocation50_spill] sm:$0xff] %v1923_v31 }
  0x3a   : > { %703 = vmatprep.subr.mxu1 %v1866_v57  ;;  %2635 = vst [vmem:[#allocation46_spill] sm:$0xff] %v1902_v63  ;;  %2636 = vst [vmem:[#allocation47_spill] sm:$0xff] %v1904_v33  ;;  %633 = vmatpush2.msra.mxu0 %v1873_v27  ;;  %v1911_v57 = vld [vmem:[%s2514_s3 + $0x178] sm:$0xff]  ;;  %v390_v27 = vmul.u32 3, %v1904_v33  ;;  %v1973_v33 = vld [vmem:[%s2514_s3 + $0x150] sm:$0xff] }
  0x3b   : > { %704 = vmatpush2.msra.mxu1 %v1878_v59  ;;  %2637 = vst [vmem:[#allocation48_spill] sm:$0xff] %v1911_v57  ;;  %2638 = vst [vmem:[#allocation49_spill] sm:$0xff] %v1916_v29  ;;  %634 = vmatprep.subr.mxu0 %v1885_v25  ;;  %v1928_v59 = vld [vmem:[%s2514_s3 + $0x370] sm:$0xff]  ;;  %v1941_v25 = vld [vmem:[%s2514_s3 + $0x368] sm:$0xff] }
  0x3c   : > { %705 = vmatprep.subr.mxu1 %v1890_v61  ;;  %2640 = vst [vmem:[#allocation51_spill] sm:$0xff] %v1928_v59  ;;  %635 = vmatpush2.msra.mxu0 %v1897_v23  ;;  %v1936_v61 = vld [vmem:[%s2514_s3 + $0x168] sm:$0xff]  ;;  %2642 = vst [vmem:[#allocation53_spill] sm:$0xff] %v1941_v25  ;;  %v1953_v23 = vld [vmem:[%s2514_s3 + $0x360] sm:$0xff] }
  0x3d   : > { %706 = vmatpush2.msra.mxu1 %v1902_v63  ;;  %2641 = vst [vmem:[#allocation52_spill] sm:$0xff] %v1936_v61  ;;  %636 = vmatprep.subr.mxu0 %v1911_v57  ;;  %v1948_v63 = vld [vmem:[%s2514_s3 + $0x160] sm:$0xff]  ;;  %2644 = vst [vmem:[#allocation55_spill] sm:$0xff] %v1953_v23  ;;  %v1966_v57 = vld [vmem:[%s2514_s3 + $0x358] sm:$0xff] }
  0x3e   : > { %707 = vmatprep.subr.mxu1 %v1916_v29  ;;  %2643 = vst [vmem:[#allocation54_spill] sm:$0xff] %v1948_v63  ;;  %637 = vmatpush2.msra.mxu0 %v1923_v31  ;;  %v1961_v29 = vld [vmem:[%s2514_s3 + $0x158] sm:$0xff]  ;;  %2646 = vst [vmem:[#allocation57_spill] sm:$0xff] %v1966_v57  ;;  %v2009_v31 = vadd.s32 1, %v390_v27  ;;  %v2028_v27 = vld [vmem:[%s2514_s3 + $0x130] sm:$0xff] }
  0x3f   : > { %708 = vmatpush2.msra.mxu1 %v1928_v59  ;;  %2645 = vst [vmem:[#allocation56_spill] sm:$0xff] %v1961_v29  ;;  %638 = vmatprep.subr.mxu0 %v1936_v61  ;;  %2647 = vst [vmem:[#allocation58_spill] sm:$0xff] %v1973_v33  ;;  %v1978_v59 = vld [vmem:[%s2514_s3 + $0x350] sm:$0xff]  ;;  %v1995_v61 = vld [vmem:[%s2514_s3 + $0x348] sm:$0xff] }
  0x40   : > { %709 = vmatprep.subr.mxu1 %v1941_v25  ;;  %2648 = vst [vmem:[#allocation59_spill] sm:$0xff] %v1978_v59  ;;  %639 = vmatpush2.msra.mxu0 %v1948_v63  ;;  %v1990_v25 = vld [vmem:[%s2514_s3 + $0x148] sm:$0xff]  ;;  %2650 = vst [vmem:[#allocation61_spill] sm:$0xff] %v1995_v61  ;;  %v2002_v63 = vld [vmem:[%s2514_s3 + $0x140] sm:$0xff]  ;;  %vm396_vm1 = vcmp.lt.s32.totalorder %v2009_v31, 1 }
  0x41   : > { %710 = vmatpush2.msra.mxu1 %v1953_v23  ;;  %2649 = vst [vmem:[#allocation60_spill] sm:$0xff] %v1990_v25  ;;  %640 = vmatprep.subr.mxu0 %v1961_v29  ;;  %2651 = vst [vmem:[#allocation62_spill] sm:$0xff] %v2002_v63  ;;  %v2007_v23 = vld [vmem:[%s2514_s3 + $0x340] sm:$0xff]  ;;  %v2021_v29 = vld [vmem:[%s2514_s3 + $0x338] sm:$0xff] }
  0x42   : > { %711 = vmatprep.subr.mxu1 %v1966_v57  ;;  %2652 = vst [vmem:[#allocation63_spill] sm:$0xff] %v2007_v23  ;;  %641 = vmatpush2.msra.mxu0 %v1973_v33  ;;  %v2016_v57 = vld [vmem:[%s2514_s3 + $0x138] sm:$0xff]  ;;  %2654 = vst [vmem:[#allocation65_spill] sm:$0xff] %v2021_v29  ;;  %v402_v33 = vadd.s32 1, %v2009_v31  ;;  %v2092_v35 = vld [vmem:[%s2514_s3 + $0x310] sm:$0xff] }
  0x43   : > { %712 = vmatpush2.msra.mxu1 %v1978_v59  ;;  %2653 = vst [vmem:[#allocation64_spill] sm:$0xff] %v2016_v57  ;;  %642 = vmatprep.subr.mxu0 %v1990_v25  ;;  %2655 = vst [vmem:[#allocation66_spill] sm:$0xff] %v2028_v27  ;;  %v2033_v59 = vld [vmem:[%s2514_s3 + $0x330] sm:$0xff]  ;;  %v2046_v25 = vld [vmem:[%s2514_s3 + $0x328] sm:$0xff] }
  0x44   : > { %713 = vmatprep.subr.mxu1 %v1995_v61  ;;  %2656 = vst [vmem:[#allocation67_spill] sm:$0xff] %v2033_v59  ;;  %643 = vmatpush2.msra.mxu0 %v2002_v63  ;;  %v2041_v61 = vld [vmem:[%s2514_s3 + $0x128] sm:$0xff]  ;;  %2658 = vst [vmem:[#allocation69_spill] sm:$0xff] %v2046_v25  ;;  %v2053_v63 = vld [vmem:[%s2514_s3 + $0x120] sm:$0xff]  ;;  %vm403_vm0 = vcmp.lt.s32.totalorder %v402_v33, 1 }
  0x45   : > { %714 = vmatpush2.msra.mxu1 %v2007_v23  ;;  %2657 = vst [vmem:[#allocation68_spill] sm:$0xff] %v2041_v61  ;;  %644 = vmatprep.subr.mxu0 %v2016_v57  ;;  %2659 = vst [vmem:[#allocation70_spill] sm:$0xff] %v2053_v63  ;;  %v2058_v23 = vld [vmem:[%s2514_s3 + $0x320] sm:$0xff]  ;;  %v2071_v57 = vld [vmem:[%s2514_s3 + $0x318] sm:$0xff] }
  0x46   : > { %715 = vmatprep.subr.mxu1 %v2021_v29  ;;  %2660 = vst [vmem:[#allocation71_spill] sm:$0xff] %v2058_v23  ;;  %645 = vmatpush2.msra.mxu0 %v2028_v27  ;;  %v2066_v29 = vld [vmem:[%s2514_s3 + $0x118] sm:$0xff]  ;;  %2662 = vst [vmem:[#allocation73_spill] sm:$0xff] %v2071_v57  ;;  %v416_v27 = vadd.s32 3, %v2009_v31 }
  0x47   : > { %716 = vmatpush2.msra.mxu1 %v2033_v59  ;;  %2661 = vst [vmem:[#allocation72_spill] sm:$0xff] %v2066_v29  ;;  %v409_v59 = vadd.s32 2, %v2009_v31  ;;  %646 = vmatprep.subr.mxu0 %v2041_v61  ;;  %2663 = vst [vmem:[#allocation74_spill] sm:$0xff] %v2092_v35  ;;  %v2099_v61 = vld [vmem:[%s2514_s3 + $0x108] sm:$0xff] }
  0x48   : > { %717 = vmatprep.subr.mxu1 %v2046_v25  ;;  %647 = vmatpush2.msra.mxu0 %v2053_v63  ;;  %v2104_v25 = vld [vmem:[%s2514_s3 + $0x308] sm:$0xff]  ;;  %vm417_vm2 = vcmp.lt.s32.totalorder %v416_v27, 1  ;;  %v423_v27 = vadd.s32 4, %v2009_v31 }
  0x49   : > { %718 = vmatpush2.msra.mxu1 %v2058_v23  ;;  %648 = vmatprep.subr.mxu0 %v2066_v29  ;;  %v2111_v23 = vld [vmem:[%s2514_s3 + $0x100] sm:$0xff]  ;;  %vm410_vm3 = vcmp.lt.s32.totalorder %v409_v59, 1  ;;  %v2137_v59 = vld [vmem:[%s2514_s3 + $0x4f0] sm:$0xff] }
  0x4a   : > { %719 = vmatprep.subr.mxu1 %v2071_v57  ;;  %v1220_v63 = vld [vmem:[%s2078_s12 + $0x2] ss:$3 sm:$0x7f]  ;;  %649 = vmatpush2.msra.mxu0 %v2087_v21  ;;  %v1222_v29 = vld [vmem:[%s2078_s12 + $0x4] ss:$3 sm:$0x7f] }
  0x4b   : > { %720 = vmatpush2.msra.mxu1 %v2092_v35  ;;  %650 = vmatprep.subr.mxu0 %v2099_v61  ;;  %v1219_v57 = vld [vmem:[%s2078_s12 + $0x1] ss:$3 sm:$0x7f]  ;;  %v1221_v33 = vld [vmem:[%s2078_s12 + $0x3] ss:$3 sm:$0x7f] }
  0x4c   : > { %721 = vmatprep.subr.mxu1 %v2104_v25  ;;  %651 = vmatpush2.msra.mxu0 %v2111_v23  ;;  %v2131_v35 = vld [vmem:[%s2514_s3 + $0x4f8] sm:$0xff]  ;;  %v1223_v31 = vld [vmem:[%s2078_s12 + $0x5] ss:$3 sm:$0x7f]  ;;  %vm424_vm4 = vcmp.lt.s32.totalorder %v423_v27, 1 }
  0x4d   : > { %1224 = vmatprep.mubr.msk.f32.mxu0 %vm403_vm0, %v1220_v63  ;;  %722 = vmatpush2.msra.mxu1 %v2120_v19  ;;  %v2144_v63 = vld [vmem:[%s2514_s3 + $0x4e8] sm:$0xff]  ;;  %v2688_v27 = vld [vmem:[#allocation14_spill] sm:$0xff] }
  0x4e   : > { %1226 = vmatprep.mubr.msk.f32.mxu1 %vm417_vm2, %v1222_v29  ;;  %1225 = vmatmul.mubr.msk.f32.vlgmr.msra.gmra.mxu0 %vm396_vm1, %v1219_v57  ;;  %v2151_v29 = vld [vmem:[%s2514_s3 + $0x4e0] sm:$0xff]  ;;  %v2158_v57 = vld [vmem:[%s2514_s3 + $0x4d8] sm:$0xff] }
  0x4f   : > { %1227 = vmatmul.mubr.msk.f32.vlgmr.msra.gmra.mxu1 %vm410_vm3, %v1221_v33  ;;  %730 = vmatprep.subr.mxu0 %v2131_v35  ;;  %v2687_v33 = vld [vmem:[#allocation58_spill] sm:$0xff] }
  0x50   : > { %839 = vmatprep.subr.mxu1 %v1337_v0  ;;  %731 = vmatpush1.msra.mxu0 %v2137_v59  ;;  %v2165_v0 = vld [vmem:[%s2514_s3 + $0x4d0] sm:$0xff] }
  0x51   : > { %840 = vmatpush1.msra.mxu1 %v1347_v2  ;;  %732 = vmatprep.subr.mxu0 %v2144_v63  ;;  %v2172_v2 = vld [vmem:[%s2514_s3 + $0x4c8] sm:$0xff] }
  0x52   : > { %841 = vmatprep.subr.mxu1 %v1359_v4  ;;  %733 = vmatpush1.msra.mxu0 %v2151_v29  ;;  %v2179_v4 = vld [vmem:[%s2514_s3 + $0x4c0] sm:$0xff] }
  0x53   : > { %842 = vmatpush1.msra.mxu1 %v1371_v6  ;;  %734 = vmatprep.subr.mxu0 %v2158_v57  ;;  %v2186_v6 = vld [vmem:[%s2514_s3 + $0x4b8] sm:$0xff] }
  0x54   : > { %843 = vmatprep.subr.mxu1 %v1381_v8  ;;  %735 = vmatpush1.msra.mxu0 %v2165_v0  ;;  %v2193_v8 = vld [vmem:[%s2514_s3 + $0x4b0] sm:$0xff] }
  0x55   : > { %844 = vmatpush1.msra.mxu1 %v1393_v10  ;;  %736 = vmatprep.subr.mxu0 %v2172_v2  ;;  %v2200_v10 = vld [vmem:[%s2514_s3 + $0x4a8] sm:$0xff] }
  0x56   : > { %845 = vmatprep.subr.mxu1 %v1405_v12  ;;  %737 = vmatpush1.msra.mxu0 %v2179_v4  ;;  %v2207_v12 = vld [vmem:[%s2514_s3 + $0x4a0] sm:$0xff] }
  0x57   : > { %846 = vmatpush1.msra.mxu1 %v1417_v14  ;;  %738 = vmatprep.subr.mxu0 %v2186_v6  ;;  %v2214_v14 = vld [vmem:[%s2514_s3 + $0x498] sm:$0xff] }
  0x58   : > { %847 = vmatprep.subr.mxu1 %v1429_v16  ;;  %739 = vmatpush1.msra.mxu0 %v2193_v8  ;;  %v2221_v16 = vld [vmem:[%s2514_s3 + $0x490] sm:$0xff] }
  0x59   : > { %848 = vmatpush1.msra.mxu1 %v1441_v18  ;;  %740 = vmatprep.subr.mxu0 %v2200_v10  ;;  %v2228_v18 = vld [vmem:[%s2514_s3 + $0x488] sm:$0xff] }
  0x5a   : > { %849 = vmatprep.subr.mxu1 %v1453_v20  ;;  %741 = vmatpush1.msra.mxu0 %v2207_v12  ;;  %v2235_v20 = vld [vmem:[%s2514_s3 + $0x480] sm:$0xff] }
  0x5b   : > { %850 = vmatpush1.msra.mxu1 %v1465_v22  ;;  %742 = vmatprep.subr.mxu0 %v2214_v14  ;;  %v2242_v22 = vld [vmem:[%s2514_s3 + $0x478] sm:$0xff] }
  0x5c   : > { %851 = vmatprep.subr.mxu1 %v1477_v24  ;;  %743 = vmatpush1.msra.mxu0 %v2221_v16  ;;  %v2249_v24 = vld [vmem:[%s2514_s3 + $0x470] sm:$0xff] }
  0x5d   : > { %852 = vmatpush1.msra.mxu1 %v1489_v26  ;;  %744 = vmatprep.subr.mxu0 %v2228_v18  ;;  %v2256_v26 = vld [vmem:[%s2514_s3 + $0x468] sm:$0xff] }
  0x5e   : > { %853 = vmatprep.subr.mxu1 %v1501_v28  ;;  %745 = vmatpush1.msra.mxu0 %v2235_v20  ;;  %v2263_v28 = vld [vmem:[%s2514_s3 + $0x460] sm:$0xff] }
  0x5f   : > { %854 = vmatpush1.msra.mxu1 %v1513_v30  ;;  %746 = vmatprep.subr.mxu0 %v2242_v22  ;;  %v2270_v30 = vld [vmem:[%s2514_s3 + $0x458] sm:$0xff] }
  0x60   : > { %855 = vmatprep.subr.mxu1 %v1525_v32  ;;  %747 = vmatpush1.msra.mxu0 %v2249_v24  ;;  %v2277_v32 = vld [vmem:[%s2514_s3 + $0x450] sm:$0xff] }
  0x61   : > { %856 = vmatpush1.msra.mxu1 %v1537_v34  ;;  %748 = vmatprep.subr.mxu0 %v2256_v26  ;;  %v2284_v34 = vld [vmem:[%s2514_s3 + $0x448] sm:$0xff] }
  0x62   : > { %857 = vmatprep.subr.mxu1 %v1549_v36  ;;  %749 = vmatpush1.msra.mxu0 %v2263_v28  ;;  %v2291_v36 = vld [vmem:[%s2514_s3 + $0x440] sm:$0xff] }
  0x63   : > { %858 = vmatpush1.msra.mxu1 %v1561_v38  ;;  %750 = vmatprep.subr.mxu0 %v2270_v30  ;;  %v2298_v38 = vld [vmem:[%s2514_s3 + $0x438] sm:$0xff] }
  0x64   : > { %859 = vmatprep.subr.mxu1 %v1573_v40  ;;  %751 = vmatpush1.msra.mxu0 %v2277_v32  ;;  %v2305_v40 = vld [vmem:[%s2514_s3 + $0x430] sm:$0xff] }
  0x65   : > { %860 = vmatpush1.msra.mxu1 %v1585_v42  ;;  %752 = vmatprep.subr.mxu0 %v2284_v34  ;;  %v2312_v42 = vld [vmem:[%s2514_s3 + $0x428] sm:$0xff] }
  0x66   : > { %861 = vmatprep.subr.mxu1 %v1597_v44  ;;  %753 = vmatpush1.msra.mxu0 %v2291_v36  ;;  %v2319_v44 = vld [vmem:[%s2514_s3 + $0x420] sm:$0xff] }
  0x67   : > { %862 = vmatpush1.msra.mxu1 %v1609_v46  ;;  %754 = vmatprep.subr.mxu0 %v2298_v38  ;;  %v2326_v46 = vld [vmem:[%s2514_s3 + $0x418] sm:$0xff] }
  0x68   : > { %863 = vmatprep.subr.mxu1 %v1621_v48  ;;  %755 = vmatpush1.msra.mxu0 %v2305_v40  ;;  %v2334_v48 = vld [vmem:[%s2514_s3 + $0x410] sm:$0xff] }
  0x69   : > { %864 = vmatpush1.msra.mxu1 %v1633_v50  ;;  %756 = vmatprep.subr.mxu0 %v2312_v42  ;;  %v2341_v50 = vld [vmem:[%s2514_s3 + $0x408] sm:$0xff] }
  0x6a   : > { %865 = vmatprep.subr.mxu1 %v1645_v52  ;;  %757 = vmatpush1.msra.mxu0 %v2319_v44  ;;  %v2348_v52 = vld [vmem:[%s2514_s3 + $0x400] sm:$0xff] }
  0x6b   : > { %866 = vmatpush1.msra.mxu1 %v1657_v54  ;;  %758 = vmatprep.subr.mxu0 %v2326_v46  ;;  %v1283_v54 = vmov 0.0  }
  0x6c   : > { %867 = vmatprep.subr.mxu1 %v1669_v56  ;;  %759 = vmatpush1.msra.mxu0 %v2334_v48  ;;  %v2683_v56 = vld [vmem:[#allocation54_spill] sm:$0xff] }
  0x6d   : > { %868 = vmatpush1.msra.mxu1 %v1681_v58  ;;  %760 = vmatprep.subr.mxu0 %v2341_v50  ;;  %v2684_v58 = vld [vmem:[#allocation12_spill] sm:$0xff] }
  0x6e   : > { %869 = vmatprep.subr.mxu1 %v1693_v60  ;;  %761 = vmatpush1.msra.mxu0 %v2348_v52  ;;  %v2685_v60 = vld [vmem:[#allocation56_spill] sm:$0xff] }
  0x6f   : > { %794 = vmatprep.mubr.f32.mxu0 %v1283_v54  ;;  %870 = vmatpush1.msra.mxu1 %v1705_v62  ;;  %v2686_v62 = vld [vmem:[#allocation13_spill] sm:$0xff] }
  0x70   : > { %1228 = vmatmul.mubr.msk.f32.vlgmr.msra.gmra.mxu0 %vm424_vm4, %v1223_v31  ;;  %871 = vmatprep.subr.mxu1 %v1717_v55  ;;  %v2682_v55 = vld [vmem:[#allocation11_spill] sm:$0xff]  ;;  %v2689_v31 = vld [vmem:[#allocation60_spill] sm:$0xff] }
  0x71   : > { %910 = vmatprep.subr.mxu0 %v1342_v1  ;;  %872 = vmatpush2.msra.mxu1 %v1729_v53  ;;  %v2664_v1 = vld [vmem:[#allocation2_spill] sm:$0xff]  ;;  %v2681_v53 = vld [vmem:[#allocation52_spill] sm:$0xff] }
  0x72   : > { %911 = vmatpush1.msra.mxu0 %v1354_v3  ;;  %873 = vmatprep.subr.mxu1 %v1741_v51  ;;  %v2665_v3 = vld [vmem:[#allocation35_spill] sm:$0xff]  ;;  %v2680_v51 = vld [vmem:[#allocation10_spill] sm:$0xff] }
  0x73   : > { %912 = vmatprep.subr.mxu0 %v1364_v5  ;;  %874 = vmatpush2.msra.mxu1 %v1753_v49  ;;  %v2666_v5 = vld [vmem:[#allocation3_spill] sm:$0xff]  ;;  %v2679_v49 = vld [vmem:[#allocation50_spill] sm:$0xff] }
  0x74   : > { %913 = vmatpush1.msra.mxu0 %v1376_v7  ;;  %875 = vmatprep.subr.mxu1 %v1765_v47  ;;  %v2667_v7 = vld [vmem:[#allocation37_spill] sm:$0xff] }
  0x75   : > { %914 = vmatprep.subr.mxu0 %v1388_v9  ;;  %876 = vmatpush2.msra.mxu1 %v1777_v45  ;;  %v2668_v9 = vld [vmem:[#allocation4_spill] sm:$0xff]  ;;  %v2678_v47 = vld [vmem:[#allocation9_spill] sm:$0xff] }
  0x76   : > { %915 = vmatpush1.msra.mxu0 %v1398_v11  ;;  %877 = vmatprep.subr.mxu1 %v1789_v43  ;;  %v2669_v11 = vld [vmem:[#allocation39_spill] sm:$0xff]  ;;  %v2676_v43 = vld [vmem:[#allocation8_spill] sm:$0xff] }
  0x77   : > { %916 = vmatprep.subr.mxu0 %v1410_v13  ;;  %878 = vmatpush2.msra.mxu1 %v1801_v41  ;;  %v2670_v13 = vld [vmem:[#allocation5_spill] sm:$0xff]  ;;  %v2677_v45 = vld [vmem:[#allocation48_spill] sm:$0xff] }
  0x78   : > { %917 = vmatpush1.msra.mxu0 %v1422_v15  ;;  %879 = vmatprep.subr.mxu1 %v1813_v39  ;;  %v2671_v15 = vld [vmem:[#allocation41_spill] sm:$0xff]  ;;  %v2672_v39 = vld [vmem:[#allocation6_spill] sm:$0xff] }
  0x79   : > { %918 = vmatprep.subr.mxu0 %v1434_v17  ;;  %880 = vmatpush2.msra.mxu1 %v1825_v37  ;;  %v2673_v17 = vld [vmem:[#allocation43_spill] sm:$0xff]  ;;  %v2675_v41 = vld [vmem:[#allocation45_spill] sm:$0xff] }
  0x7a   : > { %919 = vmatpush1.msra.mxu0 %v2664_v1  ;;  %881 = vmatprep.subr.mxu1 %v2665_v3  ;;  %v2674_v37 = vld [vmem:[#allocation7_spill] sm:$0xff]  ;;  %v2691_v3 = vld [vmem:[#allocation62_spill] sm:$0xff] }
  0x7b   : > { %920 = vmatprep.subr.mxu0 %v2666_v5  ;;  %882 = vmatpush2.msra.mxu1 %v2667_v7  ;;  %v2690_v1 = vld [vmem:[#allocation15_spill] sm:$0xff]  ;;  %v2692_v5 = vld [vmem:[#allocation16_spill] sm:$0xff] }
  0x7c   : > { %921 = vmatpush1.msra.mxu0 %v2668_v9  ;;  %883 = vmatprep.subr.mxu1 %v2669_v11  ;;  %v2693_v7 = vld [vmem:[#allocation64_spill] sm:$0xff]  ;;  %v2694_v9 = vld [vmem:[#allocation17_spill] sm:$0xff]  ;;  %v2695_v11 = vld [vmem:[#allocation66_spill] sm:$0xff] }
  0x7d   : > { %922 = vmatprep.subr.mxu0 %v2670_v13  ;;  %884 = vmatpush2.msra.mxu1 %v2671_v15  ;;  %v2696_v13 = vld [vmem:[#allocation18_spill] sm:$0xff]  ;;  %v2697_v15 = vld [vmem:[#allocation68_spill] sm:$0xff] }
  0x7e   : > { %923 = vmatpush1.msra.mxu0 %v2672_v39  ;;  %885 = vmatprep.subr.mxu1 %v2673_v17  ;;  %v2698_v39 = vld [vmem:[#allocation19_spill] sm:$0xff]  ;;  %v2699_v17 = vld [vmem:[#allocation70_spill] sm:$0xff] }
  0x7f   : > { %924 = vmatprep.subr.mxu0 %v2674_v37  ;;  %886 = vmatpush2.msra.mxu1 %v2675_v41  ;;  %v2700_v37 = vld [vmem:[#allocation20_spill] sm:$0xff] }
  0x80   : > { %925 = vmatpush1.msra.mxu0 %v2676_v43  ;;  %887 = vmatprep.subr.mxu1 %v2677_v45  ;;  %v2701_v41 = vld [vmem:[#allocation72_spill] sm:$0xff]  ;;  %v2702_v43 = vld [vmem:[#allocation21_spill] sm:$0xff]  ;;  %v2703_v45 = vld [vmem:[#allocation22_spill] sm:$0xff] }
  0x81   : > { %926 = vmatprep.subr.mxu0 %v2678_v47  ;;  %888 = vmatpush2.msra.mxu1 %v2679_v49  ;;  %v2704_v47 = vld [vmem:[#allocation23_spill] sm:$0xff]  ;;  %v2705_v49 = vld [vmem:[#allocation24_spill] sm:$0xff] }
  0x82   : > { %927 = vmatpush1.msra.mxu0 %v2680_v51  ;;  %889 = vmatprep.subr.mxu1 %v2681_v53  ;;  %v2706_v51 = vld [vmem:[#allocation25_spill] sm:$0xff]  ;;  %v2707_v53 = vld [vmem:[#allocation26_spill] sm:$0xff] }
  0x83   : > { %928 = vmatprep.subr.mxu0 %v2682_v55  ;;  %890 = vmatpush2.msra.mxu1 %v2683_v56  ;;  %v2711_v55 = vld [vmem:[#allocation30_spill] sm:$0xff] }
  0x84   : > { %929 = vmatpush1.msra.mxu0 %v2684_v58  ;;  %891 = vmatprep.subr.mxu1 %v2685_v60  ;;  %v2736_v60 = vld [vmem:[#allocation47_spill] sm:$0xff] }
  0x85   : > { %930 = vmatprep.subr.mxu0 %v2686_v62  ;;  %892 = vmatpush2.msra.mxu1 %v2687_v33 }
  0x86   : > { %931 = vmatpush1.msra.mxu0 %v2688_v27  ;;  %893 = vmatprep.subr.mxu1 %v2689_v31 }
  0x87   : > { %932 = vmatprep.subr.mxu0 %v2690_v1  ;;  %894 = vmatpush2.msra.mxu1 %v2691_v3 }
  0x88   : > { %933 = vmatpush1.msra.mxu0 %v2692_v5  ;;  %895 = vmatprep.subr.mxu1 %v2693_v7 }
  0x89   : > { %934 = vmatprep.subr.mxu0 %v2694_v9  ;;  %896 = vmatpush2.msra.mxu1 %v2695_v11 }
  0x8a   : > { %935 = vmatpush1.msra.mxu0 %v2696_v13  ;;  %897 = vmatprep.subr.mxu1 %v2697_v15 }
  0x8b   : > { %936 = vmatprep.subr.mxu0 %v2698_v39  ;;  %898 = vmatpush2.msra.mxu1 %v2699_v17 }
  0x8c   : > { %937 = vmatpush1.msra.mxu0 %v2700_v37  ;;  %899 = vmatprep.subr.mxu1 %v2701_v41 }
  0x8d   : > { %938 = vmatprep.subr.mxu0 %v2702_v43  ;;  %900 = vmatpush2.msra.mxu1 %v2087_v21  ;;  %v2708_v21 = vld [vmem:[#allocation27_spill] sm:$0xff] }
  0x8e   : > { %939 = vmatpush1.msra.mxu0 %v2703_v45  ;;  %901 = vmatprep.subr.mxu1 %v2099_v61  ;;  %v2709_v61 = vld [vmem:[#allocation28_spill] sm:$0xff] }
  0x8f   : > { %940 = vmatprep.subr.mxu0 %v2704_v47  ;;  %902 = vmatpush2.msra.mxu1 %v2111_v23  ;;  %v2710_v23 = vld [vmem:[#allocation29_spill] sm:$0xff] }
  0x90   : > { %941 = vmatpush1.msra.mxu0 %v2705_v49  ;;  %903 = vmatprep.mubr.f32.mxu1 %v1283_v54 }
  0x91   : > { %942 = vmatprep.subr.mxu0 %v2706_v51  ;;  %981 = vmatprep.subr.mxu1 %v2131_v35  ;;  %v2712_v35 = vld [vmem:[#allocation31_spill] sm:$0xff] }
  0x92   : > { %904 = vmatmul.mubr.f32.vlgmr.msra.gmra.mxu1 %v1283_v54  ;;  %943 = vmatpush2.msra.mxu0 %v2707_v53 }
  0x93   : > { %982 = vmatpush1.msra.mxu1 %v2137_v59  ;;  %944 = vmatprep.subr.mxu0 %v2708_v21  ;;  %v2713_v59 = vld [vmem:[#allocation32_spill] sm:$0xff] }
  0x94   : > { %983 = vmatprep.subr.mxu1 %v2144_v63  ;;  %945 = vmatpush2.msra.mxu0 %v2709_v61  ;;  %v2714_v63 = vld [vmem:[#allocation33_spill] sm:$0xff] }
  0x95   : > { %984 = vmatpush1.msra.mxu1 %v2151_v29  ;;  %946 = vmatprep.subr.mxu0 %v2710_v23  ;;  %v2715_v29 = vld [vmem:[#allocation34_spill] sm:$0xff] }
  0x96   : > { %985 = vmatprep.subr.mxu1 %v2158_v57  ;;  %947 = vmatpush2.msra.mxu0 %v2711_v55  ;;  %v2716_v57 = vld [vmem:[#allocation36_spill] sm:$0xff] }
  0x97   : > { %986 = vmatpush1.msra.mxu1 %v2165_v0  ;;  %948 = vmatprep.subr.mxu0 %v2712_v35  ;;  %v2717_v0 = vld [vmem:[#allocation38_spill] sm:$0xff] }
  0x98   : > { %987 = vmatprep.subr.mxu1 %v2172_v2  ;;  %949 = vmatpush2.msra.mxu0 %v2713_v59  ;;  %v2718_v2 = vld [vmem:[#allocation40_spill] sm:$0xff] }
  0x99   : > { %988 = vmatpush1.msra.mxu1 %v2179_v4  ;;  %950 = vmatprep.subr.mxu0 %v2714_v63  ;;  %v2719_v4 = vld [vmem:[#allocation42_spill] sm:$0xff] }
  0x9a   : > { %989 = vmatprep.subr.mxu1 %v2186_v6  ;;  %951 = vmatpush2.msra.mxu0 %v2715_v29  ;;  %v2720_v6 = vld [vmem:[#allocation44_spill] sm:$0xff] }
  0x9b   : > { %990 = vmatpush1.msra.mxu1 %v2193_v8  ;;  %952 = vmatprep.subr.mxu0 %v2716_v57  ;;  %v2721_v8 = vld [vmem:[#allocation46_spill] sm:$0xff] }
  0x9c   : > { %991 = vmatprep.subr.mxu1 %v2200_v10  ;;  %953 = vmatpush2.msra.mxu0 %v2717_v0  ;;  %v2722_v10 = vld [vmem:[#allocation49_spill] sm:$0xff] }
  0x9d   : > { %992 = vmatpush1.msra.mxu1 %v2207_v12  ;;  %954 = vmatprep.subr.mxu0 %v2718_v2  ;;  %v2723_v12 = vld [vmem:[#allocation51_spill] sm:$0xff] }
  0x9e   : > { %993 = vmatprep.subr.mxu1 %v2214_v14  ;;  %955 = vmatpush2.msra.mxu0 %v2719_v4  ;;  %v2724_v14 = vld [vmem:[#allocation53_spill] sm:$0xff] }
  0x9f   : > { %994 = vmatpush1.msra.mxu1 %v2221_v16  ;;  %956 = vmatprep.subr.mxu0 %v2720_v6  ;;  %v2725_v16 = vld [vmem:[#allocation55_spill] sm:$0xff] }
  0xa0   : > { %995 = vmatprep.subr.mxu1 %v2228_v18  ;;  %957 = vmatpush2.msra.mxu0 %v2721_v8  ;;  %v2726_v18 = vld [vmem:[#allocation57_spill] sm:$0xff] }
  0xa1   : > { %996 = vmatpush1.msra.mxu1 %v2235_v20  ;;  %958 = vmatprep.subr.mxu0 %v2722_v10  ;;  %v2727_v20 = vld [vmem:[#allocation59_spill] sm:$0xff] }
  0xa2   : > { %997 = vmatprep.subr.mxu1 %v2242_v22  ;;  %959 = vmatpush2.msra.mxu0 %v2723_v12  ;;  %v2728_v22 = vld [vmem:[#allocation61_spill] sm:$0xff] }
  0xa3   : > { %998 = vmatpush1.msra.mxu1 %v2249_v24  ;;  %960 = vmatprep.subr.mxu0 %v2724_v14  ;;  %v2729_v24 = vld [vmem:[#allocation63_spill] sm:$0xff] }
  0xa4   : > { %999 = vmatprep.subr.mxu1 %v2256_v26  ;;  %961 = vmatpush2.msra.mxu0 %v2725_v16  ;;  %v2730_v26 = vld [vmem:[#allocation65_spill] sm:$0xff] }
  0xa5   : > { %1000 = vmatpush1.msra.mxu1 %v2263_v28  ;;  %962 = vmatprep.subr.mxu0 %v2726_v18  ;;  %v2731_v28 = vld [vmem:[#allocation67_spill] sm:$0xff] }
  0xa6   : > { %1001 = vmatprep.subr.mxu1 %v2270_v30  ;;  %963 = vmatpush2.msra.mxu0 %v2727_v20  ;;  %v2732_v30 = vld [vmem:[#allocation69_spill] sm:$0xff] }
  0xa7   : > { %1002 = vmatpush1.msra.mxu1 %v2277_v32  ;;  %964 = vmatprep.subr.mxu0 %v2728_v22  ;;  %v2733_v32 = vld [vmem:[#allocation71_spill] sm:$0xff] }
  0xa8   : > { %1003 = vmatprep.subr.mxu1 %v2284_v34  ;;  %965 = vmatpush2.msra.mxu0 %v2729_v24  ;;  %v2734_v34 = vld [vmem:[#allocation73_spill] sm:$0xff] }
  0xa9   : > { %1004 = vmatpush1.msra.mxu1 %v2291_v36  ;;  %966 = vmatprep.subr.mxu0 %v2730_v26  ;;  %v2735_v36 = vld [vmem:[#allocation74_spill] sm:$0xff] }
  0xaa   : > { %1005 = vmatprep.subr.mxu1 %v2298_v38  ;;  %967 = vmatpush2.msra.mxu0 %v2731_v28  ;;  %v820_v38 = vld [vmem:[%s2078_s12] sm:$0x1] }
  0xab   : > { %1006 = vmatpush1.msra.mxu1 %v2305_v40  ;;  %968 = vmatprep.subr.mxu0 %v2732_v30 }
  0xac   : > { %1007 = vmatprep.subr.mxu1 %v2312_v42  ;;  %969 = vmatpush2.msra.mxu0 %v2733_v32 }
  0xad   : > { %1008 = vmatpush1.msra.mxu1 %v2319_v44  ;;  %970 = vmatprep.subr.mxu0 %v2734_v34 }
  0xae   : > { %1009 = vmatprep.subr.mxu1 %v2326_v46  ;;  %971 = vmatpush2.msra.mxu0 %v2735_v36 }
  0xaf   : > { %1010 = vmatpush1.msra.mxu1 %v2334_v48  ;;  %972 = vmatprep.subr.mxu0 %v2104_v25 }
  0xb0   : > { %1011 = vmatprep.subr.mxu1 %v2341_v50  ;;  %973 = vmatpush2.msra.mxu0 %v2120_v19  ;;  %v1065_v19 = vsub.s32 0, %v2736_v60 }
  0xb1   : > { %974 = vmatprep.mubr.f32.mxu0 %v1283_v54  ;;  %1012 = vmatpush1.msra.mxu1 %v2348_v52  ;;  %v1061_v52 = vld [vmem:[%s2515_s4] sm:$0x3] }
  0xb2   : > { %1045 = vmatprep.mubr.f32.mxu1 %v1283_v54  ;;  %975 = vmatmul.mubr.f32.vlgmr.msra.gmra.mxu0 %v820_v38  ;;  %v1066_v5 = vrot.slane %v1061_v52, %v1065_v19 }
  0xb3   : > { %1046 = vmatmul.mubr.f32.vlgmr.msra.gmra.mxu1 %v1283_v54  ;;  %v1069_v54 = vsub.s32 1, %v2736_v60 }
  0xb5   : > { %v1070_v39 = vrot.slane %v1061_v52, %v1069_v54 }
 0x10e   : > { %v654_v40 = vpop.f32.mrf.mxu0 }
 0x10f   : > { %v725_v42 = vpop.f32.mrf.mxu1 }
 0x110   : > { %v656_v44 = vpop.f32.mrf.mxu0  ;;  %v726_v56 = vadd.f32 %v725_v42, %v654_v40 }
 0x111   : > { %v727_v46 = vpop.f32.mrf.mxu1 }
 0x112   : > { %v728_v62 = vadd.f32 %v727_v46, %v656_v44 }
 0x130   : > { %v796_v48 = vpop.f32.mrf.mxu0 }
 0x131   : > { %v797_v33 = vadd.f32 %v796_v48, %v726_v56 }
 0x132   : > { %v798_v50 = vpop.f32.mrf.mxu0 }
 0x133   : > { %v799_v1 = vadd.f32 %v798_v50, %v728_v62  ;;  %v1054_v9 = vrot.slane %v797_v33, 7 }
 0x135   : > { %v1055_v17 = vrot.slane %v799_v1, 7 }
 0x152   : > { %v905_v25 = vpop.f32.mrf.mxu1 }
 0x154   : > { %v907_v58 = vpop.f32.mrf.mxu1 }
 0x172   : > { %v976_v27 = vpop.f32.mrf.mxu0 }
 0x173   : > { %v1047_v31 = vpop.f32.mrf.mxu1  ;;  %v977_v3 = vadd.f32 %v976_v27, %v905_v25 }
 0x174   : > { %v978_v7 = vpop.f32.mrf.mxu0 }
 0x175   : > { %v1048_v11 = vadd.f32 %v1047_v31, %v977_v3  ;;  %v979_v13 = vadd.f32 %v978_v7, %v907_v58  ;;  %v1049_v15 = vpop.f32.mrf.mxu1 }
 0x177   : > { %v1059_v37 = vsel %vm1058_vm5, %v1048_v11, %v1054_v9  ;;  %v1050_v41 = vadd.f32 %v1049_v15, %v979_v13 }
 0x178   : > { %v1073_v43 = vadd.f32 %v1066_v5, %v1059_v37 }
 0x179   : > { %v1060_v45 = vsel %vm1058_vm5, %v1050_v41, %v1055_v17 }
 0x17a   : > { %vm1075_vm6 = vcmp.ge.f32.partialorder %v1073_v43, 0.0  ;;  %v1077_v47 = vmul.f32 0.1, %v1073_v43  ;;  %v1074_v49 = vadd.f32 %v1070_v39, %v1060_v45 }
 0x17c   : > { %v1079_v51 = vsel %vm1075_vm6, %v1073_v43, %v1077_v47  ;;  %vm1076_vm7 = vcmp.ge.f32.partialorder %v1074_v49, 0.0  ;;  %v1078_v53 = vmul.f32 0.1, %v1074_v49 }
 0x17d   : > { %1081 = vst [vmem:[%s386_s7] sm:$0xff] %v1079_v51 }
 0x17e   : > { %v1080_v21 = vsel %vm1076_vm7, %v1074_v49, %v1078_v53 }
 0x17f   : > { %1082 = vst [vmem:[%s386_s7 + $0x8] sm:$0xff] %v1080_v21 }
 0x180 PF: > { %s15_s20 = sadd.s32 1, %s1281_s20   ;;  %s2737_s18 = smov %s1277_s19 }
 0x181   : > { %p12_p5 = scmp.ge.s32.totalorder %s15_s20, 10   ;;  %s2738_s19 = smov %s2740_s1 }
 0x183   :  { %14 = sbr.rel (!%p12_p5) target bundleno = 2 (0x2), region = 81 }

// kernel: discriminator_p_forward.11
= control target key start
LH: loop header
LB: loop body
LE: loop exit
PB: predicated region body
PF: predicated region fallthrough
CT: control target
= control target key end

     0   :  { %s1800_s20 = smov 0   ;;  %s1802_s1 = smov 0   ;;  %s2649_s0 = inlined_call_operand.vmem [shape: f32[8,16,256], index: 0, kind: input, shape index: {}, may-alias: {0,1,2}]   ;;  %s2650_s1 = inlined_call_operand.vmem [shape: f32[8,16,256], index: 1, kind: input, shape index: {}, may-alias: {0,1,2}]   ;;  %s2651_s2 = inlined_call_operand.vmem [shape: f32[8,16,256], index: 2, kind: input, shape index: {}, may-alias: {0,1,2}]   ;;  %s2652_s3 = inlined_call_operand.vmem [shape: f32[768,1], index: 3, kind: input, shape index: {}]   ;;  %s2653_s4 = inlined_call_operand.<no memory space> [shape: f32[1,1], index: 4, kind: input, shape index: {}]   ;;  %s2654_s5 = inlined_call_operand.vmem [shape: f32[8,8,1], index: 5, kind: output, shape index: {}]  }
   0x1   :  { %v10_v0 = vstv %s2653_s4  ;;  %s1804_s21 = smov 0  }
   0x2   :  { %11 = vst [vmem:[#allocation2] sm:$0x1] %v10_v0 }
   0x3 LB: > { %s29_s2 = sadd.s32 1, %s1760_s1  ;;  %p1381_p0 = scmp.ge.s32.totalorder %s1764_s21, 1  ;;  %s1764_s21 = sphi %s1804_s21, %s17_s21   ;;  %s1760_s1 = sphi %s1802_s1, %s2819_s1   ;;  %s1756_s20 = sphi %s1800_s20, %s2818_s20  }
   0x4   : > { %p31_p1 = scmp.ge.s32.totalorder %s29_s2, 8  ;;  %p257_p2 = scmp.lt.s32.totalorder %s1764_s21, 9 }
   0x6   : > { %s2821_s2 = smov (%p31_p1, %s29_s2), 0  ;;  %p258_p3 = pnand %p1381_p0, %p257_p2 }
   0x8   : > { %261 = sbr.rel (%p258_p3) target bundleno = 388 (0x184), region = 40 }
   0xd   : > { %v1823_v1 = vld [vmem:[%s2652_s3 + $0xf8] sm:$0xff]  ;;  %v1845_v5 = vld [vmem:[%s2652_s3 + $0xf0] sm:$0xff]  ;;  %v1867_v9 = vld [vmem:[%s2652_s3 + $0xe8] sm:$0xff]  ;;  %p313_p4 = scmp.lt.s32.totalorder %s1756_s20, 7  ;;  %v356_v49 = vlaneseq  ;;  %vm1241_vm1 = vcmask 1040384   ;;  %vm1243_vm2 = vcmask 1046528  }
   0xe   : > { %2715 = vst [vmem:[#allocation3_spill] sm:$0xff] %v1823_v1  ;;  %v1828_v2 = vld [vmem:[%s2652_s3 + $0x1f8] sm:$0xff]  ;;  %1402 = vmatprep.subr.mxu0 %v1823_v1  ;;  %2717 = vst [vmem:[#allocation5_spill] sm:$0xff] %v1845_v5  ;;  %v1850_v6 = vld [vmem:[%s2652_s3 + $0x1f0] sm:$0xff]  ;;  %vm1253_vm3 = vcmask 7168  }
   0xf   : > { %v1833_v3 = vld [vmem:[%s2652_s3 + $0x78] sm:$0xff]  ;;  %1437 = vmatprep.subr.mxu1 %v1828_v2  ;;  %v1857_v7 = vld [vmem:[%s2652_s3 + $0x70] sm:$0xff]  ;;  %2719 = vst [vmem:[#allocation7_spill] sm:$0xff] %v1867_v9  ;;  %v1874_v10 = vld [vmem:[%s2652_s3 + $0x1e8] sm:$0xff]  ;;  %s2823_s20 = smov (!%p313_p4, %s1756_s20), 7  ;;  %v2157_v58 = vshrl.u32 %v356_v49, 7 }
  0x10   : > { %2716 = vst [vmem:[#allocation4_spill] sm:$0xff] %v1833_v3  ;;  %v1840_v4 = vld [vmem:[%s2652_s3 + $0x178] sm:$0xff]  ;;  %1403 = vmatpush3.msra.mxu0 %v1833_v3  ;;  %2718 = vst [vmem:[#allocation6_spill] sm:$0xff] %v1857_v7  ;;  %v1862_v8 = vld [vmem:[%s2652_s3 + $0x170] sm:$0xff]  ;;  %s1398_s29 = sshll.u32 %s2823_s20, 5 }
  0x11   : > { %1438 = vmatpush3.msra.mxu1 %v1840_v4  ;;  %1404 = vmatprep.subr.mxu0 %v1845_v5  ;;  %v1879_v11 = vld [vmem:[%s2652_s3 + $0x68] sm:$0xff]  ;;  %v1891_v13 = vld [vmem:[%s2652_s3 + $0xe0] sm:$0xff]  ;;  %v1915_v17 = vld [vmem:[%s2652_s3 + $0xd8] sm:$0xff]  ;;  %s2174_s19 = scalar_lea.vmem %s2649_s0, %s1398_s29  ;;  %vm362_vm0 = vcmp.lt.s32.totalorder %v2157_v58, 1 }
  0x12   : > { %1439 = vmatprep.subr.mxu1 %v1850_v6  ;;  %2720 = vst [vmem:[#allocation8_spill] sm:$0xff] %v1879_v11  ;;  %v1884_v12 = vld [vmem:[%s2652_s3 + $0x168] sm:$0xff]  ;;  %1405 = vmatpush3.msra.mxu0 %v1857_v7  ;;  %2721 = vst [vmem:[#allocation9_spill] sm:$0xff] %v1891_v13  ;;  %v1896_v14 = vld [vmem:[%s2652_s3 + $0x1e0] sm:$0xff] }
  0x13   : > { %1440 = vmatpush3.msra.mxu1 %v1862_v8  ;;  %1406 = vmatprep.subr.mxu0 %v1867_v9  ;;  %v1903_v15 = vld [vmem:[%s2652_s3 + $0x60] sm:$0xff]  ;;  %2723 = vst [vmem:[#allocation11_spill] sm:$0xff] %v1915_v17  ;;  %v1920_v18 = vld [vmem:[%s2652_s3 + $0x1d8] sm:$0xff]  ;;  %v1939_v21 = vld [vmem:[%s2652_s3 + $0xd0] sm:$0xff] }
  0x14   : > { %1441 = vmatprep.subr.mxu1 %v1874_v10  ;;  %2722 = vst [vmem:[#allocation10_spill] sm:$0xff] %v1903_v15  ;;  %v1908_v16 = vld [vmem:[%s2652_s3 + $0x160] sm:$0xff]  ;;  %1407 = vmatpush3.msra.mxu0 %v1879_v11  ;;  %v1927_v19 = vld [vmem:[%s2652_s3 + $0x58] sm:$0xff]  ;;  %2725 = vst [vmem:[#allocation13_spill] sm:$0xff] %v1939_v21 }
  0x15   : > { %1442 = vmatpush3.msra.mxu1 %v1884_v12  ;;  %1408 = vmatprep.subr.mxu0 %v1891_v13  ;;  %2724 = vst [vmem:[#allocation12_spill] sm:$0xff] %v1927_v19  ;;  %v1932_v20 = vld [vmem:[%s2652_s3 + $0x158] sm:$0xff]  ;;  %v1944_v22 = vld [vmem:[%s2652_s3 + $0x1d0] sm:$0xff]  ;;  %v1963_v25 = vld [vmem:[%s2652_s3 + $0xc8] sm:$0xff] }
  0x16   : > { %1443 = vmatprep.subr.mxu1 %v1896_v14  ;;  %1409 = vmatpush3.msra.mxu0 %v1903_v15  ;;  %v1951_v23 = vld [vmem:[%s2652_s3 + $0x50] sm:$0xff]  ;;  %2727 = vst [vmem:[#allocation15_spill] sm:$0xff] %v1963_v25  ;;  %v1968_v26 = vld [vmem:[%s2652_s3 + $0x1c8] sm:$0xff]  ;;  %v1987_v29 = vld [vmem:[%s2652_s3 + $0xc0] sm:$0xff] }
  0x17   : > { %1444 = vmatpush3.msra.mxu1 %v1908_v16  ;;  %1410 = vmatprep.subr.mxu0 %v1915_v17  ;;  %2726 = vst [vmem:[#allocation14_spill] sm:$0xff] %v1951_v23  ;;  %v1956_v24 = vld [vmem:[%s2652_s3 + $0x150] sm:$0xff]  ;;  %v1975_v27 = vld [vmem:[%s2652_s3 + $0x48] sm:$0xff]  ;;  %2729 = vst [vmem:[#allocation17_spill] sm:$0xff] %v1987_v29 }
  0x18   : > { %1445 = vmatprep.subr.mxu1 %v1920_v18  ;;  %1411 = vmatpush3.msra.mxu0 %v1927_v19  ;;  %2728 = vst [vmem:[#allocation16_spill] sm:$0xff] %v1975_v27  ;;  %v1980_v28 = vld [vmem:[%s2652_s3 + $0x148] sm:$0xff]  ;;  %v1992_v30 = vld [vmem:[%s2652_s3 + $0x1c0] sm:$0xff]  ;;  %v2011_v33 = vld [vmem:[%s2652_s3 + $0xb8] sm:$0xff] }
  0x19   : > { %1446 = vmatpush3.msra.mxu1 %v1932_v20  ;;  %1412 = vmatprep.subr.mxu0 %v1939_v21  ;;  %v1999_v31 = vld [vmem:[%s2652_s3 + $0x40] sm:$0xff]  ;;  %2731 = vst [vmem:[#allocation19_spill] sm:$0xff] %v2011_v33  ;;  %v2016_v34 = vld [vmem:[%s2652_s3 + $0x1b8] sm:$0xff]  ;;  %v2036_v37 = vld [vmem:[%s2652_s3 + $0xb0] sm:$0xff] }
  0x1a   : > { %1447 = vmatprep.subr.mxu1 %v1944_v22  ;;  %1413 = vmatpush3.msra.mxu0 %v1951_v23  ;;  %2730 = vst [vmem:[#allocation18_spill] sm:$0xff] %v1999_v31  ;;  %v2004_v32 = vld [vmem:[%s2652_s3 + $0x140] sm:$0xff]  ;;  %v2023_v35 = vld [vmem:[%s2652_s3 + $0x38] sm:$0xff]  ;;  %2733 = vst [vmem:[#allocation21_spill] sm:$0xff] %v2036_v37 }
  0x1b   : > { %1448 = vmatpush3.msra.mxu1 %v1956_v24  ;;  %1414 = vmatprep.subr.mxu0 %v1963_v25  ;;  %2732 = vst [vmem:[#allocation20_spill] sm:$0xff] %v2023_v35  ;;  %v2028_v36 = vld [vmem:[%s2652_s3 + $0x138] sm:$0xff]  ;;  %v2041_v38 = vld [vmem:[%s2652_s3 + $0x1b0] sm:$0xff]  ;;  %v2060_v41 = vld [vmem:[%s2652_s3 + $0xa8] sm:$0xff] }
  0x1c   : > { %1449 = vmatprep.subr.mxu1 %v1968_v26  ;;  %1415 = vmatpush3.msra.mxu0 %v1975_v27  ;;  %v2048_v39 = vld [vmem:[%s2652_s3 + $0x30] sm:$0xff]  ;;  %2735 = vst [vmem:[#allocation23_spill] sm:$0xff] %v2060_v41  ;;  %v2065_v42 = vld [vmem:[%s2652_s3 + $0x1a8] sm:$0xff]  ;;  %v2089_v45 = vld [vmem:[%s2652_s3 + $0xa0] sm:$0xff] }
  0x1d   : > { %1450 = vmatpush3.msra.mxu1 %v1980_v28  ;;  %1416 = vmatprep.subr.mxu0 %v1987_v29  ;;  %2734 = vst [vmem:[#allocation22_spill] sm:$0xff] %v2048_v39  ;;  %v2053_v40 = vld [vmem:[%s2652_s3 + $0x130] sm:$0xff]  ;;  %v2072_v43 = vld [vmem:[%s2652_s3 + $0x28] sm:$0xff]  ;;  %2737 = vst [vmem:[#allocation25_spill] sm:$0xff] %v2089_v45 }
  0x1e   : > { %1451 = vmatprep.subr.mxu1 %v1992_v30  ;;  %1417 = vmatpush3.msra.mxu0 %v1999_v31  ;;  %2736 = vst [vmem:[#allocation24_spill] sm:$0xff] %v2072_v43  ;;  %v2077_v44 = vld [vmem:[%s2652_s3 + $0x128] sm:$0xff]  ;;  %v2094_v46 = vld [vmem:[%s2652_s3 + $0x1a0] sm:$0xff]  ;;  %v2113_v50 = vld [vmem:[%s2652_s3 + $0x98] sm:$0xff] }
  0x1f   : > { %1452 = vmatpush3.msra.mxu1 %v2004_v32  ;;  %1418 = vmatprep.subr.mxu0 %v2011_v33  ;;  %v2101_v47 = vld [vmem:[%s2652_s3 + $0x20] sm:$0xff]  ;;  %2739 = vst [vmem:[#allocation27_spill] sm:$0xff] %v2113_v50  ;;  %v2118_v51 = vld [vmem:[%s2652_s3 + $0x198] sm:$0xff]  ;;  %v2138_v54 = vld [vmem:[%s2652_s3 + $0x90] sm:$0xff] }
  0x20   : > { %1453 = vmatprep.subr.mxu1 %v2016_v34  ;;  %1419 = vmatpush3.msra.mxu0 %v2023_v35  ;;  %2738 = vst [vmem:[#allocation26_spill] sm:$0xff] %v2101_v47  ;;  %v2106_v48 = vld [vmem:[%s2652_s3 + $0x120] sm:$0xff]  ;;  %2740 = vst [vmem:[#allocation28_spill] sm:$0xff] %v2118_v51  ;;  %v2125_v52 = vld [vmem:[%s2652_s3 + $0x18] sm:$0xff] }
  0x21   : > { %1454 = vmatpush3.msra.mxu1 %v2028_v36  ;;  %1420 = vmatprep.subr.mxu0 %v2036_v37  ;;  %2741 = vst [vmem:[#allocation29_spill] sm:$0xff] %v2125_v52  ;;  %v2130_v53 = vld [vmem:[%s2652_s3 + $0x118] sm:$0xff]  ;;  %2743 = vst [vmem:[#allocation31_spill] sm:$0xff] %v2138_v54  ;;  %v2143_v55 = vld [vmem:[%s2652_s3 + $0x190] sm:$0xff] }
  0x22   : > { %1455 = vmatprep.subr.mxu1 %v2041_v38  ;;  %1421 = vmatpush3.msra.mxu0 %v2048_v39  ;;  %2742 = vst [vmem:[#allocation30_spill] sm:$0xff] %v2130_v53  ;;  %2744 = vst [vmem:[#allocation32_spill] sm:$0xff] %v2143_v55  ;;  %v2150_v56 = vld [vmem:[%s2652_s3 + $0x10] sm:$0xff]  ;;  %v2164_v59 = vld [vmem:[%s2652_s3 + $0x88] sm:$0xff] }
  0x23   : > { %1456 = vmatpush3.msra.mxu1 %v2053_v40  ;;  %1422 = vmatprep.subr.mxu0 %v2060_v41  ;;  %2745 = vst [vmem:[#allocation33_spill] sm:$0xff] %v2150_v56  ;;  %v2155_v57 = vld [vmem:[%s2652_s3 + $0x110] sm:$0xff]  ;;  %2747 = vst [vmem:[#allocation35_spill] sm:$0xff] %v2164_v59  ;;  %v2169_v60 = vld [vmem:[%s2652_s3 + $0x188] sm:$0xff] }
  0x24   : > { %1457 = vmatprep.subr.mxu1 %v2065_v42  ;;  %1423 = vmatpush3.msra.mxu0 %v2072_v43  ;;  %2746 = vst [vmem:[#allocation34_spill] sm:$0xff] %v2155_v57  ;;  %2748 = vst [vmem:[#allocation36_spill] sm:$0xff] %v2169_v60  ;;  %v2181_v61 = vld [vmem:[%s2652_s3 + $0x8] sm:$0xff]  ;;  %v2193_v63 = vld [vmem:[%s2652_s3 + $0x80] sm:$0xff] }
  0x25   : > { %1458 = vmatpush3.msra.mxu1 %v2077_v44  ;;  %1424 = vmatprep.subr.mxu0 %v2089_v45  ;;  %v2186_v62 = vld [vmem:[%s2652_s3 + $0x108] sm:$0xff]  ;;  %v2198_v0 = vld [vmem:[%s2652_s3 + $0x180] sm:$0xff] }
  0x26   : > { %1459 = vmatprep.subr.mxu1 %v2094_v46  ;;  %1425 = vmatpush3.msra.mxu0 %v2101_v47  ;;  %2749 = vst [vmem:[#allocation37_spill] sm:$0xff] %v2186_v62  ;;  %2750 = vst [vmem:[#allocation38_spill] sm:$0xff] %v2198_v0  ;;  %v2205_v49 = vld [vmem:[%s2652_s3] sm:$0xff] }
  0x27   : > { %1460 = vmatpush3.msra.mxu1 %v2106_v48  ;;  %1426 = vmatprep.subr.mxu0 %v2113_v50 }
  0x28   : > { %1461 = vmatprep.subr.mxu1 %v2118_v51  ;;  %1427 = vmatpush3.msra.mxu0 %v2125_v52  ;;  %v2230_v51 = vld [vmem:[%s2652_s3 + $0x278] sm:$0xff] }
  0x29   : > { %1462 = vmatpush3.msra.mxu1 %v2130_v53  ;;  %1428 = vmatprep.subr.mxu0 %v2138_v54  ;;  %v2223_v53 = vld [vmem:[%s2652_s3 + $0x2f8] sm:$0xff] }
  0x2a   : > { %1463 = vmatprep.subr.mxu1 %v2143_v55  ;;  %1429 = vmatpush3.msra.mxu0 %v2150_v56  ;;  %v2214_v55 = vld [vmem:[%s2652_s3 + $0x100] sm:$0xff] }
  0x2b   : > { %1464 = vmatpush3.msra.mxu1 %v2155_v57  ;;  %1430 = vmatprep.subr.mxu0 %v2164_v59  ;;  %v361_v57 = vld [vmem:[%s2174_s19 + $0x8] sm:$0x3f]  ;;  %2751 = vst [vmem:[#allocation39_spill] sm:$0xff] %v2214_v55 }
  0x2c   : > { %1465 = vmatprep.subr.mxu1 %v2169_v60  ;;  %1431 = vmatpush3.msra.mxu0 %v2181_v61  ;;  %v360_v60 = vld [vmem:[%s2174_s19] sm:$0x3f] }
  0x2d   : > { %1466 = vmatpush3.msra.mxu1 %v2186_v62  ;;  %1432 = vmatprep.subr.mxu0 %v2193_v63  ;;  %v2669_v62 = vmov 0.0  }
  0x2e   : > { %1467 = vmatprep.subr.mxu1 %v2198_v0  ;;  %1433 = vmatpush3.msra.mxu0 %v2205_v49  ;;  %v2441_v0 = vld [vmem:[%s2652_s3 + $0x200] sm:$0xff] }
  0x2f   : > { %1389 = vmatprep.mubr.msk.f32.mxu0 %vm362_vm0, %v361_v57  ;;  %1468 = vmatpush3.msra.mxu1 %v2214_v55  ;;  %v2236_v57 = vld [vmem:[%s2652_s3 + $0x2f0] sm:$0xff] }
  0x30   : > { %625 = vmatprep.mubr.f32.mxu1 %v2669_v62  ;;  %1390 = vmatmul.mubr.msk.f32.vlgmr.msra.gmra.mxu0 %vm362_vm0, %v360_v60  ;;  %v2243_v55 = vld [vmem:[%s2652_s3 + $0x270] sm:$0xff]  ;;  %v2250_v60 = vld [vmem:[%s2652_s3 + $0x2e8] sm:$0xff] }
  0x31   : > { %626 = vmatmul.mubr.f32.vlgmr.msra.gmra.mxu1 %v2669_v62  ;;  %1472 = vmatprep.subr.mxu0 %v2223_v53  ;;  %v2257_v62 = vld [vmem:[%s2652_s3 + $0x268] sm:$0xff] }
  0x32   : > { %1507 = vmatprep.subr.mxu1 %v1823_v1  ;;  %1473 = vmatpush3.msra.mxu0 %v2230_v51  ;;  %v2434_v1 = vld [vmem:[%s2652_s3 + $0x280] sm:$0xff] }
  0x33   : > { %1508 = vmatpush3.msra.mxu1 %v1833_v3  ;;  %1474 = vmatprep.subr.mxu0 %v2236_v57  ;;  %v2264_v3 = vld [vmem:[%s2652_s3 + $0x2e0] sm:$0xff] }
  0x34   : > { %1509 = vmatprep.subr.mxu1 %v1845_v5  ;;  %1475 = vmatpush3.msra.mxu0 %v2243_v55  ;;  %v2271_v5 = vld [vmem:[%s2652_s3 + $0x260] sm:$0xff] }
  0x35   : > { %1510 = vmatpush3.msra.mxu1 %v1857_v7  ;;  %1476 = vmatprep.subr.mxu0 %v2250_v60  ;;  %v2278_v7 = vld [vmem:[%s2652_s3 + $0x2d8] sm:$0xff] }
  0x36   : > { %1511 = vmatprep.subr.mxu1 %v1867_v9  ;;  %1477 = vmatpush3.msra.mxu0 %v2257_v62  ;;  %v2285_v9 = vld [vmem:[%s2652_s3 + $0x258] sm:$0xff] }
  0x37   : > { %1512 = vmatpush3.msra.mxu1 %v1879_v11  ;;  %1478 = vmatprep.subr.mxu0 %v2264_v3  ;;  %v2292_v11 = vld [vmem:[%s2652_s3 + $0x2d0] sm:$0xff] }
  0x38   : > { %1513 = vmatprep.subr.mxu1 %v1891_v13  ;;  %1479 = vmatpush3.msra.mxu0 %v2271_v5  ;;  %v2299_v13 = vld [vmem:[%s2652_s3 + $0x250] sm:$0xff] }
  0x39   : > { %1514 = vmatpush3.msra.mxu1 %v1903_v15  ;;  %1480 = vmatprep.subr.mxu0 %v2278_v7  ;;  %v2306_v15 = vld [vmem:[%s2652_s3 + $0x2c8] sm:$0xff] }
  0x3a   : > { %1515 = vmatprep.subr.mxu1 %v1915_v17  ;;  %1481 = vmatpush3.msra.mxu0 %v2285_v9  ;;  %v2313_v17 = vld [vmem:[%s2652_s3 + $0x248] sm:$0xff] }
  0x3b   : > { %1516 = vmatpush3.msra.mxu1 %v1927_v19  ;;  %1482 = vmatprep.subr.mxu0 %v2292_v11  ;;  %v2320_v19 = vld [vmem:[%s2652_s3 + $0x2c0] sm:$0xff] }
  0x3c   : > { %1517 = vmatprep.subr.mxu1 %v1939_v21  ;;  %1483 = vmatpush3.msra.mxu0 %v2299_v13  ;;  %v2327_v21 = vld [vmem:[%s2652_s3 + $0x240] sm:$0xff] }
  0x3d   : > { %1518 = vmatpush3.msra.mxu1 %v1951_v23  ;;  %1484 = vmatprep.subr.mxu0 %v2306_v15  ;;  %v2334_v23 = vld [vmem:[%s2652_s3 + $0x2b8] sm:$0xff] }
  0x3e   : > { %1519 = vmatprep.subr.mxu1 %v1963_v25  ;;  %1485 = vmatpush3.msra.mxu0 %v2313_v17  ;;  %2752 = vst [vmem:[#allocation40_spill] sm:$0xff] %v2334_v23  ;;  %v2341_v25 = vld [vmem:[%s2652_s3 + $0x238] sm:$0xff] }
  0x3f   : > { %1520 = vmatpush3.msra.mxu1 %v1975_v27  ;;  %1486 = vmatprep.subr.mxu0 %v2320_v19  ;;  %2753 = vst [vmem:[#allocation41_spill] sm:$0xff] %v2341_v25  ;;  %v2348_v27 = vld [vmem:[%s2652_s3 + $0x2b0] sm:$0xff] }
  0x40   : > { %1521 = vmatprep.subr.mxu1 %v1987_v29  ;;  %1487 = vmatpush3.msra.mxu0 %v2327_v21  ;;  %2754 = vst [vmem:[#allocation42_spill] sm:$0xff] %v2348_v27  ;;  %v2355_v29 = vld [vmem:[%s2652_s3 + $0x230] sm:$0xff] }
  0x41   : > { %1522 = vmatpush3.msra.mxu1 %v1999_v31  ;;  %1488 = vmatprep.subr.mxu0 %v2334_v23  ;;  %2755 = vst [vmem:[#allocation43_spill] sm:$0xff] %v2355_v29  ;;  %v2362_v31 = vld [vmem:[%s2652_s3 + $0x2a8] sm:$0xff] }
  0x42   : > { %1523 = vmatprep.subr.mxu1 %v2011_v33  ;;  %1489 = vmatpush3.msra.mxu0 %v2341_v25  ;;  %2756 = vst [vmem:[#allocation44_spill] sm:$0xff] %v2362_v31  ;;  %v2369_v33 = vld [vmem:[%s2652_s3 + $0x228] sm:$0xff] }
  0x43   : > { %1524 = vmatpush3.msra.mxu1 %v2023_v35  ;;  %1490 = vmatprep.subr.mxu0 %v2348_v27  ;;  %2757 = vst [vmem:[#allocation45_spill] sm:$0xff] %v2369_v33  ;;  %v2376_v35 = vld [vmem:[%s2652_s3 + $0x2a0] sm:$0xff] }
  0x44   : > { %1525 = vmatprep.subr.mxu1 %v2036_v37  ;;  %1491 = vmatpush3.msra.mxu0 %v2355_v29  ;;  %2758 = vst [vmem:[#allocation46_spill] sm:$0xff] %v2376_v35  ;;  %v2383_v37 = vld [vmem:[%s2652_s3 + $0x220] sm:$0xff] }
  0x45   : > { %1526 = vmatpush3.msra.mxu1 %v2048_v39  ;;  %1492 = vmatprep.subr.mxu0 %v2362_v31  ;;  %2759 = vst [vmem:[#allocation47_spill] sm:$0xff] %v2383_v37  ;;  %v2390_v39 = vld [vmem:[%s2652_s3 + $0x298] sm:$0xff] }
  0x46   : > { %1527 = vmatprep.subr.mxu1 %v2060_v41  ;;  %1493 = vmatpush3.msra.mxu0 %v2369_v33  ;;  %2760 = vst [vmem:[#allocation48_spill] sm:$0xff] %v2390_v39  ;;  %v2397_v41 = vld [vmem:[%s2652_s3 + $0x218] sm:$0xff] }
  0x47   : > { %1528 = vmatpush3.msra.mxu1 %v2072_v43  ;;  %1494 = vmatprep.subr.mxu0 %v2376_v35  ;;  %2761 = vst [vmem:[#allocation49_spill] sm:$0xff] %v2397_v41  ;;  %v2404_v43 = vld [vmem:[%s2652_s3 + $0x290] sm:$0xff] }
  0x48   : > { %1529 = vmatprep.subr.mxu1 %v2089_v45  ;;  %1495 = vmatpush3.msra.mxu0 %v2383_v37  ;;  %2762 = vst [vmem:[#allocation50_spill] sm:$0xff] %v2404_v43  ;;  %v2411_v45 = vld [vmem:[%s2652_s3 + $0x210] sm:$0xff] }
  0x49   : > { %1530 = vmatpush3.msra.mxu1 %v2101_v47  ;;  %1496 = vmatprep.subr.mxu0 %v2390_v39  ;;  %v2419_v47 = vld [vmem:[%s2652_s3 + $0x288] sm:$0xff] }
  0x4a   : > { %1531 = vmatprep.subr.mxu1 %v2113_v50  ;;  %1497 = vmatpush3.msra.mxu0 %v2397_v41  ;;  %2763 = vst [vmem:[#allocation51_spill] sm:$0xff] %v2419_v47  ;;  %v2427_v50 = vld [vmem:[%s2652_s3 + $0x208] sm:$0xff] }
  0x4b   : > { %1532 = vmatpush3.msra.mxu1 %v2125_v52  ;;  %1498 = vmatprep.subr.mxu0 %v2404_v43 }
  0x4c   : > { %1533 = vmatprep.subr.mxu1 %v2138_v54  ;;  %1499 = vmatpush3.msra.mxu0 %v2411_v45  ;;  %v2765_v54 = vmov 0.0  }
  0x4d   : > { %1534 = vmatpush3.msra.mxu1 %v2150_v56  ;;  %1500 = vmatprep.subr.mxu0 %v2419_v47  ;;  %v2764_v56 = vsub.s32 1, %v2157_v58 }
  0x4e   : > { %1535 = vmatprep.subr.mxu1 %v2164_v59  ;;  %1501 = vmatpush3.msra.mxu0 %v2427_v50  ;;  %v2766_v59 = vsub.s32 0, %v2157_v58 }
  0x4f   : > { %1536 = vmatpush3.msra.mxu1 %v2181_v61  ;;  %v2448_v52 = vrot.slane %v2765_v54, %v2764_v56  ;;  %1502 = vmatprep.subr.mxu0 %v2434_v1  ;;  %v712_v56 = vld [vmem:[%s2174_s19] ss:$8 sm:$0x3]  ;;  %s1388_s19 = sshll.u32 %s2823_s20, 3 }
  0x50   : > { %1537 = vmatprep.subr.mxu1 %v2193_v63  ;;  %v2455_v47 = vrot.slane %v2765_v54, %v2766_v59  ;;  %1503 = vmatpush3.msra.mxu0 %v2441_v0  ;;  %v2768_v59 = vld [vmem:[#allocation30_spill] sm:$0xff]  ;;  %s354_s30 = scalar_lea.vmem %s2654_s5, %s1388_s19 }
  0x51   : > { %695 = vmatprep.mubr.f32.mxu0 %v2765_v54  ;;  %1538 = vmatpush3.msra.mxu1 %v2205_v49 }
  0x52   : > { %696 = vmatmul.mubr.f32.vlgmr.msra.gmra.mxu0 %v2765_v54  ;;  %823 = vmatprep.mubr.f32.mxu1 %v2448_v52  ;;  %v2767_v54 = vld [vmem:[#allocation28_spill] sm:$0xff] }
  0x53   : > { %1542 = vmatprep.subr.mxu0 %v1828_v2  ;;  %1577 = vmatprep.subr.mxu1 %v2223_v53 }
  0x54   : > { %824 = vmatmul.mubr.f32.vlgmr.msra.gmra.mxu1 %v2455_v47  ;;  %1543 = vmatpush3.msra.mxu0 %v1840_v4 }
  0x55   : > { %1578 = vmatpush3.msra.mxu1 %v2230_v51  ;;  %1544 = vmatprep.subr.mxu0 %v1850_v6 }
  0x56   : > { %1579 = vmatprep.subr.mxu1 %v2236_v57  ;;  %1545 = vmatpush3.msra.mxu0 %v1862_v8 }
  0x57   : > { %1580 = vmatpush3.msra.mxu1 %v2243_v55  ;;  %1546 = vmatprep.subr.mxu0 %v1874_v10 }
  0x58   : > { %1581 = vmatprep.subr.mxu1 %v2250_v60  ;;  %1547 = vmatpush3.msra.mxu0 %v1884_v12 }
  0x59   : > { %1582 = vmatpush3.msra.mxu1 %v2257_v62  ;;  %1548 = vmatprep.subr.mxu0 %v1896_v14 }
  0x5a   : > { %1583 = vmatprep.subr.mxu1 %v2264_v3  ;;  %1549 = vmatpush3.msra.mxu0 %v1908_v16 }
  0x5b   : > { %1584 = vmatpush3.msra.mxu1 %v2271_v5  ;;  %1550 = vmatprep.subr.mxu0 %v1920_v18 }
  0x5c   : > { %1585 = vmatprep.subr.mxu1 %v2278_v7  ;;  %1551 = vmatpush3.msra.mxu0 %v1932_v20 }
  0x5d   : > { %1586 = vmatpush3.msra.mxu1 %v2285_v9  ;;  %1552 = vmatprep.subr.mxu0 %v1944_v22 }
  0x5e   : > { %1587 = vmatprep.subr.mxu1 %v2292_v11  ;;  %1553 = vmatpush3.msra.mxu0 %v1956_v24 }
  0x5f   : > { %1588 = vmatpush3.msra.mxu1 %v2299_v13  ;;  %1554 = vmatprep.subr.mxu0 %v1968_v26 }
  0x60   : > { %1589 = vmatprep.subr.mxu1 %v2306_v15  ;;  %1555 = vmatpush3.msra.mxu0 %v1980_v28 }
  0x61   : > { %1590 = vmatpush3.msra.mxu1 %v2313_v17  ;;  %1556 = vmatprep.subr.mxu0 %v1992_v30 }
  0x62   : > { %1591 = vmatprep.subr.mxu1 %v2320_v19  ;;  %1557 = vmatpush3.msra.mxu0 %v2004_v32 }
  0x63   : > { %1592 = vmatpush3.msra.mxu1 %v2327_v21  ;;  %1558 = vmatprep.subr.mxu0 %v2016_v34 }
  0x64   : > { %1593 = vmatprep.subr.mxu1 %v2334_v23  ;;  %1559 = vmatpush3.msra.mxu0 %v2028_v36  ;;  %v2775_v23 = vld [vmem:[#allocation37_spill] sm:$0xff] }
  0x65   : > { %1594 = vmatpush3.msra.mxu1 %v2341_v25  ;;  %1560 = vmatprep.subr.mxu0 %v2041_v38 }
  0x66   : > { %1595 = vmatprep.subr.mxu1 %v2348_v27  ;;  %1561 = vmatpush3.msra.mxu0 %v2053_v40  ;;  %v2773_v27 = vld [vmem:[#allocation51_spill] sm:$0xff] }
  0x67   : > { %1596 = vmatpush3.msra.mxu1 %v2355_v29  ;;  %1562 = vmatprep.subr.mxu0 %v2065_v42  ;;  %v2772_v29 = vld [vmem:[#allocation36_spill] sm:$0xff] }
  0x68   : > { %1597 = vmatprep.subr.mxu1 %v2362_v31  ;;  %1563 = vmatpush3.msra.mxu0 %v2077_v44  ;;  %v2769_v31 = vld [vmem:[#allocation32_spill] sm:$0xff] }
  0x69   : > { %1598 = vmatpush3.msra.mxu1 %v2369_v33  ;;  %1564 = vmatprep.subr.mxu0 %v2094_v46  ;;  %v2770_v33 = vld [vmem:[#allocation34_spill] sm:$0xff] }
  0x6a   : > { %1599 = vmatprep.subr.mxu1 %v2376_v35  ;;  %1565 = vmatpush3.msra.mxu0 %v2106_v48  ;;  %v2771_v35 = vsub.s32 1, %v2157_v58 }
  0x6b   : > { %1600 = vmatpush3.msra.mxu1 %v2383_v37  ;;  %1566 = vmatprep.subr.mxu0 %v2767_v54 }
  0x6c   : > { %1601 = vmatprep.subr.mxu1 %v2390_v39  ;;  %1567 = vmatpush3.msra.mxu0 %v2768_v59  ;;  %v745_v37 = vrot.slane %v712_v56, %v2771_v35  ;;  %v2774_v39 = vsub.s32 0, %v2157_v58  ;;  %v2778_v35 = vld [vmem:[#allocation3_spill] sm:$0xff]  ;;  %v2780_v58 = vld [vmem:[#allocation5_spill] sm:$0xff] }
  0x6d   : > { %1602 = vmatpush3.msra.mxu1 %v2397_v41  ;;  %1568 = vmatprep.subr.mxu0 %v2769_v31  ;;  %v2776_v41 = vld [vmem:[#allocation38_spill] sm:$0xff] }
  0x6e   : > { %1603 = vmatprep.subr.mxu1 %v2404_v43  ;;  %1569 = vmatpush3.msra.mxu0 %v2770_v33  ;;  %v741_v25 = vrot.slane %v712_v56, %v2774_v39  ;;  %v2777_v43 = vld [vmem:[#allocation39_spill] sm:$0xff]  ;;  %v2779_v39 = vld [vmem:[#allocation4_spill] sm:$0xff] }
  0x6f   : > { %1604 = vmatpush3.msra.mxu1 %v2411_v45  ;;  %1570 = vmatprep.subr.mxu0 %v2772_v29  ;;  %v2783_v56 = vld [vmem:[#allocation8_spill] sm:$0xff] }
  0x70   : > { %1605 = vmatprep.subr.mxu1 %v2773_v27  ;;  %1571 = vmatpush3.msra.mxu0 %v2775_v23 }
  0x71   : > { %1606 = vmatpush3.msra.mxu1 %v2427_v50  ;;  %1572 = vmatprep.subr.mxu0 %v2776_v41 }
  0x72   : > { %1607 = vmatprep.subr.mxu1 %v2434_v1  ;;  %1573 = vmatpush3.msra.mxu0 %v2777_v43 }
  0x73   : > { %893 = vmatprep.mubr.f32.mxu0 %v745_v37  ;;  %1608 = vmatpush3.msra.mxu1 %v2441_v0  ;;  %v2781_v37 = vld [vmem:[#allocation6_spill] sm:$0xff] }
  0x74   : > { %894 = vmatmul.mubr.f32.vlgmr.msra.gmra.mxu0 %v741_v25  ;;  %963 = vmatprep.mubr.f32.mxu1 %v2448_v52  ;;  %v2782_v25 = vld [vmem:[#allocation7_spill] sm:$0xff] }
  0x75   : > { %1612 = vmatprep.subr.mxu0 %v2778_v35  ;;  %1647 = vmatprep.subr.mxu1 %v1828_v2  ;;  %v2784_v2 = vld [vmem:[#allocation9_spill] sm:$0xff] }
  0x76   : > { %964 = vmatmul.mubr.f32.vlgmr.msra.gmra.mxu1 %v2455_v47  ;;  %1613 = vmatpush3.msra.mxu0 %v2779_v39 }
  0x77   : > { %1648 = vmatpush3.msra.mxu1 %v1840_v4  ;;  %1614 = vmatprep.subr.mxu0 %v2780_v58  ;;  %v2785_v4 = vld [vmem:[#allocation10_spill] sm:$0xff] }
  0x78   : > { %1649 = vmatprep.subr.mxu1 %v1850_v6  ;;  %1615 = vmatpush3.msra.mxu0 %v2781_v37  ;;  %v2786_v6 = vld [vmem:[#allocation11_spill] sm:$0xff] }
  0x79   : > { %1650 = vmatpush3.msra.mxu1 %v1862_v8  ;;  %1616 = vmatprep.subr.mxu0 %v2782_v25  ;;  %v2787_v8 = vld [vmem:[#allocation12_spill] sm:$0xff] }
  0x7a   : > { %1651 = vmatprep.subr.mxu1 %v1874_v10  ;;  %1617 = vmatpush3.msra.mxu0 %v2783_v56  ;;  %v2788_v10 = vld [vmem:[#allocation13_spill] sm:$0xff] }
  0x7b   : > { %1652 = vmatpush3.msra.mxu1 %v1884_v12  ;;  %1618 = vmatprep.subr.mxu0 %v2784_v2  ;;  %v2789_v12 = vld [vmem:[#allocation14_spill] sm:$0xff] }
  0x7c   : > { %1653 = vmatprep.subr.mxu1 %v1896_v14  ;;  %1619 = vmatpush3.msra.mxu0 %v2785_v4  ;;  %v2790_v14 = vld [vmem:[#allocation15_spill] sm:$0xff] }
  0x7d   : > { %1654 = vmatpush3.msra.mxu1 %v1908_v16  ;;  %1620 = vmatprep.subr.mxu0 %v2786_v6  ;;  %v2791_v16 = vld [vmem:[#allocation16_spill] sm:$0xff] }
  0x7e   : > { %1655 = vmatprep.subr.mxu1 %v1920_v18  ;;  %1621 = vmatpush3.msra.mxu0 %v2787_v8  ;;  %v2792_v18 = vld [vmem:[#allocation17_spill] sm:$0xff] }
  0x7f   : > { %1656 = vmatpush3.msra.mxu1 %v1932_v20  ;;  %1622 = vmatprep.subr.mxu0 %v2788_v10  ;;  %v2793_v20 = vld [vmem:[#allocation18_spill] sm:$0xff] }
  0x80   : > { %1657 = vmatprep.subr.mxu1 %v1944_v22  ;;  %1623 = vmatpush3.msra.mxu0 %v2789_v12  ;;  %v2794_v22 = vld [vmem:[#allocation19_spill] sm:$0xff]  ;;  %v1395_v12 = vld [vmem:[#allocation2] ss:$0 sm:$0xff] }
  0x81   : > { %1658 = vmatpush3.msra.mxu1 %v1956_v24  ;;  %1624 = vmatprep.subr.mxu0 %v2790_v14  ;;  %v2795_v24 = vld [vmem:[#allocation20_spill] sm:$0xff] }
  0x82   : > { %1659 = vmatprep.subr.mxu1 %v1968_v26  ;;  %1625 = vmatpush3.msra.mxu0 %v2791_v16  ;;  %v2796_v26 = vld [vmem:[#allocation21_spill] sm:$0xff] }
  0x83   : > { %1660 = vmatpush3.msra.mxu1 %v1980_v28  ;;  %1626 = vmatprep.subr.mxu0 %v2792_v18  ;;  %v2797_v28 = vld [vmem:[#allocation22_spill] sm:$0xff] }
  0x84   : > { %1661 = vmatprep.subr.mxu1 %v1992_v30  ;;  %1627 = vmatpush3.msra.mxu0 %v2793_v20  ;;  %v2798_v30 = vld [vmem:[#allocation23_spill] sm:$0xff] }
  0x85   : > { %1662 = vmatpush3.msra.mxu1 %v2004_v32  ;;  %1628 = vmatprep.subr.mxu0 %v2794_v22  ;;  %v2799_v32 = vld [vmem:[#allocation24_spill] sm:$0xff] }
  0x86   : > { %1663 = vmatprep.subr.mxu1 %v2016_v34  ;;  %1629 = vmatpush3.msra.mxu0 %v2795_v24  ;;  %v2800_v34 = vld [vmem:[#allocation25_spill] sm:$0xff] }
  0x87   : > { %1664 = vmatpush3.msra.mxu1 %v2028_v36  ;;  %1630 = vmatprep.subr.mxu0 %v2796_v26  ;;  %v2801_v36 = vld [vmem:[#allocation26_spill] sm:$0xff] }
  0x88   : > { %1665 = vmatprep.subr.mxu1 %v2041_v38  ;;  %1631 = vmatpush3.msra.mxu0 %v2797_v28  ;;  %v2802_v38 = vld [vmem:[#allocation27_spill] sm:$0xff] }
  0x89   : > { %1666 = vmatpush3.msra.mxu1 %v2053_v40  ;;  %1632 = vmatprep.subr.mxu0 %v2798_v30  ;;  %v2803_v40 = vld [vmem:[#allocation29_spill] sm:$0xff] }
  0x8a   : > { %1667 = vmatprep.subr.mxu1 %v2065_v42  ;;  %1633 = vmatpush3.msra.mxu0 %v2799_v32  ;;  %v2804_v42 = vld [vmem:[#allocation31_spill] sm:$0xff] }
  0x8b   : > { %1668 = vmatpush3.msra.mxu1 %v2077_v44  ;;  %1634 = vmatprep.subr.mxu0 %v2800_v34  ;;  %v2805_v44 = vld [vmem:[#allocation33_spill] sm:$0xff] }
  0x8c   : > { %1669 = vmatprep.subr.mxu1 %v2094_v46  ;;  %1635 = vmatpush3.msra.mxu0 %v2801_v36  ;;  %v2806_v46 = vld [vmem:[#allocation35_spill] sm:$0xff] }
  0x8d   : > { %1670 = vmatpush3.msra.mxu1 %v2106_v48  ;;  %1636 = vmatprep.subr.mxu0 %v2802_v38 }
  0x8e   : > { %1671 = vmatprep.subr.mxu1 %v2767_v54  ;;  %1637 = vmatpush3.msra.mxu0 %v2803_v40 }
  0x8f   : > { %1672 = vmatpush3.msra.mxu1 %v2768_v59  ;;  %1638 = vmatprep.subr.mxu0 %v2804_v42 }
  0x90   : > { %1673 = vmatprep.subr.mxu1 %v2769_v31  ;;  %1639 = vmatpush3.msra.mxu0 %v2805_v44 }
  0x91   : > { %1674 = vmatpush3.msra.mxu1 %v2770_v33  ;;  %1640 = vmatprep.subr.mxu0 %v2806_v46 }
  0x92   : > { %1675 = vmatprep.subr.mxu1 %v2772_v29  ;;  %1641 = vmatpush3.msra.mxu0 %v2181_v61 }
  0x93   : > { %1676 = vmatpush3.msra.mxu1 %v2775_v23  ;;  %1642 = vmatprep.subr.mxu0 %v2193_v63  ;;  %v2807_v23 = vld [vmem:[#allocation40_spill] sm:$0xff] }
  0x94   : > { %1677 = vmatprep.subr.mxu1 %v2776_v41  ;;  %1643 = vmatpush3.msra.mxu0 %v2205_v49 }
  0x95   : > { %1089 = vmatprep.mubr.f32.mxu0 %v2448_v52  ;;  %1678 = vmatpush3.msra.mxu1 %v2777_v43 }
  0x96   : > { %1159 = vmatprep.mubr.f32.mxu1 %v2448_v52  ;;  %1090 = vmatmul.mubr.f32.vlgmr.msra.gmra.mxu0 %v2455_v47 }
  0x97   : > { %1160 = vmatmul.mubr.f32.vlgmr.msra.gmra.mxu1 %v2455_v47  ;;  %1682 = vmatprep.subr.mxu0 %v2223_v53 }
  0x98   : > { %1229 = vmatprep.mubr.f32.mxu0 %v2448_v52  ;;  %1683 = vmatpush3.msra.mxu0 %v2230_v51 }
  0x99   : > { %1684 = vmatprep.subr.mxu0 %v2236_v57 }
  0x9a   : > { %1685 = vmatpush3.msra.mxu0 %v2243_v55 }
  0x9b   : > { %1686 = vmatprep.subr.mxu0 %v2250_v60 }
  0x9c   : > { %1687 = vmatpush3.msra.mxu0 %v2257_v62 }
  0x9d   : > { %1688 = vmatprep.subr.mxu0 %v2264_v3  ;;  %v2808_v3 = vld [vmem:[#allocation41_spill] sm:$0xff] }
  0x9e   : > { %1689 = vmatpush3.msra.mxu0 %v2271_v5  ;;  %v2809_v5 = vld [vmem:[#allocation42_spill] sm:$0xff] }
  0x9f   : > { %1690 = vmatprep.subr.mxu0 %v2278_v7  ;;  %v2810_v7 = vld [vmem:[#allocation43_spill] sm:$0xff] }
  0xa0   : > { %1691 = vmatpush3.msra.mxu0 %v2285_v9  ;;  %v2811_v9 = vld [vmem:[#allocation44_spill] sm:$0xff] }
  0xa1   : > { %1692 = vmatprep.subr.mxu0 %v2292_v11  ;;  %v2812_v11 = vld [vmem:[#allocation45_spill] sm:$0xff] }
  0xa2   : > { %1693 = vmatpush3.msra.mxu0 %v2299_v13  ;;  %v2813_v13 = vld [vmem:[#allocation46_spill] sm:$0xff] }
  0xa3   : > { %1694 = vmatprep.subr.mxu0 %v2306_v15  ;;  %v2814_v15 = vld [vmem:[#allocation47_spill] sm:$0xff] }
  0xa4   : > { %1695 = vmatpush3.msra.mxu0 %v2313_v17  ;;  %v2815_v17 = vld [vmem:[#allocation48_spill] sm:$0xff] }
  0xa5   : > { %1696 = vmatprep.subr.mxu0 %v2320_v19  ;;  %v2816_v19 = vld [vmem:[#allocation49_spill] sm:$0xff] }
  0xa6   : > { %1697 = vmatpush3.msra.mxu0 %v2327_v21  ;;  %v2817_v21 = vld [vmem:[#allocation50_spill] sm:$0xff] }
  0xa7   : > { %1698 = vmatprep.subr.mxu0 %v2807_v23 }
  0xa8   : > { %1699 = vmatpush3.msra.mxu0 %v2808_v3 }
  0xa9   : > { %1700 = vmatprep.subr.mxu0 %v2809_v5 }
  0xaa   : > { %1701 = vmatpush3.msra.mxu0 %v2810_v7 }
  0xab   : > { %1702 = vmatprep.subr.mxu0 %v2811_v9 }
  0xac   : > { %1703 = vmatpush3.msra.mxu0 %v2812_v11 }
  0xad   : > { %1704 = vmatprep.subr.mxu0 %v2813_v13 }
  0xae   : > { %1705 = vmatpush3.msra.mxu0 %v2814_v15 }
  0xaf   : > { %1706 = vmatprep.subr.mxu0 %v2815_v17 }
  0xb0   : > { %1707 = vmatpush3.msra.mxu0 %v2816_v19 }
  0xb1   : > { %1708 = vmatprep.subr.mxu0 %v2817_v21 }
  0xb2   : > { %1709 = vmatpush3.msra.mxu0 %v2411_v45 }
  0xb3   : > { %1710 = vmatprep.subr.mxu0 %v2773_v27 }
  0xb4   : > { %1711 = vmatpush3.msra.mxu0 %v2427_v50 }
  0xb5   : > { %1712 = vmatprep.subr.mxu0 %v2434_v1 }
  0xb6   : > { %1713 = vmatpush3.msra.mxu0 %v2441_v0 }
  0xb7   : > { %1230 = vmatmul.mubr.f32.vlgmr.msra.gmra.mxu0 %v2455_v47 }
  0xf0   : > { %v1434_v31 = vpop.f32.mrf.mxu0 }
  0xf1   : > { %v1469_v29 = vpop.f32.mrf.mxu1 }
  0xf2   : > { %v1435_v41 = vpop.f32.mrf.mxu0 }
  0xf3   : > { %v1470_v33 = vpop.f32.mrf.mxu1  ;;  %v1436_v62 = vadd.f32 %v1435_v41, %v1434_v31 }
  0xf4   : > { %v1471_v1 = vadd.f32 %v1470_v33, %v1469_v29 }
  0xf6   : > { %v628_v59 = vadd.f32 %v1471_v1, %v1436_v62 }
 0x112   : > { %v1504_v48 = vpop.f32.mrf.mxu0 }
 0x114   : > { %v1539_v43 = vpop.f32.mrf.mxu1  ;;  %v1505_v52 = vpop.f32.mrf.mxu0 }
 0x115   : > { %v1506_v47 = vadd.f32 %v1505_v52, %v1504_v48 }
 0x116   : > { %v1540_v51 = vpop.f32.mrf.mxu1 }
 0x117   : > { %v1541_v57 = vadd.f32 %v1540_v51, %v1539_v43  ;;  %v698_v37 = vadd.f32 %v1506_v47, %v628_v59 }
 0x119   : > { %v1236_v8 = vrot.slane %v698_v37, 7 }
 0x134   : > { %v1574_v53 = vpop.f32.mrf.mxu0 }
 0x136   : > { %v1609_v45 = vpop.f32.mrf.mxu1  ;;  %v1575_v55 = vpop.f32.mrf.mxu0 }
 0x137   : > { %v1576_v63 = vadd.f32 %v1575_v55, %v1574_v53 }
 0x138   : > { %v1610_v27 = vpop.f32.mrf.mxu1 }
 0x139   : > { %v896_v35 = vadd.f32 %v1576_v63, %v1541_v57  ;;  %v1611_v39 = vadd.f32 %v1610_v27, %v1609_v45 }
 0x13b   : > { %v966_v4 = vadd.f32 %v1611_v39, %v896_v35 }
 0x13d   : > { %v1242_v14 = vsel %vm1241_vm1, %v966_v4, %v1236_v8 }
 0x156   : > { %v1644_v61 = vpop.f32.mrf.mxu0 }
 0x157   : > { %v1679_v50 = vpop.f32.mrf.mxu1 }
 0x158   : > { %v1645_v0 = vpop.f32.mrf.mxu0 }
 0x159   : > { %v1680_v49 = vpop.f32.mrf.mxu1  ;;  %v1646_v60 = vadd.f32 %v1645_v0, %v1644_v61 }
 0x15a   : > { %v1681_v54 = vadd.f32 %v1680_v49, %v1679_v50 }
 0x15c   : > { %v1162_v56 = vadd.f32 %v1681_v54, %v1646_v60 }
 0x177   : > { %v1714_v58 = vpop.f32.mrf.mxu0 }
 0x179   : > { %v1715_v25 = vpop.f32.mrf.mxu0 }
 0x17a   : > { %v1716_v2 = vadd.f32 %v1715_v25, %v1714_v58 }
 0x17c   : > { %v1232_v6 = vadd.f32 %v1716_v2, %v1162_v56 }
 0x17e   : > { %v1239_v10 = vrot.slane %v1232_v6, 1 }
 0x180   : > { %v1244_v16 = vsel %vm1243_vm2, %v1242_v14, %v1239_v10 }
 0x181   : > { %v1252_v18 = vadd.f32 %v1395_v12, %v1244_v16 }
 0x183   : > { %1254 = vst.msk [vmem:[%s354_s30] sm:$0xff] %vm1253_vm3, %v1252_v18 }
 0x184 PF: > { %s17_s21 = sadd.s32 1, %s1764_s21   ;;  %s2818_s20 = smov %s1760_s1 }
 0x185   : > { %p14_p5 = scmp.ge.s32.totalorder %s17_s21, 10   ;;  %s2819_s1 = smov %s2821_s2 }
 0x187   :  { %16 = sbr.rel (!%p14_p5) target bundleno = 3 (0x3), region = 80 }

</bundles_post_ra>
